<compile_context>
chip_gen: v5e
topology: v5e:2x2
jax: 0.10.0
libtpu: 0.0.40
codegen_flags: <defaults>
</compile_context>

<pallas_src>
import functools

import jax
import jax.numpy as jnp
from jax.experimental import pallas as pl
from jax.experimental.pallas import tpu as pltpu


# ---------------------------------------------------------------------------
# Fused Pallas kernel
# ---------------------------------------------------------------------------
def _cnn1_fused_kernel(x_ref, w1_ref, w2_ref, b2_ref, mask_ref, o_ref,
                       rhs1_scr, h1_scr, rhs2_scr, *,
                       S_pad, Wp, x_off, k1, k2, c1p, c2):
    """One-shot fused CNN1 forward (single grid point, all VMEM resident).

    x_ref    : (c1p, XW)          padded input, channels x flat(N,Hp,Wp)+margins;
                                  channel c1p-1 is constant 1.0 (bias channel).
    w1_ref   : (C2, k1*k1*c1p)    conv1 weights, col = tap*c1p + cin, b1 folded in.
    w2_ref   : (C3, k2*k2*c2)     conv2 weights, col = tap*c2 + cin.
    b2_ref   : (C3, 1)
    mask_ref : (1, S_pad)         1.0 on the valid conv1-output interior, else 0.0.
    o_ref    : (C3, S_pad)        pooled output on the same flat grid.
    rhs1_scr : (k1*k1*c1p, S_pad) stacked conv1 RHS (fully overwritten).
    h1_scr   : (c2, S_pad + 128)  conv1 activations + slice margin.
    rhs2_scr : (k2*k2*c2, S_pad)  stacked conv2 RHS (fully overwritten).
    """
    f32 = jnp.float32

    # ---- stage conv1 stacked RHS: k1*k1 shifted (c1p, S_pad) slabs -----------
    # Output sits at a +1 grid offset (pad=1), hence the (di-1, dj-1) back-shift.
    for di in range(k1):
        for dj in range(k1):
            t = di * k1 + dj
            shift = (di - 1) * Wp + (dj - 1)
            rhs1_scr[pl.ds(t * c1p, c1p), :] = x_ref[:, pl.ds(x_off + shift, S_pad)]

    # ---- conv1 (+bias via ones channel) + ReLU + border mask: one fat matmul --
    acc1 = jnp.dot(w1_ref[...], rhs1_scr[...], preferred_element_type=f32)
    h1 = jnp.maximum(acc1, 0.0) * mask_ref[...]                    # (c2, S_pad)

    # Stage h1. Only the 128-lane slice margin is zeroed (valid conv2 outputs
    # never read past lane S, but keep the margin deterministic — it is cheap).
    margin = h1_scr.shape[1] - S_pad
    h1_scr[:, pl.ds(S_pad, margin)] = jnp.zeros((c2, margin), f32)
    h1_scr[:, pl.ds(0, S_pad)] = h1

    # ---- stage conv2 stacked RHS: k2*k2 shifted (c2, S_pad) slabs -------------
    for di in range(k2):
        for dj in range(k2):
            t = di * k2 + dj
            rhs2_scr[pl.ds(t * c2, c2), :] = h1_scr[:, pl.ds(di * Wp + dj, S_pad)]

    # ---- conv2 + bias + ReLU: one fat matmul ----------------------------------
    acc2 = jnp.dot(w2_ref[...], rhs2_scr[...], preferred_element_type=f32)
    y2 = jnp.maximum(acc2 + b2_ref[...], 0.0)                      # (C3, S_pad)

    # ---- fused 2x2 stride-1 max pool via XLU rolls (no staging buffer) --------
    # roll by S_pad-k == read lane p+k; wrapped lanes only land in grid
    # positions the wrapper slices away.
    p01 = pltpu.roll(y2, shift=S_pad - 1, axis=1)
    p10 = pltpu.roll(y2, shift=S_pad - Wp, axis=1)
    p11 = pltpu.roll(y2, shift=S_pad - (Wp + 1), axis=1)
    o_ref[...] = jnp.maximum(jnp.maximum(y2, p01), jnp.maximum(p10, p11))


# ---------------------------------------------------------------------------
# Wrapper: tiny layout prep, one pallas_call, tiny PyTorch-order flatten
# ---------------------------------------------------------------------------
def cnn1_forward(params, x):
    w1, b1, w2, b2 = params["w1"], params["b1"], params["w2"], params["b2"]
    N, C1, H, W = x.shape
    C2, _, k1, _ = w1.shape            # (16, 7, 4, 4)
    C3, _, k2, _ = w2.shape            # (32, 16, 5, 5)
    pad = 1                            # both convs use padding=1
    f32 = jnp.float32

    Hp, Wp = H + 2 * pad, W + 2 * pad                          # common 18x18 grid
    Ho1, Wo1 = Hp - k1 + 1, Wp - k1 + 1                        # conv1 out (15, 15)
    Ho2, Wo2 = Ho1 + 2 * pad - k2 + 1, Wo1 + 2 * pad - k2 + 1  # conv2 out (13, 13)
    Hq, Wq = Ho2 - 1, Wo2 - 1                                  # pooled out (12, 12)
    S = N * Hp * Wp                                            # flat grid (648)
    S_pad = ((S + 127) // 128) * 128                           # lane-dense (768)

    C1p = ((C1 + 1 + 7) // 8) * 8      # input chans + bias chan, sublane aligned (8)
    assert C2 % 8 == 0
    K1 = k1 * k1 * C1p                 # 128
    K2 = k2 * k2 * C2                  # 400

    x_off = pad * (Wp + 1)                                     # conv1 back-reach
    x_tail = (k1 - 1 - pad) * (Wp + 1)                         # conv1 forward reach
    XW = ((x_off + S_pad + x_tail + 127) // 128) * 128         # 896
    assert (k2 - 1) * (Wp + 1) <= 128                          # conv2 reach fits margin
    h1_w = S_pad + 128

    # --- tiny one-shot layout prep (XLA glue, a few hundred KB) ----------------
    xp = jnp.pad(x, ((0, 0), (0, 0), (pad, pad), (pad, pad)))
    xflat = xp.transpose(1, 0, 2, 3).reshape(C1, S).astype(f32)
    xbuf = jnp.zeros((C1p, XW), f32)
    xbuf = xbuf.at[:C1, x_off:x_off + S].set(xflat)
    xbuf = xbuf.at[C1p - 1, :].set(1.0)        # constant-1 bias channel

    # conv1 weights -> (C2, K1); column = (di*k1+dj)*C1p + cin; fold b1 into the
    # bias-channel column of the shift-0 tap (di = dj = pad).
    w1t = jnp.zeros((C2, k1, k1, C1p), f32)
    w1t = w1t.at[:, :, :, :C1].set(w1.transpose(0, 2, 3, 1).astype(f32))
    w1t = w1t.at[:, pad, pad, C1p - 1].set(b1.astype(f32))
    w1m = w1t.reshape(C2, K1)

    # conv2 weights -> (C3, K2); column = (di*k2+dj)*C2 + cin.
    w2m = w2.transpose(0, 2, 3, 1).reshape(C3, K2).astype(f32)
    b2c = b2.reshape(C3, 1).astype(f32)

    # valid conv1-output interior on the common padded grid, zero elsewhere
    ai, bi = jnp.arange(Hp), jnp.arange(Wp)
    keep = (((ai >= pad) & (ai < Ho1 + pad))[:, None] &
            ((bi >= pad) & (bi < Wo1 + pad))[None, :])
    mask = jnp.broadcast_to(keep, (N, Hp, Wp)).reshape(1, S).astype(f32)
    mask = jnp.pad(mask, ((0, 0), (0, S_pad - S)))

    kernel = functools.partial(_cnn1_fused_kernel, S_pad=S_pad, Wp=Wp,
                               x_off=x_off, k1=k1, k2=k2, c1p=C1p, c2=C2)

    out_flat = pl.pallas_call(
        kernel,
        out_shape=jax.ShapeDtypeStruct((C3, S_pad), f32),
        in_specs=[pl.BlockSpec(memory_space=pltpu.MemorySpace.VMEM)] * 5,
        out_specs=pl.BlockSpec(memory_space=pltpu.MemorySpace.VMEM),
        scratch_shapes=[
            pltpu.VMEM((K1, S_pad), f32),      # stacked conv1 RHS
            pltpu.VMEM((C2, h1_w), f32),       # conv1 activations (+ margin)
            pltpu.VMEM((K2, S_pad), f32),      # stacked conv2 RHS
        ],
    )(xbuf, w1m, w2m, b2c, mask)

    # --- extract the valid 12x12 window and flatten in PyTorch NCHW order ------
    out = out_flat[:, :S].reshape(C3, N, Hp, Wp)[:, :, :Hq, :Wq]
    return out.transpose(1, 0, 2, 3).reshape(N, -1)


# ---------------------------------------------------------------------------
# Pure-JAX reference (for in-script correctness check) and params
# ---------------------------------------------------------------------------
def cnn1_reference(params, x):
    dn = ("NCHW", "OIHW", "NCHW")
    h = jax.lax.conv_general_dilated(
        x, params["w1"], (1, 1), ((1, 1), (1, 1)), dimension_numbers=dn,
        precision=jax.lax.Precision.HIGHEST)
    h = jax.nn.relu(h + params["b1"][None, :, None, None])
    h = jax.lax.conv_general_dilated(
        h, params["w2"], (1, 1), ((1, 1), (1, 1)), dimension_numbers=dn,
        precision=jax.lax.Precision.HIGHEST)
    h = jax.nn.relu(h + params["b2"][None, :, None, None])
    h = jax.lax.reduce_window(h, -jnp.inf, jax.lax.max,
                              (1, 1, 2, 2), (1, 1, 1, 1), "VALID")
    return h.reshape(x.shape[0], -1)


def init_params(key):
    ka, kb, kc, kd = jax.random.split(key, 4)
    fan1 = 7 * 4 * 4
    fan2 = 16 * 5 * 5
    w1 = jax.random.uniform(ka, (16, 7, 4, 4), jnp.float32,
                            -1.0 / jnp.sqrt(fan1), 1.0 / jnp.sqrt(fan1))
    b1 = jax.random.uniform(kb, (16,), jnp.float32,
                            -1.0 / jnp.sqrt(fan1), 1.0 / jnp.sqrt(fan1))
    w2 = jax.random.uniform(kc, (32, 16, 5, 5), jnp.float32,
                            -1.0 / jnp.sqrt(fan2), 1.0 / jnp.sqrt(fan2))
    b2 = jax.random.uniform(kd, (32,), jnp.float32,
                            -1.0 / jnp.sqrt(fan2), 1.0 / jnp.sqrt(fan2))
    return {"w1": w1, "b1": b1, "w2": w2, "b2": b2}


if __name__ == "__main__":
    key = jax.random.PRNGKey(0)
    pkey, xkey = jax.random.split(key)
    params = init_params(pkey)
    # input: NCHW (batch=2, channels=7, spatial=16x16)
    x = jax.random.normal(xkey, (2, 7, 16, 16), jnp.float32)

    out = jax.jit(cnn1_forward)(params, x)
    out = jax.block_until_ready(out)

    # MaxPool2d(kernel_size=2, stride=1) -> 12x12 spatial, flatten = 32*12*12
    assert out.shape == (2, 32 * 12 * 12), out.shape

    ref = cnn1_reference(params, x)
    err = float(jnp.max(jnp.abs(out - ref)))
    assert err < 1e-2, f"max abs error vs reference = {err}"

    print("KERNEL_OK")
</pallas_src>

<mosaic_0001>
module attributes {stable_mosaic.version = 11 : i64} {
  func.func @_cnn1_fused_kernel(%arg0: memref<8x896xf32, #tpu.memory_space<vmem>>, %arg1: memref<16x128xf32, #tpu.memory_space<vmem>>, %arg2: memref<32x400xf32, #tpu.memory_space<vmem>>, %arg3: memref<32x1xf32, #tpu.memory_space<vmem>>, %arg4: memref<1x768xf32, #tpu.memory_space<vmem>>, %arg5: memref<32x768xf32, #tpu.memory_space<vmem>>, %arg6: memref<128x768xf32, #tpu.memory_space<vmem>>, %arg7: memref<16x896xf32, #tpu.memory_space<vmem>>, %arg8: memref<400x768xf32, #tpu.memory_space<vmem>>) attributes {dimension_semantics = [], scalar_prefetch = 0 : i64, scratch_operands = 3 : i64, tpu.core_type = #tpu.core_type<tc>} {
    %c0 = arith.constant 0 : index
    %c0_0 = arith.constant 0 : index
    %0 = vector.load %arg0[%c0, %c0_0] : memref<8x896xf32, #tpu.memory_space<vmem>>, vector<8x768xf32>
    %c0_1 = arith.constant 0 : index
    %c0_2 = arith.constant 0 : index
    %1 = vector.load %arg6[%c0_1, %c0_2] : memref<128x768xf32, #tpu.memory_space<vmem>>, vector<8x768xf32>
    tpu.vector_store %arg6[%c0_1, %c0_2], %0 {strides = array<i32>} : memref<128x768xf32, #tpu.memory_space<vmem>>, vector<8x768xf32>,
    %c0_3 = arith.constant 0 : index
    %c1 = arith.constant 1 : index
    %2 = vector.load %arg0[%c0_3, %c1] : memref<8x896xf32, #tpu.memory_space<vmem>>, vector<8x768xf32>
    %c8 = arith.constant 8 : index
    %c0_4 = arith.constant 0 : index
    %3 = vector.load %arg6[%c8, %c0_4] : memref<128x768xf32, #tpu.memory_space<vmem>>, vector<8x768xf32>
    tpu.vector_store %arg6[%c8, %c0_4], %2 {strides = array<i32>} : memref<128x768xf32, #tpu.memory_space<vmem>>, vector<8x768xf32>,
    %c0_5 = arith.constant 0 : index
    %c2 = arith.constant 2 : index
    %4 = vector.load %arg0[%c0_5, %c2] : memref<8x896xf32, #tpu.memory_space<vmem>>, vector<8x768xf32>
    %c16 = arith.constant 16 : index
    %c0_6 = arith.constant 0 : index
    %5 = vector.load %arg6[%c16, %c0_6] : memref<128x768xf32, #tpu.memory_space<vmem>>, vector<8x768xf32>
    tpu.vector_store %arg6[%c16, %c0_6], %4 {strides = array<i32>} : memref<128x768xf32, #tpu.memory_space<vmem>>, vector<8x768xf32>,
    %c0_7 = arith.constant 0 : index
    %c3 = arith.constant 3 : index
    %6 = vector.load %arg0[%c0_7, %c3] : memref<8x896xf32, #tpu.memory_space<vmem>>, vector<8x768xf32>
    %c24 = arith.constant 24 : index
    %c0_8 = arith.constant 0 : index
    %7 = vector.load %arg6[%c24, %c0_8] : memref<128x768xf32, #tpu.memory_space<vmem>>, vector<8x768xf32>
    tpu.vector_store %arg6[%c24, %c0_8], %6 {strides = array<i32>} : memref<128x768xf32, #tpu.memory_space<vmem>>, vector<8x768xf32>,
    %c0_9 = arith.constant 0 : index
    %c18 = arith.constant 18 : index
    %8 = vector.load %arg0[%c0_9, %c18] : memref<8x896xf32, #tpu.memory_space<vmem>>, vector<8x768xf32>
    %c32 = arith.constant 32 : index
    %c0_10 = arith.constant 0 : index
    %9 = vector.load %arg6[%c32, %c0_10] : memref<128x768xf32, #tpu.memory_space<vmem>>, vector<8x768xf32>
    tpu.vector_store %arg6[%c32, %c0_10], %8 {strides = array<i32>} : memref<128x768xf32, #tpu.memory_space<vmem>>, vector<8x768xf32>,
    %c0_11 = arith.constant 0 : index
    %c19 = arith.constant 19 : index
    %10 = vector.load %arg0[%c0_11, %c19] : memref<8x896xf32, #tpu.memory_space<vmem>>, vector<8x768xf32>
    %c40 = arith.constant 40 : index
    %c0_12 = arith.constant 0 : index
    %11 = vector.load %arg6[%c40, %c0_12] : memref<128x768xf32, #tpu.memory_space<vmem>>, vector<8x768xf32>
    tpu.vector_store %arg6[%c40, %c0_12], %10 {strides = array<i32>} : memref<128x768xf32, #tpu.memory_space<vmem>>, vector<8x768xf32>,
    %c0_13 = arith.constant 0 : index
    %c20 = arith.constant 20 : index
    %12 = vector.load %arg0[%c0_13, %c20] : memref<8x896xf32, #tpu.memory_space<vmem>>, vector<8x768xf32>
    %c48 = arith.constant 48 : index
    %c0_14 = arith.constant 0 : index
    %13 = vector.load %arg6[%c48, %c0_14] : memref<128x768xf32, #tpu.memory_space<vmem>>, vector<8x768xf32>
    tpu.vector_store %arg6[%c48, %c0_14], %12 {strides = array<i32>} : memref<128x768xf32, #tpu.memory_space<vmem>>, vector<8x768xf32>,
    %c0_15 = arith.constant 0 : index
    %c21 = arith.constant 21 : index
    %14 = vector.load %arg0[%c0_15, %c21] : memref<8x896xf32, #tpu.memory_space<vmem>>, vector<8x768xf32>
    %c56 = arith.constant 56 : index
    %c0_16 = arith.constant 0 : index
    %15 = vector.load %arg6[%c56, %c0_16] : memref<128x768xf32, #tpu.memory_space<vmem>>, vector<8x768xf32>
    tpu.vector_store %arg6[%c56, %c0_16], %14 {strides = array<i32>} : memref<128x768xf32, #tpu.memory_space<vmem>>, vector<8x768xf32>,
    %c0_17 = arith.constant 0 : index
    %c36 = arith.constant 36 : index
    %16 = vector.load %arg0[%c0_17, %c36] : memref<8x896xf32, #tpu.memory_space<vmem>>, vector<8x768xf32>
    %c64 = arith.constant 64 : index
    %c0_18 = arith.constant 0 : index
    %17 = vector.load %arg6[%c64, %c0_18] : memref<128x768xf32, #tpu.memory_space<vmem>>, vector<8x768xf32>
    tpu.vector_store %arg6[%c64, %c0_18], %16 {strides = array<i32>} : memref<128x768xf32, #tpu.memory_space<vmem>>, vector<8x768xf32>,
    %c0_19 = arith.constant 0 : index
    %c37 = arith.constant 37 : index
    %18 = vector.load %arg0[%c0_19, %c37] : memref<8x896xf32, #tpu.memory_space<vmem>>, vector<8x768xf32>
    %c72 = arith.constant 72 : index
    %c0_20 = arith.constant 0 : index
    %19 = vector.load %arg6[%c72, %c0_20] : memref<128x768xf32, #tpu.memory_space<vmem>>, vector<8x768xf32>
    tpu.vector_store %arg6[%c72, %c0_20], %18 {strides = array<i32>} : memref<128x768xf32, #tpu.memory_space<vmem>>, vector<8x768xf32>,
    %c0_21 = arith.constant 0 : index
    %c38 = arith.constant 38 : index
    %20 = vector.load %arg0[%c0_21, %c38] : memref<8x896xf32, #tpu.memory_space<vmem>>, vector<8x768xf32>
    %c80 = arith.constant 80 : index
    %c0_22 = arith.constant 0 : index
    %21 = vector.load %arg6[%c80, %c0_22] : memref<128x768xf32, #tpu.memory_space<vmem>>, vector<8x768xf32>
    tpu.vector_store %arg6[%c80, %c0_22], %20 {strides = array<i32>} : memref<128x768xf32, #tpu.memory_space<vmem>>, vector<8x768xf32>,
    %c0_23 = arith.constant 0 : index
    %c39 = arith.constant 39 : index
    %22 = vector.load %arg0[%c0_23, %c39] : memref<8x896xf32, #tpu.memory_space<vmem>>, vector<8x768xf32>
    %c88 = arith.constant 88 : index
    %c0_24 = arith.constant 0 : index
    %23 = vector.load %arg6[%c88, %c0_24] : memref<128x768xf32, #tpu.memory_space<vmem>>, vector<8x768xf32>
    tpu.vector_store %arg6[%c88, %c0_24], %22 {strides = array<i32>} : memref<128x768xf32, #tpu.memory_space<vmem>>, vector<8x768xf32>,
    %c0_25 = arith.constant 0 : index
    %c54 = arith.constant 54 : index
    %24 = vector.load %arg0[%c0_25, %c54] : memref<8x896xf32, #tpu.memory_space<vmem>>, vector<8x768xf32>
    %c96 = arith.constant 96 : index
    %c0_26 = arith.constant 0 : index
    %25 = vector.load %arg6[%c96, %c0_26] : memref<128x768xf32, #tpu.memory_space<vmem>>, vector<8x768xf32>
    tpu.vector_store %arg6[%c96, %c0_26], %24 {strides = array<i32>} : memref<128x768xf32, #tpu.memory_space<vmem>>, vector<8x768xf32>,
    %c0_27 = arith.constant 0 : index
    %c55 = arith.constant 55 : index
    %26 = vector.load %arg0[%c0_27, %c55] : memref<8x896xf32, #tpu.memory_space<vmem>>, vector<8x768xf32>
    %c104 = arith.constant 104 : index
    %c0_28 = arith.constant 0 : index
    %27 = vector.load %arg6[%c104, %c0_28] : memref<128x768xf32, #tpu.memory_space<vmem>>, vector<8x768xf32>
    tpu.vector_store %arg6[%c104, %c0_28], %26 {strides = array<i32>} : memref<128x768xf32, #tpu.memory_space<vmem>>, vector<8x768xf32>,
    %c0_29 = arith.constant 0 : index
    %c56_30 = arith.constant 56 : index
    %28 = vector.load %arg0[%c0_29, %c56_30] : memref<8x896xf32, #tpu.memory_space<vmem>>, vector<8x768xf32>
    %c112 = arith.constant 112 : index
    %c0_31 = arith.constant 0 : index
    %29 = vector.load %arg6[%c112, %c0_31] : memref<128x768xf32, #tpu.memory_space<vmem>>, vector<8x768xf32>
    tpu.vector_store %arg6[%c112, %c0_31], %28 {strides = array<i32>} : memref<128x768xf32, #tpu.memory_space<vmem>>, vector<8x768xf32>,
    %c0_32 = arith.constant 0 : index
    %c57 = arith.constant 57 : index
    %30 = vector.load %arg0[%c0_32, %c57] : memref<8x896xf32, #tpu.memory_space<vmem>>, vector<8x768xf32>
    %c120 = arith.constant 120 : index
    %c0_33 = arith.constant 0 : index
    %31 = vector.load %arg6[%c120, %c0_33] : memref<128x768xf32, #tpu.memory_space<vmem>>, vector<8x768xf32>
    tpu.vector_store %arg6[%c120, %c0_33], %30 {strides = array<i32>} : memref<128x768xf32, #tpu.memory_space<vmem>>, vector<8x768xf32>,
    %c0_34 = arith.constant 0 : index
    %c0_35 = arith.constant 0 : index
    %32 = vector.load %arg1[%c0_34, %c0_35] : memref<16x128xf32, #tpu.memory_space<vmem>>, vector<16x128xf32>
    %c0_36 = arith.constant 0 : index
    %c0_37 = arith.constant 0 : index
    %33 = vector.load %arg6[%c0_36, %c0_37] : memref<128x768xf32, #tpu.memory_space<vmem>>, vector<128x768xf32>
    %cst = arith.constant dense<0.000000e+00> : vector<16x768xf32>
    %34 = tpu.matmul %32, %33, %cst {dimension_numbers = #tpu.dot_dimension_numbers<[1], [0], [0], [1], [0, 0, 1, 1], [], []>} : vector<16x128xf32>, vector<128x768xf32>, vector<16x768xf32> -> vector<16x768xf32>
    %cst_38 = arith.constant 0.000000e+00 : f32
    %35 = vector.broadcast %cst_38 : f32 to vector<16x768xf32>
    %36 = arith.maximumf %34, %35 : vector<16x768xf32>
    %c0_39 = arith.constant 0 : index
    %c0_40 = arith.constant 0 : index
    %37 = vector.load %arg4[%c0_39, %c0_40] : memref<1x768xf32, #tpu.memory_space<vmem>>, vector<1x768xf32>
    %38 = vector.broadcast %37 : vector<1x768xf32> to vector<16x768xf32>
    %39 = arith.mulf %36, %38 : vector<16x768xf32>
    %cst_41 = arith.constant 0.000000e+00 : f32
    %40 = vector.broadcast %cst_41 : f32 to vector<16x128xf32>
    %c0_42 = arith.constant 0 : index
    %c768 = arith.constant 768 : index
    %41 = vector.load %arg7[%c0_42, %c768] : memref<16x896xf32, #tpu.memory_space<vmem>>, vector<16x128xf32>
    tpu.vector_store %arg7[%c0_42, %c768], %40 {strides = array<i32>} : memref<16x896xf32, #tpu.memory_space<vmem>>, vector<16x128xf32>,
    %c0_43 = arith.constant 0 : index
    %c0_44 = arith.constant 0 : index
    %42 = vector.load %arg7[%c0_43, %c0_44] : memref<16x896xf32, #tpu.memory_space<vmem>>, vector<16x768xf32>
    tpu.vector_store %arg7[%c0_43, %c0_44], %39 {strides = array<i32>} : memref<16x896xf32, #tpu.memory_space<vmem>>, vector<16x768xf32>,
    %c0_45 = arith.constant 0 : index
    %c0_46 = arith.constant 0 : index
    %43 = vector.load %arg7[%c0_45, %c0_46] : memref<16x896xf32, #tpu.memory_space<vmem>>, vector<16x768xf32>
    %c0_47 = arith.constant 0 : index
    %c0_48 = arith.constant 0 : index
    %44 = vector.load %arg8[%c0_47, %c0_48] : memref<400x768xf32, #tpu.memory_space<vmem>>, vector<16x768xf32>
    tpu.vector_store %arg8[%c0_47, %c0_48], %43 {strides = array<i32>} : memref<400x768xf32, #tpu.memory_space<vmem>>, vector<16x768xf32>,
    %c0_49 = arith.constant 0 : index
    %c1_50 = arith.constant 1 : index
    %45 = vector.load %arg7[%c0_49, %c1_50] : memref<16x896xf32, #tpu.memory_space<vmem>>, vector<16x768xf32>
    %c16_51 = arith.constant 16 : index
    %c0_52 = arith.constant 0 : index
    %46 = vector.load %arg8[%c16_51, %c0_52] : memref<400x768xf32, #tpu.memory_space<vmem>>, vector<16x768xf32>
    tpu.vector_store %arg8[%c16_51, %c0_52], %45 {strides = array<i32>} : memref<400x768xf32, #tpu.memory_space<vmem>>, vector<16x768xf32>,
    %c0_53 = arith.constant 0 : index
    %c2_54 = arith.constant 2 : index
    %47 = vector.load %arg7[%c0_53, %c2_54] : memref<16x896xf32, #tpu.memory_space<vmem>>, vector<16x768xf32>
    %c32_55 = arith.constant 32 : index
    %c0_56 = arith.constant 0 : index
    %48 = vector.load %arg8[%c32_55, %c0_56] : memref<400x768xf32, #tpu.memory_space<vmem>>, vector<16x768xf32>
    tpu.vector_store %arg8[%c32_55, %c0_56], %47 {strides = array<i32>} : memref<400x768xf32, #tpu.memory_space<vmem>>, vector<16x768xf32>,
    %c0_57 = arith.constant 0 : index
    %c3_58 = arith.constant 3 : index
    %49 = vector.load %arg7[%c0_57, %c3_58] : memref<16x896xf32, #tpu.memory_space<vmem>>, vector<16x768xf32>
    %c48_59 = arith.constant 48 : index
    %c0_60 = arith.constant 0 : index
    %50 = vector.load %arg8[%c48_59, %c0_60] : memref<400x768xf32, #tpu.memory_space<vmem>>, vector<16x768xf32>
    tpu.vector_store %arg8[%c48_59, %c0_60], %49 {strides = array<i32>} : memref<400x768xf32, #tpu.memory_space<vmem>>, vector<16x768xf32>,
    %c0_61 = arith.constant 0 : index
    %c4 = arith.constant 4 : index
    %51 = vector.load %arg7[%c0_61, %c4] : memref<16x896xf32, #tpu.memory_space<vmem>>, vector<16x768xf32>
    %c64_62 = arith.constant 64 : index
    %c0_63 = arith.constant 0 : index
    %52 = vector.load %arg8[%c64_62, %c0_63] : memref<400x768xf32, #tpu.memory_space<vmem>>, vector<16x768xf32>
    tpu.vector_store %arg8[%c64_62, %c0_63], %51 {strides = array<i32>} : memref<400x768xf32, #tpu.memory_space<vmem>>, vector<16x768xf32>,
    %c0_64 = arith.constant 0 : index
    %c18_65 = arith.constant 18 : index
    %53 = vector.load %arg7[%c0_64, %c18_65] : memref<16x896xf32, #tpu.memory_space<vmem>>, vector<16x768xf32>
    %c80_66 = arith.constant 80 : index
    %c0_67 = arith.constant 0 : index
    %54 = vector.load %arg8[%c80_66, %c0_67] : memref<400x768xf32, #tpu.memory_space<vmem>>, vector<16x768xf32>
    tpu.vector_store %arg8[%c80_66, %c0_67], %53 {strides = array<i32>} : memref<400x768xf32, #tpu.memory_space<vmem>>, vector<16x768xf32>,
    %c0_68 = arith.constant 0 : index
    %c19_69 = arith.constant 19 : index
    %55 = vector.load %arg7[%c0_68, %c19_69] : memref<16x896xf32, #tpu.memory_space<vmem>>, vector<16x768xf32>
    %c96_70 = arith.constant 96 : index
    %c0_71 = arith.constant 0 : index
    %56 = vector.load %arg8[%c96_70, %c0_71] : memref<400x768xf32, #tpu.memory_space<vmem>>, vector<16x768xf32>
    tpu.vector_store %arg8[%c96_70, %c0_71], %55 {strides = array<i32>} : memref<400x768xf32, #tpu.memory_space<vmem>>, vector<16x768xf32>,
    %c0_72 = arith.constant 0 : index
    %c20_73 = arith.constant 20 : index
    %57 = vector.load %arg7[%c0_72, %c20_73] : memref<16x896xf32, #tpu.memory_space<vmem>>, vector<16x768xf32>
    %c112_74 = arith.constant 112 : index
    %c0_75 = arith.constant 0 : index
    %58 = vector.load %arg8[%c112_74, %c0_75] : memref<400x768xf32, #tpu.memory_space<vmem>>, vector<16x768xf32>
    tpu.vector_store %arg8[%c112_74, %c0_75], %57 {strides = array<i32>} : memref<400x768xf32, #tpu.memory_space<vmem>>, vector<16x768xf32>,
    %c0_76 = arith.constant 0 : index
    %c21_77 = arith.constant 21 : index
    %59 = vector.load %arg7[%c0_76, %c21_77] : memref<16x896xf32, #tpu.memory_space<vmem>>, vector<16x768xf32>
    %c128 = arith.constant 128 : index
    %c0_78 = arith.constant 0 : index
    %60 = vector.load %arg8[%c128, %c0_78] : memref<400x768xf32, #tpu.memory_space<vmem>>, vector<16x768xf32>
    tpu.vector_store %arg8[%c128, %c0_78], %59 {strides = array<i32>} : memref<400x768xf32, #tpu.memory_space<vmem>>, vector<16x768xf32>,
    %c0_79 = arith.constant 0 : index
    %c22 = arith.constant 22 : index
    %61 = vector.load %arg7[%c0_79, %c22] : memref<16x896xf32, #tpu.memory_space<vmem>>, vector<16x768xf32>
    %c144 = arith.constant 144 : index
    %c0_80 = arith.constant 0 : index
    %62 = vector.load %arg8[%c144, %c0_80] : memref<400x768xf32, #tpu.memory_space<vmem>>, vector<16x768xf32>
    tpu.vector_store %arg8[%c144, %c0_80], %61 {strides = array<i32>} : memref<400x768xf32, #tpu.memory_space<vmem>>, vector<16x768xf32>,
    %c0_81 = arith.constant 0 : index
    %c36_82 = arith.constant 36 : index
    %63 = vector.load %arg7[%c0_81, %c36_82] : memref<16x896xf32, #tpu.memory_space<vmem>>, vector<16x768xf32>
    %c160 = arith.constant 160 : index
    %c0_83 = arith.constant 0 : index
    %64 = vector.load %arg8[%c160, %c0_83] : memref<400x768xf32, #tpu.memory_space<vmem>>, vector<16x768xf32>
    tpu.vector_store %arg8[%c160, %c0_83], %63 {strides = array<i32>} : memref<400x768xf32, #tpu.memory_space<vmem>>, vector<16x768xf32>,
    %c0_84 = arith.constant 0 : index
    %c37_85 = arith.constant 37 : index
    %65 = vector.load %arg7[%c0_84, %c37_85] : memref<16x896xf32, #tpu.memory_space<vmem>>, vector<16x768xf32>
    %c176 = arith.constant 176 : index
    %c0_86 = arith.constant 0 : index
    %66 = vector.load %arg8[%c176, %c0_86] : memref<400x768xf32, #tpu.memory_space<vmem>>, vector<16x768xf32>
    tpu.vector_store %arg8[%c176, %c0_86], %65 {strides = array<i32>} : memref<400x768xf32, #tpu.memory_space<vmem>>, vector<16x768xf32>,
    %c0_87 = arith.constant 0 : index
    %c38_88 = arith.constant 38 : index
    %67 = vector.load %arg7[%c0_87, %c38_88] : memref<16x896xf32, #tpu.memory_space<vmem>>, vector<16x768xf32>
    %c192 = arith.constant 192 : index
    %c0_89 = arith.constant 0 : index
    %68 = vector.load %arg8[%c192, %c0_89] : memref<400x768xf32, #tpu.memory_space<vmem>>, vector<16x768xf32>
    tpu.vector_store %arg8[%c192, %c0_89], %67 {strides = array<i32>} : memref<400x768xf32, #tpu.memory_space<vmem>>, vector<16x768xf32>,
    %c0_90 = arith.constant 0 : index
    %c39_91 = arith.constant 39 : index
    %69 = vector.load %arg7[%c0_90, %c39_91] : memref<16x896xf32, #tpu.memory_space<vmem>>, vector<16x768xf32>
    %c208 = arith.constant 208 : index
    %c0_92 = arith.constant 0 : index
    %70 = vector.load %arg8[%c208, %c0_92] : memref<400x768xf32, #tpu.memory_space<vmem>>, vector<16x768xf32>
    tpu.vector_store %arg8[%c208, %c0_92], %69 {strides = array<i32>} : memref<400x768xf32, #tpu.memory_space<vmem>>, vector<16x768xf32>,
    %c0_93 = arith.constant 0 : index
    %c40_94 = arith.constant 40 : index
    %71 = vector.load %arg7[%c0_93, %c40_94] : memref<16x896xf32, #tpu.memory_space<vmem>>, vector<16x768xf32>
    %c224 = arith.constant 224 : index
    %c0_95 = arith.constant 0 : index
    %72 = vector.load %arg8[%c224, %c0_95] : memref<400x768xf32, #tpu.memory_space<vmem>>, vector<16x768xf32>
    tpu.vector_store %arg8[%c224, %c0_95], %71 {strides = array<i32>} : memref<400x768xf32, #tpu.memory_space<vmem>>, vector<16x768xf32>,
    %c0_96 = arith.constant 0 : index
    %c54_97 = arith.constant 54 : index
    %73 = vector.load %arg7[%c0_96, %c54_97] : memref<16x896xf32, #tpu.memory_space<vmem>>, vector<16x768xf32>
    %c240 = arith.constant 240 : index
    %c0_98 = arith.constant 0 : index
    %74 = vector.load %arg8[%c240, %c0_98] : memref<400x768xf32, #tpu.memory_space<vmem>>, vector<16x768xf32>
    tpu.vector_store %arg8[%c240, %c0_98], %73 {strides = array<i32>} : memref<400x768xf32, #tpu.memory_space<vmem>>, vector<16x768xf32>,
    %c0_99 = arith.constant 0 : index
    %c55_100 = arith.constant 55 : index
    %75 = vector.load %arg7[%c0_99, %c55_100] : memref<16x896xf32, #tpu.memory_space<vmem>>, vector<16x768xf32>
    %c256 = arith.constant 256 : index
    %c0_101 = arith.constant 0 : index
    %76 = vector.load %arg8[%c256, %c0_101] : memref<400x768xf32, #tpu.memory_space<vmem>>, vector<16x768xf32>
    tpu.vector_store %arg8[%c256, %c0_101], %75 {strides = array<i32>} : memref<400x768xf32, #tpu.memory_space<vmem>>, vector<16x768xf32>,
    %c0_102 = arith.constant 0 : index
    %c56_103 = arith.constant 56 : index
    %77 = vector.load %arg7[%c0_102, %c56_103] : memref<16x896xf32, #tpu.memory_space<vmem>>, vector<16x768xf32>
    %c272 = arith.constant 272 : index
    %c0_104 = arith.constant 0 : index
    %78 = vector.load %arg8[%c272, %c0_104] : memref<400x768xf32, #tpu.memory_space<vmem>>, vector<16x768xf32>
    tpu.vector_store %arg8[%c272, %c0_104], %77 {strides = array<i32>} : memref<400x768xf32, #tpu.memory_space<vmem>>, vector<16x768xf32>,
    %c0_105 = arith.constant 0 : index
    %c57_106 = arith.constant 57 : index
    %79 = vector.load %arg7[%c0_105, %c57_106] : memref<16x896xf32, #tpu.memory_space<vmem>>, vector<16x768xf32>
    %c288 = arith.constant 288 : index
    %c0_107 = arith.constant 0 : index
    %80 = vector.load %arg8[%c288, %c0_107] : memref<400x768xf32, #tpu.memory_space<vmem>>, vector<16x768xf32>
    tpu.vector_store %arg8[%c288, %c0_107], %79 {strides = array<i32>} : memref<400x768xf32, #tpu.memory_space<vmem>>, vector<16x768xf32>,
    %c0_108 = arith.constant 0 : index
    %c58 = arith.constant 58 : index
    %81 = vector.load %arg7[%c0_108, %c58] : memref<16x896xf32, #tpu.memory_space<vmem>>, vector<16x768xf32>
    %c304 = arith.constant 304 : index
    %c0_109 = arith.constant 0 : index
    %82 = vector.load %arg8[%c304, %c0_109] : memref<400x768xf32, #tpu.memory_space<vmem>>, vector<16x768xf32>
    tpu.vector_store %arg8[%c304, %c0_109], %81 {strides = array<i32>} : memref<400x768xf32, #tpu.memory_space<vmem>>, vector<16x768xf32>,
    %c0_110 = arith.constant 0 : index
    %c72_111 = arith.constant 72 : index
    %83 = vector.load %arg7[%c0_110, %c72_111] : memref<16x896xf32, #tpu.memory_space<vmem>>, vector<16x768xf32>
    %c320 = arith.constant 320 : index
    %c0_112 = arith.constant 0 : index
    %84 = vector.load %arg8[%c320, %c0_112] : memref<400x768xf32, #tpu.memory_space<vmem>>, vector<16x768xf32>
    tpu.vector_store %arg8[%c320, %c0_112], %83 {strides = array<i32>} : memref<400x768xf32, #tpu.memory_space<vmem>>, vector<16x768xf32>,
    %c0_113 = arith.constant 0 : index
    %c73 = arith.constant 73 : index
    %85 = vector.load %arg7[%c0_113, %c73] : memref<16x896xf32, #tpu.memory_space<vmem>>, vector<16x768xf32>
    %c336 = arith.constant 336 : index
    %c0_114 = arith.constant 0 : index
    %86 = vector.load %arg8[%c336, %c0_114] : memref<400x768xf32, #tpu.memory_space<vmem>>, vector<16x768xf32>
    tpu.vector_store %arg8[%c336, %c0_114], %85 {strides = array<i32>} : memref<400x768xf32, #tpu.memory_space<vmem>>, vector<16x768xf32>,
    %c0_115 = arith.constant 0 : index
    %c74 = arith.constant 74 : index
    %87 = vector.load %arg7[%c0_115, %c74] : memref<16x896xf32, #tpu.memory_space<vmem>>, vector<16x768xf32>
    %c352 = arith.constant 352 : index
    %c0_116 = arith.constant 0 : index
    %88 = vector.load %arg8[%c352, %c0_116] : memref<400x768xf32, #tpu.memory_space<vmem>>, vector<16x768xf32>
    tpu.vector_store %arg8[%c352, %c0_116], %87 {strides = array<i32>} : memref<400x768xf32, #tpu.memory_space<vmem>>, vector<16x768xf32>,
    %c0_117 = arith.constant 0 : index
    %c75 = arith.constant 75 : index
    %89 = vector.load %arg7[%c0_117, %c75] : memref<16x896xf32, #tpu.memory_space<vmem>>, vector<16x768xf32>
    %c368 = arith.constant 368 : index
    %c0_118 = arith.constant 0 : index
    %90 = vector.load %arg8[%c368, %c0_118] : memref<400x768xf32, #tpu.memory_space<vmem>>, vector<16x768xf32>
    tpu.vector_store %arg8[%c368, %c0_118], %89 {strides = array<i32>} : memref<400x768xf32, #tpu.memory_space<vmem>>, vector<16x768xf32>,
    %c0_119 = arith.constant 0 : index
    %c76 = arith.constant 76 : index
    %91 = vector.load %arg7[%c0_119, %c76] : memref<16x896xf32, #tpu.memory_space<vmem>>, vector<16x768xf32>
    %c384 = arith.constant 384 : index
    %c0_120 = arith.constant 0 : index
    %92 = vector.load %arg8[%c384, %c0_120] : memref<400x768xf32, #tpu.memory_space<vmem>>, vector<16x768xf32>
    tpu.vector_store %arg8[%c384, %c0_120], %91 {strides = array<i32>} : memref<400x768xf32, #tpu.memory_space<vmem>>, vector<16x768xf32>,
    %c0_121 = arith.constant 0 : index
    %c0_122 = arith.constant 0 : index
    %93 = vector.load %arg2[%c0_121, %c0_122] : memref<32x400xf32, #tpu.memory_space<vmem>>, vector<32x400xf32>
    %c0_123 = arith.constant 0 : index
    %c0_124 = arith.constant 0 : index
    %94 = vector.load %arg8[%c0_123, %c0_124] : memref<400x768xf32, #tpu.memory_space<vmem>>, vector<400x768xf32>
    %cst_125 = arith.constant dense<0.000000e+00> : vector<32x768xf32>
    %95 = tpu.matmul %93, %94, %cst_125 {dimension_numbers = #tpu.dot_dimension_numbers<[1], [0], [0], [1], [0, 0, 1, 1], [], []>} : vector<32x400xf32>, vector<400x768xf32>, vector<32x768xf32> -> vector<32x768xf32>
    %c0_126 = arith.constant 0 : index
    %c0_127 = arith.constant 0 : index
    %96 = vector.load %arg3[%c0_126, %c0_127] : memref<32x1xf32, #tpu.memory_space<vmem>>, vector<32x1xf32>
    %97 = vector.broadcast %96 : vector<32x1xf32> to vector<32x768xf32>
    %98 = arith.addf %95, %97 : vector<32x768xf32>
    %cst_128 = arith.constant 0.000000e+00 : f32
    %99 = vector.broadcast %cst_128 : f32 to vector<32x768xf32>
    %100 = arith.maximumf %98, %99 : vector<32x768xf32>
    %c767_i32 = arith.constant 767 : i32
    %101 = tpu.dynamic_rotate %100 by %c767_i32 dim 1 : vector<32x768xf32>, i32 -> vector<32x768xf32>
    %c750_i32 = arith.constant 750 : i32
    %102 = tpu.dynamic_rotate %100 by %c750_i32 dim 1 : vector<32x768xf32>, i32 -> vector<32x768xf32>
    %c749_i32 = arith.constant 749 : i32
    %103 = tpu.dynamic_rotate %100 by %c749_i32 dim 1 : vector<32x768xf32>, i32 -> vector<32x768xf32>
    %104 = arith.maximumf %100, %101 : vector<32x768xf32>
    %105 = arith.maximumf %102, %103 : vector<32x768xf32>
    %106 = arith.maximumf %104, %105 : vector<32x768xf32>
    %c0_129 = arith.constant 0 : index
    %c0_130 = arith.constant 0 : index
    %107 = vector.load %arg5[%c0_129, %c0_130] : memref<32x768xf32, #tpu.memory_space<vmem>>, vector<32x768xf32>
    tpu.vector_store %arg5[%c0_129, %c0_130], %106 {strides = array<i32>} : memref<32x768xf32, #tpu.memory_space<vmem>>, vector<32x768xf32>,
    return
  }
}

</mosaic_0001>

<bundles_post_ra>
// kernel: cnn1_forward.1
= control target key start
LH: loop header
LB: loop body
LE: loop exit
PB: predicated region body
PF: predicated region fallthrough
CT: control target
= control target key end

     0   :  { %s5787_s26 = smov 127   ;;  %s5788_s27 = smov 126   ;;  %vm718_vm0 = vcmask 580608   ;;  %vm671_vm1 = vcmask 588800   ;;  %vm10093_vm2 = vcmask 596992   ;;  %vm577_vm3 = vcmask 605184   ;;  %s9895_s0 = inlined_call_operand.vmem [shape: f32[8,896], index: 0, kind: input, shape index: {}]   ;;  %s9896_s1 = inlined_call_operand.vmem [shape: f32[16,128], index: 1, kind: input, shape index: {}]   ;;  %s9897_s4 = inlined_call_operand.vmem [shape: f32[1,768], index: 4, kind: input, shape index: {}]   ;;  %s9898_s2 = inlined_call_operand.vmem [shape: f32[32,400], index: 2, kind: input, shape index: {}]   ;;  %s9899_s3 = inlined_call_operand.vmem [shape: f32[32,1], index: 3, kind: input, shape index: {}]   ;;  %s9900_s5 = inlined_call_operand.vmem [shape: f32[32,768], index: 5, kind: output, shape index: {}]  }
   0x1   :  { %v36_v0 = vld [vmem:[%s9895_s0 + $0x20] sm:$0xff]  ;;  %v37_v1 = vld [vmem:[%s9895_s0 + $0x28] sm:$0xff]  ;;  %v34_v6 = vld [vmem:[%s9895_s0 + $0x10] sm:$0xff]  ;;  %s5789_s9 = smov 125   ;;  %s5790_s10 = smov 110   ;;  %vm530_vm4 = vcmask 728064  }
   0x2   :  { %v5852_v2 = vld [vmem:[%s9895_s0] sm:$0xff]  ;;  %v5854_v3 = vpack.i.bf16 %v37_v1, %v36_v0  ;;  %v33_v4 = vld [vmem:[%s9895_s0 + $0x8] sm:$0xff]  ;;  %v35_v7 = vld [vmem:[%s9895_s0 + $0x18] sm:$0xff]  ;;  %s5791_s11 = smov 109   ;;  %s5792_s12 = smov 108   ;;  %vm483_vm5 = vcmask 736256  }
   0x3   :  { %v5860_v5 = vpack.i.bf16 %v33_v4, %v5852_v2  ;;  %v5877_v8 = vld [vmem:[%s9895_s0 + $0x30] sm:$0xff]  ;;  %v5879_v9 = vpack.i.bf16 %v35_v7, %v34_v6  ;;  %s5793_s13 = smov 107   ;;  %s5794_s14 = smov 92   ;;  %vm436_vm6 = vcmask 744448   ;;  %vm389_vm7 = vcmask 752640  }
   0x4   :  { %4725 = vrot.lane.b32.xlu1 %v5854_v3, %s5787_s26  ;;  %s5795_s15 = smov 91   ;;  %s5796_s16 = smov 90   ;;  %vm154_vm8 = vcmask 1022976   ;;  %vm342_vm9 = vcmask 875520   ;;  %vm295_vm10 = vcmask 883712   ;;  %vm248_vm11 = vcmask 891904  }
   0x5   :  { %4715 = vrot.lane.b32.xlu0 %v5860_v5, %s5787_s26  ;;  %4730 = vrot.lane.b32.xlu2 %v5860_v5, %s5788_s27  ;;  %s5797_s17 = smov 89   ;;  %s5798_s18 = smov 74   ;;  %vm107_vm12 = vcmask 1031168   ;;  %vm201_vm13 = vcmask 900096   ;;  %vm60_vm14 = vcmask 1039360   ;;  %vm1381_vm15 = vcmask 1014784  }
   0x6   :  { %s5799_s19 = smov 73   ;;  %s5800_s20 = smov 72  }
   0x7   :  { %s5801_s21 = smov 71   ;;  %s5805_s30 = smov 88  }
   0x8   :  { %s5811_s7 = smov 54  }
   0xc   :  { %58 = vrot.lane.b32.xlu1 %v5877_v8, %s5787_s26 }
   0xd   :  { %4720 = vrot.lane.b32.xlu0 %v5879_v9, %s5787_s26  ;;  %4735 = vrot.lane.b32.xlu2 %v5879_v9, %s5788_s27 }
  0x14   :  { %105 = vrot.lane.b32.xlu1 %v5877_v8, %s5788_s27 }
  0x15   :  { %4740 = vrot.lane.b32.xlu0 %v5854_v3, %s5788_s27  ;;  %4745 = vrot.lane.b32.xlu2 %v5860_v5, %s5789_s9 }
  0x1c   :  { %4755 = vrot.lane.b32.xlu1 %v5854_v3, %s5789_s9 }
  0x1d   :  { %4750 = vrot.lane.b32.xlu0 %v5879_v9, %s5789_s9  ;;  %152 = vrot.lane.b32.xlu2 %v5877_v8, %s5789_s9 }
  0x24   :  { %4765 = vrot.lane.b32.xlu1 %v5879_v9, %s5790_s10 }
  0x25   :  { %4760 = vrot.lane.b32.xlu0 %v5860_v5, %s5790_s10  ;;  %4770 = vrot.lane.b32.xlu2 %v5854_v3, %s5790_s10 }
  0x2c   :  { %4775 = vrot.lane.b32.xlu1 %v5860_v5, %s5791_s11 }
  0x2d   :  { %199 = vrot.lane.b32.xlu0 %v5877_v8, %s5790_s10  ;;  %4780 = vrot.lane.b32.xlu2 %v5879_v9, %s5791_s11 }
  0x34   :  { %246 = vrot.lane.b32.xlu1 %v5877_v8, %s5791_s11 }
  0x35   :  { %4785 = vrot.lane.b32.xlu0 %v5854_v3, %s5791_s11  ;;  %4790 = vrot.lane.b32.xlu2 %v5860_v5, %s5792_s12 }
  0x3c   :  { %4800 = vrot.lane.b32.xlu1 %v5854_v3, %s5792_s12 }
  0x3d   :  { %4795 = vrot.lane.b32.xlu0 %v5879_v9, %s5792_s12  ;;  %293 = vrot.lane.b32.xlu2 %v5877_v8, %s5792_s12 }
  0x44   :  { %4810 = vrot.lane.b32.xlu1 %v5879_v9, %s5793_s13 }
  0x45   :  { %4805 = vrot.lane.b32.xlu0 %v5860_v5, %s5793_s13  ;;  %4815 = vrot.lane.b32.xlu2 %v5854_v3, %s5793_s13 }
  0x4c   :  { %4820 = vrot.lane.b32.xlu1 %v5860_v5, %s5794_s14 }
  0x4d   :  { %340 = vrot.lane.b32.xlu0 %v5877_v8, %s5793_s13  ;;  %4825 = vrot.lane.b32.xlu2 %v5879_v9, %s5794_s14 }
  0x54   :  { %387 = vrot.lane.b32.xlu1 %v5877_v8, %s5794_s14 }
  0x55   :  { %4830 = vrot.lane.b32.xlu0 %v5854_v3, %s5794_s14  ;;  %4835 = vrot.lane.b32.xlu2 %v5860_v5, %s5795_s15 }
  0x5c   :  { %4845 = vrot.lane.b32.xlu1 %v5854_v3, %s5795_s15 }
  0x5d   :  { %4840 = vrot.lane.b32.xlu0 %v5879_v9, %s5795_s15  ;;  %434 = vrot.lane.b32.xlu2 %v5877_v8, %s5795_s15 }
  0x5f   :  { %v5947_v10 = vpop.permute.xlu2 %4730 }
  0x64   :  { %4855 = vrot.lane.b32.xlu1 %v5879_v9, %s5796_s16 }
  0x65   :  { %4850 = vrot.lane.b32.xlu0 %v5860_v5, %s5796_s16  ;;  %4860 = vrot.lane.b32.xlu2 %v5854_v3, %s5796_s16 }
  0x67   :  { %v5955_v11 = vpop.permute.xlu2 %4735 }
  0x6c   :  { %4865 = vrot.lane.b32.xlu1 %v5860_v5, %s5797_s17 }
  0x6d   :  { %481 = vrot.lane.b32.xlu0 %v5877_v8, %s5796_s16  ;;  %4870 = vrot.lane.b32.xlu2 %v5879_v9, %s5797_s17 }
  0x6f   :  { %v5963_v12 = vpop.permute.xlu2 %4745 }
  0x74   :  { %528 = vrot.lane.b32.xlu1 %v5877_v8, %s5797_s17 }
  0x75   :  { %4875 = vrot.lane.b32.xlu0 %v5854_v3, %s5797_s17  ;;  %4880 = vrot.lane.b32.xlu2 %v5860_v5, %s5798_s18 }
  0x76   :  { %v5971_v13 = vpop.permute.xlu1 %4725 }
  0x77   :  { %v5973_v14 = vpop.permute.xlu0 %4715  ;;  %v5975_v15 = vpop.permute.xlu2 %152 }
  0x78   :  { %10147 = vst [vmem:[#allocation5_spill] sm:$0xff] %v5975_v15 }
  0x7c   :  { %4890 = vrot.lane.b32.xlu1 %v5854_v3, %s5798_s18 }
  0x7d   :  { %4885 = vrot.lane.b32.xlu0 %v5879_v9, %s5798_s18  ;;  %575 = vrot.lane.b32.xlu2 %v5877_v8, %s5798_s18 }
  0x7e   :  { %v5983_v16 = vpop.permute.xlu1 %58 }
  0x7f   :  { %10148 = vst [vmem:[#allocation6_spill] sm:$0xff] %v5983_v16  ;;  %v5985_v17 = vpop.permute.xlu0 %4720  ;;  %v5987_v18 = vpop.permute.xlu2 %4770 }
  0x84   :  { %4900 = vrot.lane.b32.xlu1 %v5879_v9, %s5799_s19 }
  0x85   :  { %4895 = vrot.lane.b32.xlu0 %v5860_v5, %s5799_s19  ;;  %4905 = vrot.lane.b32.xlu2 %v5854_v3, %s5799_s19 }
  0x86   :  { %v5995_v19 = vpop.permute.xlu1 %105 }
  0x87   :  { %10149 = vst [vmem:[#allocation7_spill] sm:$0xff] %v5995_v19  ;;  %v5997_v20 = vpop.permute.xlu0 %4740  ;;  %v5999_v21 = vpop.permute.xlu2 %4780 }
  0x8c   :  { %4910 = vrot.lane.b32.xlu1 %v5860_v5, %s5800_s20 }
  0x8d   :  { %622 = vrot.lane.b32.xlu0 %v5877_v8, %s5799_s19  ;;  %4915 = vrot.lane.b32.xlu2 %v5879_v9, %s5800_s20 }
  0x8e   :  { %v6007_v22 = vpop.permute.xlu1 %4755 }
  0x8f   :  { %v6009_v23 = vpop.permute.xlu0 %4750  ;;  %v6011_v24 = vpop.permute.xlu2 %4790 }
  0x94   :  { %669 = vrot.lane.b32.xlu1 %v5877_v8, %s5800_s20 }
  0x95   :  { %4920 = vrot.lane.b32.xlu0 %v5854_v3, %s5800_s20  ;;  %4925 = vrot.lane.b32.xlu2 %v5860_v5, %s5801_s21 }
  0x96   :  { %v6019_v25 = vpop.permute.xlu1 %4765 }
  0x97   :  { %v6021_v26 = vpop.permute.xlu0 %4760  ;;  %v6023_v27 = vpop.permute.xlu2 %293 }
  0x98   :  { %10150 = vst [vmem:[#allocation8_spill] sm:$0xff] %v6023_v27 }
  0x9c   :  { %4935 = vrot.lane.b32.xlu1 %v5854_v3, %s5801_s21 }
  0x9d   :  { %4930 = vrot.lane.b32.xlu0 %v5879_v9, %s5801_s21 }
  0x9e   :  { %v6029_v28 = vpop.permute.xlu1 %4775 }
  0x9f   :  { %v6031_v29 = vpop.permute.xlu0 %199  ;;  %v6033_v30 = vpop.permute.xlu2 %4815 }
  0xa0   :  { %10151 = vst [vmem:[#allocation9_spill] sm:$0xff] %v6031_v29 }
  0xa6   :  { %v6035_v31 = vpop.permute.xlu1 %246 }
  0xa7   :  { %10152 = vst [vmem:[#allocation10_spill] sm:$0xff] %v6035_v31  ;;  %v6037_v32 = vpop.permute.xlu0 %4785  ;;  %v6039_v33 = vpop.permute.xlu2 %4825 }
  0xae   :  { %v6041_v34 = vpop.permute.xlu1 %4800 }
  0xaf   :  { %v6043_v35 = vpop.permute.xlu0 %4795  ;;  %v6045_v36 = vpop.permute.xlu2 %4835 }
  0xb6   :  { %v6047_v37 = vpop.permute.xlu1 %4810 }
  0xb7   :  { %v6049_v38 = vpop.permute.xlu0 %4805  ;;  %v6051_v39 = vpop.permute.xlu2 %434 }
  0xb8   :  { %10153 = vst [vmem:[#allocation11_spill] sm:$0xff] %v6051_v39  ;;  %v4807_v27 = vunpack.i.l.bf16 %v6049_v38  ;;  %v4718_v39 = vunpack.i.h.bf16 %v5973_v14 }
  0xbe   :  { %v6053_v40 = vpop.permute.xlu1 %4820 }
  0xbf   :  { %v6055_v41 = vpop.permute.xlu0 %340  ;;  %v6057_v42 = vpop.permute.xlu2 %4860 }
  0xc0   :  { %10154 = vst [vmem:[#allocation12_spill] sm:$0xff] %v6055_v41  ;;  %v4762_v41 = vunpack.i.l.bf16 %v6021_v26 }
  0xc6   :  { %v6059_v43 = vpop.permute.xlu1 %387 }
  0xc7   :  { %10155 = vst [vmem:[#allocation13_spill] sm:$0xff] %v6059_v43  ;;  %v6061_v44 = vpop.permute.xlu0 %4830  ;;  %v6063_v45 = vpop.permute.xlu2 %4870 }
  0xce   :  { %v6065_v46 = vpop.permute.xlu1 %4845 }
  0xcf   :  { %v6067_v47 = vpop.permute.xlu0 %4840  ;;  %v6069_v48 = vpop.permute.xlu2 %4880 }
  0xd0   :  { %v9903_v9 = vunpack.i.h.bf16 %v6069_v48 }
  0xd6   :  { %v6071_v49 = vpop.permute.xlu1 %4855 }
  0xd7   :  { %v6073_v50 = vpop.permute.xlu0 %4850  ;;  %v6075_v51 = vpop.permute.xlu2 %575 }
  0xd8   :  { %10156 = vst [vmem:[#allocation14_spill] sm:$0xff] %v6075_v51  ;;  %v4852_v15 = vunpack.i.l.bf16 %v6073_v50 }
  0xde   :  { %v6077_v52 = vpop.permute.xlu1 %4865 }
  0xdf   :  { %v6079_v53 = vpop.permute.xlu0 %481  ;;  %v6081_v54 = vpop.permute.xlu2 %4905  ;;  %v9905_v16 = vunpack.i.h.bf16 %v6077_v52  ;;  %v4867_v19 = vunpack.i.l.bf16 %v6077_v52 }
  0xe0   :  { %10157 = vst [vmem:[#allocation15_spill] sm:$0xff] %v6079_v53  ;;  %v4717_v53 = vunpack.i.l.bf16 %v5973_v14 }
  0xe6   :  { %v6083_v55 = vpop.permute.xlu1 %528 }
  0xe7   :  { %10158 = vst [vmem:[#allocation16_spill] sm:$0xff] %v6083_v55  ;;  %v6085_v56 = vpop.permute.xlu0 %4875  ;;  %v6087_v57 = vpop.permute.xlu2 %4915 }
  0xee   :  { %v6089_v58 = vpop.permute.xlu1 %4890 }
  0xef   :  { %v6091_v59 = vpop.permute.xlu0 %4885  ;;  %v6093_v60 = vpop.permute.xlu2 %4925 }
  0xf0   :  { %v9901_v61 = vunpack.i.h.bf16 %v6093_v60  ;;  %v4927_v62 = vunpack.i.l.bf16 %v6093_v60 }
  0xf2   :  { %v719_v63 = vsel %vm718_vm0, %v4927_v62, %v9901_v61  ;;  %v4882_v62 = vunpack.i.l.bf16 %v6069_v48 }
  0xf3   :  { %835 = vmatpush.msra.mxu0 %v719_v63 }
  0xf4   :  { %v578_v29 = vsel %vm577_vm3, %v4882_v62, %v9903_v9  ;;  %v10161_v62 = vunpack.i.h.bf16 %v6011_v24 }
  0xf6   :  { %v6100_v0 = vpop.permute.xlu1 %4900 }
  0xf7   :  { %v6102_v1 = vpop.permute.xlu0 %4895  ;;  %v4902_v51 = vunpack.i.l.bf16 %v6100_v0 }
  0xf8   :  { %v4897_v3 = vunpack.i.l.bf16 %v6102_v1  ;;  %v9902_v5 = vunpack.i.h.bf16 %v6102_v1 }
  0xfa   :  { %v625_v61 = vsel %vm10093_vm2, %v4897_v3, %v9902_v5  ;;  %v4837_v3 = vunpack.i.l.bf16 %v6045_v36 }
  0xfe   :  { %v6105_v4 = vpop.permute.xlu1 %4910 }
  0xff   :  { %v9904_v6 = vunpack.i.h.bf16 %v6105_v4  ;;  %v4912_v7 = vunpack.i.l.bf16 %v6105_v4  ;;  %v6110_v8 = vpop.permute.xlu0 %622 }
 0x101   :  { %v672_v63 = vsel %vm671_vm1, %v4912_v7, %v9904_v6  ;;  %v10160_v7 = vunpack.i.h.bf16 %v6053_v40 }
 0x102   :  { %836 = vmatpush.msra.mxu0 %v672_v63  ;;  %v9906_v63 = vunpack.i.h.bf16 %v6073_v50 }
 0x104   :  { %837 = vmatpush.msra.mxu0 %v625_v61  ;;  %v531_v61 = vsel %vm530_vm4, %v4867_v19, %v9905_v16  ;;  %v484_v9 = vsel %vm483_vm5, %v4852_v15, %v9906_v63  ;;  %v10159_v19 = vunpack.i.h.bf16 %v6045_v36  ;;  %v9907_v63 = vunpack.i.h.bf16 %v6049_v38 }
 0x105   :  { %v4917_v15 = vunpack.i.l.bf16 %v6087_v57 }
 0x106   :  { %v6126_v31 = vpop.permute.xlu1 %669  ;;  %838 = vmatpush.msra.mxu0 %v578_v29  ;;  %v4822_v29 = vunpack.i.l.bf16 %v6053_v40 }
 0x107   :  { %v6131_v5 = vpop.permute.xlu0 %4920 }
 0x108   :  { %839 = vmatpush.msra.mxu0 %v531_v61  ;;  %v437_v61 = vsel %vm436_vm6, %v4837_v3, %v10159_v19  ;;  %v390_v6 = vsel %vm389_vm7, %v4822_v29, %v10160_v7  ;;  %v343_v7 = vsel %vm342_vm9, %v4807_v27, %v9907_v63  ;;  %v4918_v29 = vunpack.i.h.bf16 %v6087_v57 }
 0x109   :  { %v4903_v19 = vunpack.i.h.bf16 %v6100_v0  ;;  %v10162_v27 = vunpack.i.h.bf16 %v6093_v60  ;;  %v4887_v60 = vunpack.i.l.bf16 %v6091_v59 }
 0x10a   :  { %840 = vmatpush.msra.mxu0 %v484_v9  ;;  %v4792_v9 = vunpack.i.l.bf16 %v6011_v24 }
 0x10c   :  { %841 = vmatpush.msra.mxu0 %v437_v61  ;;  %v4777_v61 = vunpack.i.l.bf16 %v6029_v28  ;;  %v296_v55 = vsel %vm295_vm10, %v4792_v9, %v10161_v62  ;;  %v10164_v62 = vunpack.i.h.bf16 %v6029_v28  ;;  %v674_v9 = vsel %vm671_vm1, %v4917_v15, %v4918_v29 }
 0x10e   :  { %v6156_v3 = vpop.permute.xlu1 %4935  ;;  %842 = vmatpush.msra.mxu0 %v390_v6 }
 0x10f   :  { %v4931_v16 = vpop.permute.xlu0 %4930 }
 0x110   :  { %v4933_v6 = vunpack.i.h.bf16 %v4931_v16  ;;  %v4932_v43 = vunpack.i.l.bf16 %v4931_v16  ;;  %843 = vmatpush.msra.mxu0 %v343_v7  ;;  %v10163_v7 = vunpack.i.l.bf16 %v6156_v3 }
 0x112   :  { %844 = vmatpush.msra.mxu0 %v296_v55  ;;  %v720_v57 = vsel %vm718_vm0, %v10162_v27, %v4932_v43  ;;  %v721_v16 = vsel %vm718_vm0, %v4932_v43, %v4933_v6  ;;  %v722_v63 = vsel %vm718_vm0, %v4933_v6, %v10163_v7  ;;  %v249_v55 = vsel %vm248_vm11, %v4777_v61, %v10164_v62 }
 0x113   :  { %858 = vmatpush.msra.mxu1 %v720_v57  ;;  %881 = vmatpush.msra.mxu2 %v721_v16  ;;  %v10165_v43 = vunpack.i.h.bf16 %v6105_v4  ;;  %v10166_v6 = vunpack.i.h.bf16 %v6021_v26  ;;  %v4907_v57 = vunpack.i.l.bf16 %v6081_v54  ;;  %v4892_v16 = vunpack.i.l.bf16 %v6089_v58 }
 0x114   :  { %904 = vmatpush.msra.mxu3 %v722_v63  ;;  %845 = vmatpush.msra.mxu0 %v249_v55  ;;  %v4888_v61 = vunpack.i.h.bf16 %v6091_v59  ;;  %v10167_v63 = vunpack.i.l.bf16 %v6131_v5  ;;  %v4873_v7 = vunpack.i.h.bf16 %v6063_v45  ;;  %v627_v55 = vsel %vm10093_vm2, %v4902_v51, %v4903_v19 }
 0x115   :  { %v673_v0 = vsel %vm671_vm1, %v10165_v43, %v4917_v15  ;;  %v202_v27 = vsel %vm201_vm13, %v4762_v41, %v10166_v6  ;;  %882 = vmatpush.msra.mxu2 %v674_v9  ;;  %v4872_v15 = vunpack.i.l.bf16 %v6063_v45  ;;  %v10168_v41 = vunpack.i.h.bf16 %v6102_v1 }
 0x116   :  { %859 = vmatpush.msra.mxu1 %v673_v0  ;;  %v675_v4 = vsel %vm671_vm1, %v4918_v29, %v10167_v63  ;;  %846 = vmatpush.msra.mxu0 %v202_v27  ;;  %v4877_v59 = vunpack.i.l.bf16 %v6085_v56  ;;  %v628_v29 = vsel %vm10093_vm2, %v4903_v19, %v4907_v57  ;;  %v10169_v43 = vunpack.i.h.bf16 %v5963_v12 }
 0x117   :  { %905 = vmatpush.msra.mxu3 %v675_v4  ;;  %v626_v62 = vsel %vm10093_vm2, %v10168_v41, %v4902_v51  ;;  %883 = vmatpush.msra.mxu2 %v627_v55  ;;  %v10170_v45 = vunpack.i.l.bf16 %v5963_v12  ;;  %v4858_v1 = vunpack.i.h.bf16 %v6071_v49  ;;  %v4857_v9 = vunpack.i.l.bf16 %v6071_v49 }
 0x118   :  { %860 = vmatpush.msra.mxu1 %v626_v62  ;;  %v10171_v51 = vunpack.i.h.bf16 %v6069_v48  ;;  %v580_v27 = vsel %vm577_vm3, %v4887_v60, %v4888_v61  ;;  %v581_v19 = vsel %vm577_vm3, %v4888_v61, %v4892_v16  ;;  %v10172_v63 = vunpack.i.h.bf16 %v5947_v10 }
 0x119   :  { %v155_v0 = vsel %vm154_vm8, %v10170_v45, %v10169_v43  ;;  %906 = vmatpush.msra.mxu3 %v628_v29  ;;  %884 = vmatpush.msra.mxu2 %v580_v27  ;;  %v10173_v4 = vunpack.i.l.bf16 %v5947_v10  ;;  %v61_v48 = vsel %vm60_vm14, %v4717_v53, %v4718_v39  ;;  %v4842_v41 = vunpack.i.l.bf16 %v6067_v47 }
 0x11a   :  { %847 = vmatpush.msra.mxu0 %v155_v0  ;;  %v579_v6 = vsel %vm577_vm3, %v10171_v51, %v4887_v60  ;;  %v4938_v60 = vunpack.i.h.bf16 %v6156_v3  ;;  %v10174_v62 = vunpack.i.h.bf16 %v6077_v52  ;;  %v533_v55 = vsel %vm530_vm4, %v4872_v15, %v4873_v7 }
 0x11b   :  { %861 = vmatpush.msra.mxu1 %v579_v6  ;;  %v108_v49 = vsel %vm107_vm12, %v10173_v4, %v10172_v63  ;;  %907 = vmatpush.msra.mxu3 %v581_v19  ;;  %v4862_v29 = vunpack.i.l.bf16 %v6057_v42  ;;  %v4847_v43 = vunpack.i.l.bf16 %v6065_v46  ;;  %v4843_v45 = vunpack.i.h.bf16 %v6067_v47 }
 0x11c   :  { %848 = vmatpush.msra.mxu0 %v108_v49  ;;  %v532_v61 = vsel %vm530_vm4, %v10174_v62, %v4872_v15  ;;  %885 = vmatpush.msra.mxu2 %v533_v55  ;;  %v534_v53 = vsel %vm530_vm4, %v4873_v7, %v4877_v59  ;;  %v4923_v0 = vunpack.i.h.bf16 %v6131_v5  ;;  %v10175_v52 = vunpack.i.h.bf16 %v6073_v50  ;;  %v6257_v50 = vld [vmem:[%s9896_s1] sm:$0xff] }
 0x11d   :  { %862 = vmatpush.msra.mxu1 %v532_v61  ;;  %908 = vmatpush.msra.mxu3 %v534_v53  ;;  %v486_v51 = vsel %vm483_vm5, %v4857_v9, %v4858_v1  ;;  %v4828_v6 = vunpack.i.h.bf16 %v6039_v33  ;;  %v4827_v47 = vunpack.i.l.bf16 %v6039_v33  ;;  %v4832_v27 = vunpack.i.l.bf16 %v6061_v44 }
 0x11e   :  { %849 = vmatpush.msra.mxu0 %v61_v48  ;;  %v485_v15 = vsel %vm483_vm5, %v10175_v52, %v4857_v9  ;;  %886 = vmatpush.msra.mxu2 %v486_v51  ;;  %v487_v7 = vsel %vm483_vm5, %v4858_v1, %v4862_v29  ;;  %v4812_v19 = vunpack.i.l.bf16 %v6047_v37  ;;  %v10176_v33 = vunpack.i.h.bf16 %v6045_v36 }
 0x11f   :  { %863 = vmatpush.msra.mxu1 %v485_v15  ;;  %909 = vmatpush.msra.mxu3 %v487_v7  ;;  %v439_v63 = vsel %vm436_vm6, %v4842_v41, %v4843_v45  ;;  %v10177_v1 = vunpack.i.l.bf16 %v6156_v3  ;;  %v4817_v49 = vunpack.i.l.bf16 %v6033_v30  ;;  %v4813_v48 = vunpack.i.h.bf16 %v6047_v37 }
 0x120   :  { %850 = vmatpush.msra.mxu0 %v5852_v2  ;;  %v438_v9 = vsel %vm436_vm6, %v10176_v33, %v4842_v41  ;;  %887 = vmatpush.msra.mxu2 %v439_v63  ;;  %v440_v2 = vsel %vm436_vm6, %v4843_v45, %v4847_v43  ;;  %v4797_v36 = vunpack.i.l.bf16 %v6043_v35  ;;  %v4908_v41 = vunpack.i.h.bf16 %v6081_v54 }
 0x121   :  { %v723_v4 = vsel %vm718_vm0, %v10177_v1, %v4938_v60  ;;  %864 = vmatpush.msra.mxu1 %v438_v9  ;;  %910 = vmatpush.msra.mxu3 %v440_v2  ;;  %v10178_v62 = vunpack.i.h.bf16 %v6053_v40  ;;  %v10179_v37 = vunpack.i.l.bf16 %v6131_v5  ;;  %v4802_v53 = vunpack.i.l.bf16 %v6041_v34  ;;  %v10190_v5 = vld [vmem:[#allocation15_spill] sm:$0xff] }
 0x122   :  { %851 = vmatmul.f32.vlgmr.msra.gmra.mxu0 %v6257_v50  ;;  %v4798_v45 = vunpack.i.h.bf16 %v6043_v35  ;;  %v392_v52 = vsel %vm389_vm7, %v4827_v47, %v4828_v6  ;;  %v393_v40 = vsel %vm389_vm7, %v4828_v6, %v4832_v27  ;;  %v4783_v15 = vunpack.i.h.bf16 %v5999_v21 }
 0x123   :  { %v391_v61 = vsel %vm389_vm7, %v10178_v62, %v4827_v47  ;;  %v676_v55 = vsel %vm671_vm1, %v10179_v37, %v4923_v0  ;;  %927 = vmatpush.msrb.mxu0 %v723_v4  ;;  %v4893_v51 = vunpack.i.h.bf16 %v6089_v58  ;;  %888 = vmatpush.msra.mxu2 %v392_v52  ;;  %v10180_v7 = vunpack.i.h.bf16 %v6049_v38 }
 0x124   :  { %865 = vmatpush.msra.mxu1 %v391_v61  ;;  %911 = vmatpush.msra.mxu3 %v393_v40  ;;  %v4782_v35 = vunpack.i.l.bf16 %v5999_v21  ;;  %v4787_v9 = vunpack.i.l.bf16 %v6037_v32  ;;  %v345_v47 = vsel %vm342_vm9, %v4812_v19, %v4813_v48  ;;  %v346_v6 = vsel %vm342_vm9, %v4813_v48, %v4817_v49 }
 0x125   :  { %v344_v33 = vsel %vm342_vm9, %v10180_v7, %v4812_v19  ;;  %928 = vmatpush.msrb.mxu0 %v676_v55  ;;  %v4767_v63 = vunpack.i.l.bf16 %v6019_v25  ;;  %889 = vmatpush.msra.mxu2 %v345_v47  ;;  %v629_v21 = vsel %vm10093_vm2, %v4907_v57, %v4908_v41  ;;  %v10181_v38 = vunpack.i.h.bf16 %v6011_v24 }
 0x126   :  { %866 = vmatpush.msra.mxu1 %v344_v33  ;;  %912 = vmatpush.msra.mxu3 %v346_v6  ;;  %v4768_v19 = vunpack.i.h.bf16 %v6019_v25  ;;  %v298_v4 = vsel %vm295_vm10, %v4797_v36, %v4798_v45  ;;  %v299_v48 = vsel %vm295_vm10, %v4798_v45, %v4802_v53  ;;  %v4737_v2 = vunpack.i.l.bf16 %v5955_v11 }
 0x127   :  { %v297_v1 = vsel %vm295_vm10, %v10181_v38, %v4797_v36  ;;  %929 = vmatpush.msrb.mxu0 %v629_v21  ;;  %v4752_v62 = vunpack.i.l.bf16 %v6009_v23  ;;  %890 = vmatpush.msra.mxu2 %v298_v4  ;;  %v582_v24 = vsel %vm577_vm3, %v4892_v16, %v4893_v51  ;;  %v10182_v25 = vunpack.i.h.bf16 %v6029_v28  ;;  %v6330_v36 = vld [vmem:[%s9896_s1 + $0x8] sm:$0xff] }
 0x128   :  { %867 = vmatpush.msra.mxu1 %v297_v1  ;;  %913 = vmatpush.msra.mxu3 %v299_v48  ;;  %v4863_v61 = vunpack.i.h.bf16 %v6057_v42  ;;  %v4878_v37 = vunpack.i.h.bf16 %v6085_v56  ;;  %v251_v55 = vsel %vm248_vm11, %v4782_v35, %v4783_v15  ;;  %v252_v16 = vsel %vm248_vm11, %v4783_v15, %v4787_v9  ;;  %v10193_v42 = vld [vmem:[#allocation12_spill] sm:$0xff] }
 0x129   :  { %v250_v57 = vsel %vm248_vm11, %v10182_v25, %v4782_v35  ;;  %930 = vmatpush.msrb.mxu0 %v582_v24  ;;  %v4772_v28 = vunpack.i.l.bf16 %v5987_v18  ;;  %v4757_v45 = vunpack.i.l.bf16 %v6007_v22  ;;  %v4753_v52 = vunpack.i.h.bf16 %v6009_v23  ;;  %891 = vmatpush.msra.mxu2 %v251_v55  ;;  %v21_v25 = vld [vmem:[%s9895_s0 + $0x8] sm:$0xff]  ;;  %v23_v55 = vld [vmem:[%s9895_s0 + $0x18] sm:$0xff] }
 0x12a   :  { %868 = vmatpush.msra.mxu1 %v250_v57  ;;  %914 = vmatpush.msra.mxu3 %v252_v16  ;;  %v10183_v40 = vunpack.i.h.bf16 %v6021_v26  ;;  %v4738_v33 = vunpack.i.h.bf16 %v5955_v11  ;;  %v4848_v35 = vunpack.i.h.bf16 %v6065_v46  ;;  %v535_v15 = vsel %vm530_vm4, %v4877_v59, %v4878_v37 }
 0x12b   :  { %854 = vmatmul.f32.gmra.mxu0 %v6330_v36  ;;  %v204_v23 = vsel %vm201_vm13, %v4767_v63, %v4768_v19  ;;  %v4722_v47 = vunpack.i.l.bf16 %v5985_v17  ;;  %v4742_v26 = vunpack.i.l.bf16 %v5997_v20  ;;  %v205_v11 = vsel %vm201_vm13, %v4768_v19, %v4772_v28 }
 0x12c   :  { %v203_v7 = vsel %vm201_vm13, %v10183_v40, %v4767_v63  ;;  %931 = vmatpush.msrb.mxu0 %v535_v15  ;;  %892 = vmatpush.msra.mxu2 %v204_v23  ;;  %v10184_v6 = vunpack.i.h.bf16 %v5963_v12  ;;  %v488_v59 = vsel %vm483_vm5, %v4862_v29, %v4863_v61  ;;  %v157_v63 = vsel %vm154_vm8, %v4752_v62, %v4753_v52 }
 0x12d   :  { %869 = vmatpush.msra.mxu1 %v203_v7  ;;  %915 = vmatpush.msra.mxu3 %v205_v11  ;;  %v4723_v38 = vunpack.i.h.bf16 %v5985_v17  ;;  %v158_v12 = vsel %vm154_vm8, %v4753_v52, %v4757_v45  ;;  %v10185_v1 = vunpack.i.h.bf16 %v5947_v10  ;;  %v4818_v4 = vunpack.i.h.bf16 %v6033_v30 }
 0x12e   :  { %v156_v21 = vsel %vm154_vm8, %v10184_v6, %v4752_v62  ;;  %932 = vmatpush.msrb.mxu0 %v488_v59  ;;  %893 = vmatpush.msra.mxu2 %v157_v63  ;;  %v4833_v48 = vunpack.i.h.bf16 %v6061_v44  ;;  %v441_v17 = vsel %vm436_vm6, %v4847_v43, %v4848_v35  ;;  %v110_v29 = vsel %vm107_vm12, %v4737_v2, %v4738_v33 }
 0x12f   :  { %870 = vmatpush.msra.mxu1 %v156_v21  ;;  %v109_v19 = vsel %vm107_vm12, %v10185_v1, %v4737_v2  ;;  %916 = vmatpush.msra.mxu3 %v158_v12  ;;  %v4727_v62 = vunpack.i.l.bf16 %v5971_v13  ;;  %v111_v10 = vsel %vm107_vm12, %v4738_v33, %v4742_v26  ;;  %v62_v24 = vsel %vm60_vm14, %v4718_v39, %v4722_v47  ;;  %v22_v39 = vld [vmem:[%s9895_s0 + $0x10] sm:$0xff] }
 0x130   :  { %933 = vmatpush.msrb.mxu0 %v441_v17  ;;  %894 = vmatpush.msra.mxu2 %v110_v29  ;;  %v4803_v57 = vunpack.i.h.bf16 %v6041_v34  ;;  %v394_v43 = vsel %vm389_vm7, %v4832_v27, %v4833_v48  ;;  %v63_v2 = vsel %vm60_vm14, %v4722_v47, %v4723_v38  ;;  %v347_v27 = vsel %vm342_vm9, %v4817_v49, %v4818_v4 }
 0x131   :  { %871 = vmatpush.msra.mxu1 %v109_v19  ;;  %917 = vmatpush.msra.mxu3 %v111_v10  ;;  %v64_v14 = vsel %vm60_vm14, %v4723_v38, %v4727_v62  ;;  %v4773_v16 = vunpack.i.h.bf16 %v5987_v18  ;;  %v4788_v52 = vunpack.i.h.bf16 %v6037_v32  ;;  %v4758_v49 = vunpack.i.h.bf16 %v6007_v22 }
 0x132   :  { %934 = vmatpush.msrb.mxu0 %v394_v43  ;;  %895 = vmatpush.msra.mxu2 %v63_v2  ;;  %v300_v40 = vsel %vm295_vm10, %v4802_v53, %v4803_v57  ;;  %v4728_v33 = vunpack.i.h.bf16 %v5971_v13  ;;  %v4743_v15 = vunpack.i.h.bf16 %v5997_v20  ;;  %v24_v43 = vld [vmem:[%s9895_s0 + $0x20] sm:$0xff]  ;;  %v348_v46 = vsel %vm342_vm9, %v4818_v4, %v10193_v42  ;;  %v10198_v4 = vld [vmem:[#allocation7_spill] sm:$0xff] }
 0x133   :  { %872 = vmatpush.msra.mxu1 %v62_v24  ;;  %918 = vmatpush.msra.mxu3 %v64_v14  ;;  %v253_v7 = vsel %vm248_vm11, %v4787_v9, %v4788_v52  ;;  %v206_v53 = vsel %vm201_vm13, %v4772_v28, %v4773_v16  ;;  %v159_v9 = vsel %vm154_vm8, %v4757_v45, %v4758_v49  ;;  %v6449_v45 = vld [vmem:[%s9897_s4] sm:$0x3f]  ;;  %s5802_s4 = smov 124  }
 0x134   :  { %935 = vmatpush.msrb.mxu0 %v347_v27  ;;  %896 = vmatpush.msra.mxu2 %v22_v39  ;;  %v112_v23 = vsel %vm107_vm12, %v4742_v26, %v4743_v15  ;;  %v65_v28 = vsel %vm60_vm14, %v4727_v62, %v4728_v33  ;;  %v987_v47 = vperm.slane %v6449_v45, 0  ;;  %v696_v26 = vld [vmem:[%s9895_s0 + $0x30] sm:$0xff]  ;;  %v988_v63 = vperm.slane %v6449_v45, 1 }
 0x135   :  { %873 = vmatpush.msra.mxu1 %v21_v25  ;;  %919 = vmatpush.msra.mxu3 %v23_v55  ;;  %v989_v10 = vperm.slane %v6449_v45, 2  ;;  %v9910_v25 = vperm.slane %v6449_v45, 3  ;;  %v113_v32 = vsel %vm107_vm12, %v4743_v15, %v10198_v4 }
 0x136   :  { %874 = vmatmul.f32.vlgmr.msra.gmra.mxu1 %v6257_v50  ;;  %936 = vmatpush.msrb.mxu0 %v300_v40 }
 0x137   :  { %897 = vmatmul.f32.vlgmr.msra.gmra.mxu2 %v6257_v50  ;;  %920 = vmatmul.f32.vlgmr.msra.gmra.mxu3 %v6257_v50 }
 0x138   :  { %937 = vmatpush.msrb.mxu0 %v253_v7  ;;  %v9908_v7 = vmov 0.0  }
 0x13a   :  { %938 = vmatpush.msrb.mxu0 %v206_v53 }
 0x13c   :  { %939 = vmatpush.msrb.mxu0 %v159_v9 }
 0x13e   :  { %877 = vmatmul.f32.gmra.mxu1 %v6330_v36  ;;  %940 = vmatpush.msrb.mxu0 %v112_v23 }
 0x13f   :  { %900 = vmatmul.f32.gmra.mxu2 %v6330_v36  ;;  %923 = vmatmul.f32.gmra.mxu3 %v6330_v36 }
 0x140   :  { %941 = vmatpush.msrb.mxu0 %v65_v28 }
 0x142   :  { %942 = vmatpush.msrb.mxu0 %v24_v43 }
 0x143   :  { %943 = vmatmul.f32.vlgmr.msrb.gmra.mxu0 %v6257_v50 }
 0x14b   :  { %946 = vmatmul.f32.gmra.mxu0 %v6330_v36 }
 0x19f   :  { %v852_v11 = vpop.f32.mrf.mxu0 }
 0x1a0   :  { %v973_v6 = vmax.f32 %v852_v11, 0.0 }
 0x1a2   :  { %v6455_v21 = vmul.f32 %v987_v47, %v973_v6 }
 0x1a4   :  { %10186 = vst [vmem:[#allocation17_spill] sm:$0xff] %v6455_v21  ;;  %v4939_v59 = vpack.i.bf16 %v6455_v21, %v696_v26 }
 0x1a6   :  { %4940 = vrot.lane.b32.xlu2 %v4939_v59, %s5801_s21 }
 0x1a8   :  { %v855_v55 = vpop.f32.mrf.mxu0 }
 0x1a9   :  { %v979_v27 = vmax.f32 %v855_v55, 0.0 }
 0x1ab   :  { %v6513_v40 = vmul.f32 %v987_v47, %v979_v27 }
 0x1ad   :  { %v6517_v53 = vpack.i.bf16 %v6513_v40, %v9908_v7 }
 0x1b3   :  { %v875_v38 = vpop.f32.mrf.mxu1 }
 0x1b4   :  { %v974_v12 = vmax.f32 %v875_v38, 0.0 }
 0x1b6   :  { %v6460_v1 = vmul.f32 %v988_v63, %v974_v12  ;;  %v677_v12 = vsel %vm671_vm1, %v4923_v0, %v6126_v31  ;;  %v10189_v31 = vld [vmem:[#allocation16_spill] sm:$0xff]  ;;  %v10192_v0 = vld [vmem:[#allocation13_spill] sm:$0xff] }
 0x1b7   :  { %v536_v54 = vsel %vm530_vm4, %v4878_v37, %v10189_v31  ;;  %v395_v56 = vsel %vm389_vm7, %v4833_v48, %v10192_v0  ;;  %v10196_v37 = vld [vmem:[#allocation9_spill] sm:$0xff]  ;;  %v10199_v48 = vld [vmem:[#allocation6_spill] sm:$0xff] }
 0x1b8   :  { %v6464_v19 = vpack.i.bf16 %v6460_v1, %v6455_v21  ;;  %v207_v30 = vsel %vm201_vm13, %v4773_v16, %v10196_v37  ;;  %v66_v18 = vsel %vm60_vm14, %v4728_v33, %v10199_v48 }
 0x1ba   :  { %4950 = vrot.lane.b32.xlu1 %v6464_v19, %s5788_s27  ;;  %4945 = vrot.lane.b32.xlu0 %v6464_v19, %s5787_s26  ;;  %v898_v17 = vpop.f32.mrf.mxu2  ;;  %v921_v29 = vpop.f32.mrf.mxu3 }
 0x1bb   :  { %4955 = vrot.lane.b32.xlu2 %v6464_v19, %s5789_s9  ;;  %v975_v62 = vmax.f32 %v898_v17, 0.0  ;;  %v976_v24 = vmax.f32 %v921_v29, 0.0  ;;  %v878_v9 = vpop.f32.mrf.mxu1  ;;  %v630_v17 = vsel %vm10093_vm2, %v4908_v41, %v6110_v8  ;;  %v10188_v29 = vld [vmem:[#allocation14_spill] sm:$0xff]  ;;  %v489_v8 = vsel %vm483_vm5, %v4863_v61, %v10190_v5  ;;  %v10194_v41 = vld [vmem:[#allocation8_spill] sm:$0xff] }
 0x1bc   :  { %v980_v28 = vmax.f32 %v878_v9, 0.0  ;;  %v583_v3 = vsel %vm577_vm3, %v4893_v51, %v10188_v29  ;;  %v301_v51 = vsel %vm295_vm10, %v4803_v57, %v10194_v41  ;;  %v10195_v61 = vld [vmem:[#allocation10_spill] sm:$0xff] }
 0x1bd   :  { %v6483_v2 = vmul.f32 %v989_v10, %v975_v62  ;;  %v6487_v14 = vmul.f32 %v9910_v25, %v976_v24  ;;  %v254_v44 = vsel %vm248_vm11, %v4788_v52, %v10195_v61  ;;  %v25_v57 = vld [vmem:[%s9895_s0 + $0x28] sm:$0xff]  ;;  %s5804_s0 = smov 106  }
 0x1be   :  { %v6531_v11 = vmul.f32 %v988_v63, %v980_v28 }
 0x1bf   :  { %v6492_v39 = vpack.i.bf16 %v6487_v14, %v6483_v2 }
 0x1c2   :  { %4965 = vrot.lane.b32.xlu1 %v6464_v19, %s5790_s10  ;;  %4960 = vrot.lane.b32.xlu0 %v6464_v19, %s5802_s4  ;;  %v901_v23 = vpop.f32.mrf.mxu2 }
 0x1c3   :  { %4970 = vrot.lane.b32.xlu2 %v6464_v19, %s5791_s11  ;;  %v981_v47 = vmax.f32 %v901_v23, 0.0 }
 0x1c5   :  { %v6533_v6 = vmul.f32 %v989_v10, %v981_v47 }
 0x1c7   :  { %v6537_v26 = vpack.i.bf16 %v6533_v6, %v6531_v11 }
 0x1ca   :  { %4980 = vrot.lane.b32.xlu1 %v6464_v19, %s5793_s13  ;;  %4975 = vrot.lane.b32.xlu0 %v6464_v19, %s5792_s12 }
 0x1cb   :  { %4990 = vrot.lane.b32.xlu2 %v6492_v39, %s5788_s27 }
 0x1d2   :  { %4985 = vrot.lane.b32.xlu1 %v6492_v39, %s5787_s26  ;;  %4995 = vrot.lane.b32.xlu0 %v6492_v39, %s5789_s9 }
 0x1d3   :  { %5005 = vrot.lane.b32.xlu2 %v6492_v39, %s5790_s10 }
 0x1da   :  { %5000 = vrot.lane.b32.xlu1 %v6492_v39, %s5802_s4  ;;  %5010 = vrot.lane.b32.xlu0 %v6492_v39, %s5791_s11 }
 0x1db   :  { %5020 = vrot.lane.b32.xlu2 %v6492_v39, %s5793_s13 }
 0x1e2   :  { %5015 = vrot.lane.b32.xlu1 %v6492_v39, %s5792_s12  ;;  %5025 = vrot.lane.b32.xlu0 %v6517_v53, %s5787_s26 }
 0x1e3   :  { %5035 = vrot.lane.b32.xlu2 %v6517_v53, %s5789_s9 }
 0x1ea   :  { %5030 = vrot.lane.b32.xlu1 %v6517_v53, %s5788_s27  ;;  %5040 = vrot.lane.b32.xlu0 %v6517_v53, %s5802_s4 }
 0x1eb   :  { %5050 = vrot.lane.b32.xlu2 %v6517_v53, %s5791_s11 }
 0x1f2   :  { %5045 = vrot.lane.b32.xlu1 %v6517_v53, %s5790_s10  ;;  %5055 = vrot.lane.b32.xlu0 %v6517_v53, %s5792_s12 }
 0x1f3   :  { %5070 = vrot.lane.b32.xlu2 %v6537_v26, %s5788_s27 }
 0x1fa   :  { %5060 = vrot.lane.b32.xlu1 %v6517_v53, %s5793_s13  ;;  %5075 = vrot.lane.b32.xlu0 %v6537_v26, %s5789_s9 }
 0x1fb   :  { %5085 = vrot.lane.b32.xlu2 %v6537_v26, %s5790_s10 }
 0x200   :  { %v6545_v59 = vpop.permute.xlu2 %4940 }
 0x201   :  { %10187 = vst [vmem:[#allocation18_spill] sm:$0xff] %v6545_v59  ;;  %v4942_v63 = vunpack.i.l.bf16 %v6545_v59 }
 0x202   :  { %5065 = vrot.lane.b32.xlu1 %v6537_v26, %s5787_s26  ;;  %5090 = vrot.lane.b32.xlu0 %v6537_v26, %s5791_s11 }
 0x203   :  { %v724_v38 = vsel %vm718_vm0, %v4938_v60, %v4942_v63  ;;  %v10191_v60 = vld [vmem:[#allocation11_spill] sm:$0xff]  ;;  %5100 = vrot.lane.b32.xlu2 %v6537_v26, %s5793_s13 }
 0x204   :  { %950 = vmatpush.msrb.mxu1 %v724_v38  ;;  %v442_v58 = vsel %vm436_vm6, %v4848_v35, %v10191_v60  ;;  %v10197_v35 = vld [vmem:[#allocation5_spill] sm:$0xff] }
 0x205   :  { %v160_v34 = vsel %vm154_vm8, %v4758_v49, %v10197_v35 }
 0x206   :  { %951 = vmatpush.msrb.mxu1 %v677_v12 }
 0x208   :  { %952 = vmatpush.msrb.mxu1 %v630_v17 }
 0x20a   :  { %5080 = vrot.lane.b32.xlu1 %v6537_v26, %s5802_s4  ;;  %953 = vmatpush.msrb.mxu1 %v583_v3 }
 0x20c   :  { %954 = vmatpush.msrb.mxu1 %v536_v54 }
 0x20e   :  { %955 = vmatpush.msrb.mxu1 %v489_v8 }
 0x210   :  { %956 = vmatpush.msrb.mxu1 %v442_v58 }
 0x212   :  { %5095 = vrot.lane.b32.xlu1 %v6537_v26, %s5792_s12  ;;  %957 = vmatpush.msrb.mxu1 %v395_v56 }
 0x214   :  { %958 = vmatpush.msrb.mxu1 %v348_v46 }
 0x215   :  { %v6634_v13 = vpop.permute.xlu2 %4955 }
 0x216   :  { %959 = vmatpush.msrb.mxu1 %v301_v51 }
 0x218   :  { %960 = vmatpush.msrb.mxu1 %v254_v44 }
 0x21a   :  { %961 = vmatpush.msrb.mxu1 %v207_v30 }
 0x21c   :  { %962 = vmatpush.msrb.mxu1 %v160_v34 }
 0x21d   :  { %v6640_v15 = vpop.permute.xlu2 %4970 }
 0x21e   :  { %963 = vmatpush.msrb.mxu1 %v113_v32  ;;  %v4973_v61 = vunpack.i.h.bf16 %v6640_v15  ;;  %v4972_v44 = vunpack.i.l.bf16 %v6640_v15 }
 0x220   :  { %964 = vmatpush.msrb.mxu1 %v66_v18  ;;  %v1566_v32 = vsel %vm248_vm11, %v4972_v44, %v4973_v61 }
 0x222   :  { %965 = vmatpush.msrb.mxu1 %v25_v57 }
 0x223   :  { %966 = vmatmul.f32.vlgmr.msrb.gmra.mxu1 %v6257_v50 }
 0x225   :  { %v6646_v10 = vpop.permute.xlu2 %4990 }
 0x22b   :  { %969 = vmatmul.f32.gmra.mxu1 %v6330_v36 }
 0x22c   :  { %v6625_v22 = vpop.permute.xlu1 %4950  ;;  %v6627_v16 = vpop.permute.xlu0 %4945 }
 0x22d   :  { %v6654_v55 = vpop.permute.xlu2 %5005 }
 0x234   :  { %v6630_v20 = vpop.permute.xlu1 %4965  ;;  %v6632_v52 = vpop.permute.xlu0 %4960 }
 0x235   :  { %v6660_v23 = vpop.permute.xlu2 %5020  ;;  %v9912_v4 = vunpack.i.h.bf16 %v6630_v20  ;;  %v4967_v48 = vunpack.i.l.bf16 %v6630_v20 }
 0x236   :  { %10203 = vst [vmem:[#allocation11_spill] sm:$0xff] %v6660_v23 }
 0x23c   :  { %v6636_v49 = vpop.permute.xlu1 %4980  ;;  %v6638_v33 = vpop.permute.xlu0 %4975 }
 0x23d   :  { %10200 = vst [vmem:[#allocation14_spill] sm:$0xff] %v6636_v49  ;;  %v6666_v63 = vpop.permute.xlu2 %5035  ;;  %v4978_v60 = vunpack.i.h.bf16 %v6638_v33  ;;  %v4977_v0 = vunpack.i.l.bf16 %v6638_v33  ;;  %v9922_v33 = vunpack.i.l.bf16 %v6654_v55  ;;  %v7040_v49 = vld [vmem:[%s9898_s2 + $0x60] sm:$0xff] }
 0x23e   :  { %10206 = vst [vmem:[#allocation8_spill] sm:$0xff] %v6666_v63 }
 0x23f   :  { %v1658_v30 = vsel %vm295_vm10, %v4977_v0, %v4978_v60  ;;  %v9916_v0 = vunpack.i.h.bf16 %v6632_v52 }
 0x244   :  { %v6642_v62 = vpop.permute.xlu1 %4985  ;;  %v6644_v50 = vpop.permute.xlu0 %4995 }
 0x245   :  { %v6672_v17 = vpop.permute.xlu2 %5050 }
 0x246   :  { %10209 = vst [vmem:[#allocation5_spill] sm:$0xff] %v6672_v17  ;;  %v5053_v56 = vunpack.i.h.bf16 %v6672_v17 }
 0x24c   :  { %v6648_v24 = vpop.permute.xlu1 %5000  ;;  %v6650_v36 = vpop.permute.xlu0 %5010 }
 0x24d   :  { %v6682_v54 = vpop.permute.xlu2 %5070 }
 0x24e   :  { %v9915_v7 = vunpack.i.l.bf16 %v6682_v54 }
 0x254   :  { %v6652_v43 = vpop.permute.xlu1 %5015  ;;  %v6656_v27 = vpop.permute.xlu0 %5025 }
 0x255   :  { %10201 = vst [vmem:[#allocation16_spill] sm:$0xff] %v6656_v27  ;;  %v6694_v41 = vpop.permute.xlu2 %5085 }
 0x256   :  { %v5087_v35 = vunpack.i.l.bf16 %v6694_v41 }
 0x25c   :  { %v6658_v9 = vpop.permute.xlu1 %5030  ;;  %v6664_v47 = vpop.permute.xlu0 %5040 }
 0x25d   :  { %10202 = vst [vmem:[#allocation15_spill] sm:$0xff] %v6658_v9  ;;  %v5043_v18 = vunpack.i.h.bf16 %v6664_v47 }
 0x25e   :  { %10205 = vst [vmem:[#allocation12_spill] sm:$0xff] %v6664_v47 }
 0x264   :  { %v6662_v28 = vpop.permute.xlu1 %5045  ;;  %v6670_v12 = vpop.permute.xlu0 %5055 }
 0x265   :  { %10204 = vst [vmem:[#allocation13_spill] sm:$0xff] %v6662_v28  ;;  %v5058_v8 = vunpack.i.h.bf16 %v6670_v12  ;;  %v5048_v37 = vunpack.i.h.bf16 %v6662_v28 }
 0x266   :  { %10208 = vst [vmem:[#allocation9_spill] sm:$0xff] %v6670_v12  ;;  %v9956_v12 = vunpack.i.h.bf16 %v6644_v50 }
 0x26c   :  { %v6668_v38 = vpop.permute.xlu1 %5060  ;;  %v6676_v3 = vpop.permute.xlu0 %5075 }
 0x26d   :  { %10207 = vst [vmem:[#allocation10_spill] sm:$0xff] %v6668_v38  ;;  %v9914_v44 = vunpack.i.l.bf16 %v6676_v3  ;;  %v9929_v15 = vunpack.i.h.bf16 %v6676_v3 }
 0x274   :  { %v6674_v29 = vpop.permute.xlu1 %5065  ;;  %v6684_v5 = vpop.permute.xlu0 %5090 }
 0x275   :  { %v5092_v46 = vunpack.i.l.bf16 %v6684_v5  ;;  %v10223_v47 = vunpack.i.h.bf16 %v6684_v5 }
 0x277   :  { %v1572_v34 = vsel %vm248_vm11, %v5053_v56, %v5092_v46  ;;  %v4962_v56 = vunpack.i.l.bf16 %v6632_v52 }
 0x279   :  { %v1382_v25 = vsel %vm1381_vm15, %v4962_v56, %v9916_v0 }
 0x27c   :  { %v6680_v31 = vpop.permute.xlu1 %5080 }
 0x27d   :  { %v9911_v57 = vunpack.i.l.bf16 %v6680_v31 }
 0x284   :  { %v6688_v58 = vpop.permute.xlu1 %5095 }
 0x285   :  { %v5097_v42 = vunpack.i.l.bf16 %v6688_v58  ;;  %v10220_v38 = vunpack.i.h.bf16 %v6688_v58 }
 0x287   :  { %v1664_v51 = vsel %vm295_vm10, %v5058_v8, %v5097_v42  ;;  %v1480_v8 = vsel %vm201_vm13, %v5048_v37, %v5087_v35  ;;  %v9913_v37 = vunpack.i.h.bf16 %v6634_v13 }
 0x288   :  { %3619 = vmatpush.msrb.mxu2 %v1664_v51  ;;  %v5038_v51 = vunpack.i.h.bf16 %v6666_v63 }
 0x28a   :  { %3620 = vmatpush.msrb.mxu2 %v1658_v30  ;;  %v1474_v30 = vsel %vm201_vm13, %v4967_v48, %v9912_v4  ;;  %v1295_v48 = vsel %vm154_vm8, %v5038_v51, %v9914_v44  ;;  %v5067_v4 = vunpack.i.l.bf16 %v6674_v29  ;;  %v4947_v51 = vunpack.i.l.bf16 %v6627_v16 }
 0x28b   :  { %v9931_v44 = vunpack.i.h.bf16 %v6688_v58 }
 0x28c   :  { %3621 = vmatpush.msrb.mxu2 %v1572_v34  ;;  %v1388_v34 = vsel %vm1381_vm15, %v5043_v18, %v9911_v57  ;;  %v9917_v18 = vunpack.i.h.bf16 %v6625_v22  ;;  %v5028_v57 = vunpack.i.h.bf16 %v6656_v27  ;;  %v10221_v27 = vunpack.i.l.bf16 %v6652_v43 }
 0x28e   :  { %3622 = vmatpush.msrb.mxu2 %v1566_v32  ;;  %v4957_v32 = vunpack.i.l.bf16 %v6634_v13 }
 0x290   :  { %3623 = vmatpush.msrb.mxu2 %v1480_v8  ;;  %v5033_v8 = vunpack.i.h.bf16 %v6658_v9 }
 0x292   :  { %3624 = vmatpush.msrb.mxu2 %v1474_v30  ;;  %v1289_v30 = vsel %vm154_vm8, %v4957_v32, %v9913_v37  ;;  %v1203_v56 = vsel %vm107_vm12, %v5033_v8, %v9915_v7  ;;  %v944_v37 = vpop.f32.mrf.mxu0 }
 0x293   :  { %v977_v8 = vmax.f32 %v944_v37, 0.0  ;;  %v1665_v37 = vsel %vm295_vm10, %v5097_v42, %v9931_v44 }
 0x294   :  { %3625 = vmatpush.msrb.mxu2 %v1388_v34  ;;  %v4952_v34 = vunpack.i.l.bf16 %v6625_v22 }
 0x296   :  { %3626 = vmatpush.msrb.mxu2 %v1382_v25  ;;  %v4948_v25 = vunpack.i.h.bf16 %v6627_v16  ;;  %v1197_v32 = vsel %vm107_vm12, %v4952_v34, %v9917_v18  ;;  %v9919_v18 = vunpack.i.l.bf16 %v6652_v43  ;;  %v6932_v16 = vpop.permute.xlu2 %5100 }
 0x297   :  { %10218 = vst [vmem:[#allocation7_spill] sm:$0xff] %v6932_v16  ;;  %v9947_v16 = vunpack.i.h.bf16 %v6652_v43 }
 0x298   :  { %3627 = vmatpush.msrb.mxu2 %v1295_v48  ;;  %v1111_v48 = vsel %vm60_vm14, %v5028_v57, %v5067_v4  ;;  %v1105_v7 = vsel %vm60_vm14, %v4947_v51, %v4948_v25  ;;  %v9918_v57 = vunpack.i.h.bf16 %v6684_v5  ;;  %v9930_v51 = vunpack.i.h.bf16 %v6694_v41 }
 0x299   :  { %v1659_v42 = vsel %vm295_vm10, %v4978_v60, %v9919_v18  ;;  %v9921_v60 = vunpack.i.h.bf16 %v6680_v31  ;;  %v1660_v9 = vsel %vm295_vm10, %v10221_v27, %v9947_v16  ;;  %v10224_v27 = vunpack.i.l.bf16 %v6650_v36 }
 0x29a   :  { %3628 = vmatpush.msrb.mxu2 %v1289_v30  ;;  %v991_v30 = vperm.slane %v6449_v45, 4 }
 0x29c   :  { %3629 = vmatpush.msrb.mxu2 %v1203_v56  ;;  %v992_v56 = vperm.slane %v6449_v45, 5 }
 0x29e   :  { %3630 = vmatpush.msrb.mxu2 %v1197_v32  ;;  %v6771_v32 = vmul.f32 %v991_v30, %v977_v8  ;;  %v1573_v8 = vsel %vm248_vm11, %v5092_v46, %v9918_v57 }
 0x2a0   :  { %3631 = vmatpush.msrb.mxu2 %v1111_v48  ;;  %v967_v0 = vpop.f32.mrf.mxu1 }
 0x2a1   :  { %v978_v34 = vmax.f32 %v967_v0, 0.0  ;;  %v9920_v0 = vunpack.i.l.bf16 %v6650_v36 }
 0x2a2   :  { %3632 = vmatpush.msrb.mxu2 %v1105_v7 }
 0x2a3   :  { %v6773_v48 = vmul.f32 %v992_v56, %v978_v34  ;;  %v1567_v46 = vsel %vm248_vm11, %v4973_v61, %v9920_v0  ;;  %v10211_v61 = vunpack.i.l.bf16 %v6680_v31 }
 0x2a4   :  { %3633 = vmatpush.msrb.mxu2 %v6513_v40 }
 0x2a5   :  { %v6778_v7 = vpack.i.bf16 %v6773_v48, %v6771_v32  ;;  %v1389_v0 = vsel %vm1381_vm15, %v10211_v61, %v9921_v60  ;;  %v10213_v61 = vunpack.i.l.bf16 %v6676_v3 }
 0x2a6   :  { %3634 = vmatpush.msrb.mxu2 %v6455_v21 }
 0x2a7   :  { %5115 = vrot.lane.b32.xlu1 %v6778_v7, %s5789_s9  ;;  %5110 = vrot.lane.b32.xlu0 %v6778_v7, %s5788_s27  ;;  %v1296_v60 = vsel %vm154_vm8, %v10213_v61, %v9929_v15 }
 0x2a8   :  { %3735 = vmatpush.msra.mxu2 %v1665_v37  ;;  %5105 = vrot.lane.b32.xlu2 %v6778_v7, %s5787_s26  ;;  %v970_v34 = vpop.f32.mrf.mxu1  ;;  %v1481_v37 = vsel %vm201_vm13, %v5087_v35, %v9930_v51  ;;  %v7021_v51 = vld [vmem:[%s9898_s2 + $0x40] sm:$0xff] }
 0x2a9   :  { %v984_v57 = vmax.f32 %v970_v34, 0.0  ;;  %v924_v34 = vpop.f32.mrf.mxu3 }
 0x2aa   :  { %3736 = vmatpush.msra.mxu2 %v1659_v42  ;;  %v9923_v42 = vunpack.i.l.bf16 %v6648_v24 }
 0x2ab   :  { %v6829_v35 = vmul.f32 %v992_v56, %v984_v57  ;;  %v9926_v57 = vunpack.i.l.bf16 %v6646_v10 }
 0x2ac   :  { %3737 = vmatpush.msra.mxu2 %v1573_v8  ;;  %v10210_v8 = vunpack.i.h.bf16 %v6630_v20  ;;  %v9928_v20 = vunpack.i.l.bf16 %v6644_v50 }
 0x2ad   :  { %v6843_v56 = vpack.i.bf16 0.0, %v6829_v35 }
 0x2ae   :  { %3738 = vmatpush.msra.mxu2 %v1567_v46  ;;  %v1475_v18 = vsel %vm201_vm13, %v10210_v8, %v9922_v33  ;;  %v9927_v46 = vunpack.i.h.bf16 %v6682_v54 }
 0x2af   :  { %5130 = vrot.lane.b32.xlu1 %v6778_v7, %s5791_s11  ;;  %5125 = vrot.lane.b32.xlu0 %v6778_v7, %s5790_s10 }
 0x2b0   :  { %3739 = vmatpush.msra.mxu2 %v1481_v37  ;;  %5120 = vrot.lane.b32.xlu2 %v6778_v7, %s5802_s4  ;;  %v947_v37 = vpop.f32.mrf.mxu0 }
 0x2b1   :  { %v983_v33 = vmax.f32 %v947_v37, 0.0  ;;  %v9924_v37 = vunpack.i.l.bf16 %v6642_v62 }
 0x2b2   :  { %3740 = vmatpush.msra.mxu2 %v1475_v18  ;;  %v10212_v18 = vunpack.i.h.bf16 %v6632_v52  ;;  %v10214_v52 = vunpack.i.h.bf16 %v6634_v13  ;;  %v10216_v13 = vperm.slane %v6449_v45, 3 }
 0x2b4   :  { %3741 = vmatpush.msra.mxu2 %v1389_v0  ;;  %v1383_v8 = vsel %vm1381_vm15, %v10212_v18, %v9923_v42  ;;  %v982_v0 = vmax.f32 %v924_v34, 0.0  ;;  %v1290_v18 = vsel %vm154_vm8, %v10214_v52, %v9928_v20  ;;  %v9925_v42 = vunpack.i.h.bf16 %v6674_v29 }
 0x2b5   :  { %v6867_v34 = vmul.f32 %v991_v30, %v983_v33  ;;  %v10217_v52 = vunpack.i.h.bf16 %v6625_v22  ;;  %v1106_v22 = vsel %vm60_vm14, %v4948_v25, %v9924_v37 }
 0x2b6   :  { %3742 = vmatpush.msra.mxu2 %v1383_v8  ;;  %v10215_v8 = vunpack.i.l.bf16 %v6682_v54 }
 0x2b7   :  { %5160 = vrot.lane.b32.xlu1 %v6843_v56, %s5788_s27  ;;  %5140 = vrot.lane.b32.xlu0 %v6778_v7, %s5793_s13 }
 0x2b8   :  { %3743 = vmatpush.msra.mxu2 %v1296_v60  ;;  %v1204_v61 = vsel %vm107_vm12, %v10215_v8, %v9927_v46  ;;  %5135 = vrot.lane.b32.xlu2 %v6778_v7, %s5792_s12  ;;  %v6865_v60 = vmul.f32 %v10216_v13, %v982_v0  ;;  %v1112_v8 = vsel %vm60_vm14, %v5067_v4, %v9925_v42  ;;  %v6973_v13 = vld [vmem:[%s9898_s2] sm:$0xff] }
 0x2b9   :  { %3635 = vmatmul.f32.vlgmr.msrb.gmra.mxu2 %v6973_v13 }
 0x2ba   :  { %3744 = vmatpush.msra.mxu2 %v1290_v18  ;;  %v1198_v18 = vsel %vm107_vm12, %v10217_v52, %v9926_v57  ;;  %v6882_v45 = vpack.i.bf16 %v6867_v34, %v6865_v60  ;;  %v7003_v57 = vld [vmem:[%s9898_s2 + $0x20] sm:$0xff] }
 0x2bc   :  { %3745 = vmatpush.msra.mxu2 %v1204_v61 }
 0x2be   :  { %3746 = vmatpush.msra.mxu2 %v1198_v18 }
 0x2bf   :  { %5165 = vrot.lane.b32.xlu1 %v6882_v45, %s5789_s9  ;;  %5150 = vrot.lane.b32.xlu0 %v6843_v56, %s5787_s26 }
 0x2c0   :  { %3747 = vmatpush.msra.mxu2 %v1112_v8  ;;  %5145 = vrot.lane.b32.xlu2 %v6882_v45, %s5787_s26 }
 0x2c1   :  { %3638 = vmatmul.f32.gmra.mxu2 %v7003_v57 }
 0x2c2   :  { %3748 = vmatpush.msra.mxu2 %v1106_v22 }
 0x2c4   :  { %3749 = vmatpush.msra.mxu2 %v6531_v11 }
 0x2c6   :  { %3750 = vmatpush.msra.mxu2 %v6460_v1 }
 0x2c7   :  { %5190 = vrot.lane.b32.xlu1 %v6843_v56, %s5790_s10  ;;  %5155 = vrot.lane.b32.xlu0 %v6882_v45, %s5788_s27 }
 0x2c8   :  { %5170 = vrot.lane.b32.xlu2 %v6843_v56, %s5789_s9 }
 0x2c9   :  { %3641 = vmatmul.f32.gmra.mxu2 %v7021_v51 }
 0x2cf   :  { %5195 = vrot.lane.b32.xlu1 %v6882_v45, %s5791_s11  ;;  %5180 = vrot.lane.b32.xlu0 %v6843_v56, %s5802_s4 }
 0x2d0   :  { %5175 = vrot.lane.b32.xlu2 %v6882_v45, %s5802_s4 }
 0x2d1   :  { %3644 = vmatmul.f32.gmra.mxu2 %v7040_v49 }
 0x2d7   :  { %5220 = vrot.lane.b32.xlu1 %v6843_v56, %s5793_s13  ;;  %5185 = vrot.lane.b32.xlu0 %v6882_v45, %s5790_s10 }
 0x2d8   :  { %5200 = vrot.lane.b32.xlu2 %v6843_v56, %s5791_s11 }
 0x2d9   :  { %3751 = vmatmul.f32.vlgmr.msra.gmra.mxu2 %v6973_v13 }
 0x2df   :  { %5235 = vrot.lane.b32.xlu1 %v6778_v7, %s5804_s0  ;;  %5210 = vrot.lane.b32.xlu0 %v6843_v56, %s5792_s12 }
 0x2e0   :  { %5205 = vrot.lane.b32.xlu2 %v6882_v45, %s5792_s12 }
 0x2e1   :  { %3754 = vmatmul.f32.gmra.mxu2 %v7003_v57 }
 0x2e7   :  { %5250 = vrot.lane.b32.xlu1 %v6882_v45, %s5804_s0  ;;  %5215 = vrot.lane.b32.xlu0 %v6882_v45, %s5793_s13 }
 0x2e8   :  { %5225 = vrot.lane.b32.xlu2 %v6464_v19, %s5804_s0 }
 0x2e9   :  { %3757 = vmatmul.f32.gmra.mxu2 %v7021_v51 }
 0x2ef   :  { %5265 = vrot.lane.b32.xlu1 %v6492_v39, %s5794_s14  ;;  %5230 = vrot.lane.b32.xlu0 %v6492_v39, %s5804_s0 }
 0x2f0   :  { %5240 = vrot.lane.b32.xlu2 %v6517_v53, %s5804_s0 }
 0x2f1   :  { %3760 = vmatmul.f32.gmra.mxu2 %v7040_v49 }
 0x2f7   :  { %5280 = vrot.lane.b32.xlu1 %v6537_v26, %s5794_s14  ;;  %5245 = vrot.lane.b32.xlu0 %v6537_v26, %s5804_s0 }
 0x2f8   :  { %5255 = vrot.lane.b32.xlu2 %v6843_v56, %s5804_s0 }
 0x2ff   :  { %5295 = vrot.lane.b32.xlu1 %v6464_v19, %s5795_s15  ;;  %5260 = vrot.lane.b32.xlu0 %v6464_v19, %s5794_s14 }
 0x300   :  { %5270 = vrot.lane.b32.xlu2 %v6778_v7, %s5794_s14 }
 0x302   :  { %v6940_v4 = vpop.permute.xlu2 %5105 }
 0x307   :  { %5310 = vrot.lane.b32.xlu1 %v6517_v53, %s5795_s15  ;;  %5275 = vrot.lane.b32.xlu0 %v6517_v53, %s5794_s14 }
 0x308   :  { %5285 = vrot.lane.b32.xlu2 %v6882_v45, %s5794_s14 }
 0x30a   :  { %v6948_v25 = vpop.permute.xlu2 %5120 }
 0x30f   :  { %5325 = vrot.lane.b32.xlu1 %v6843_v56, %s5795_s15  ;;  %5290 = vrot.lane.b32.xlu0 %v6843_v56, %s5794_s14 }
 0x310   :  { %5300 = vrot.lane.b32.xlu2 %v6492_v39, %s5795_s15 }
 0x312   :  { %v6956_v30 = vpop.permute.xlu2 %5135 }
 0x317   :  { %5340 = vrot.lane.b32.xlu1 %v6778_v7, %s5796_s16  ;;  %5305 = vrot.lane.b32.xlu0 %v6778_v7, %s5795_s15 }
 0x318   :  { %5315 = vrot.lane.b32.xlu2 %v6537_v26, %s5795_s15 }
 0x319   :  { %v6964_v33 = vpop.permute.xlu1 %5115  ;;  %v6966_v0 = vpop.permute.xlu0 %5110 }
 0x31a   :  { %v6968_v61 = vpop.permute.xlu2 %5145 }
 0x31f   :  { %5355 = vrot.lane.b32.xlu1 %v6882_v45, %s5796_s16  ;;  %5320 = vrot.lane.b32.xlu0 %v6882_v45, %s5795_s15 }
 0x320   :  { %5330 = vrot.lane.b32.xlu2 %v6464_v19, %s5796_s16 }
 0x321   :  { %v6982_v52 = vpop.permute.xlu1 %5130  ;;  %v6984_v18 = vpop.permute.xlu0 %5125 }
 0x322   :  { %v6986_v8 = vpop.permute.xlu2 %5170 }
 0x327   :  { %5370 = vrot.lane.b32.xlu1 %v6492_v39, %s5797_s17  ;;  %5335 = vrot.lane.b32.xlu0 %v6492_v39, %s5796_s16 }
 0x328   :  { %5345 = vrot.lane.b32.xlu2 %v6517_v53, %s5796_s16 }
 0x329   :  { %v6994_v22 = vpop.permute.xlu1 %5160  ;;  %v6996_v37 = vpop.permute.xlu0 %5140 }
 0x32a   :  { %10219 = vst [vmem:[#allocation6_spill] sm:$0xff] %v6996_v37  ;;  %v6998_v42 = vpop.permute.xlu2 %5175 }
 0x32f   :  { %5385 = vrot.lane.b32.xlu1 %v6537_v26, %s5797_s17  ;;  %5350 = vrot.lane.b32.xlu0 %v6537_v26, %s5796_s16 }
 0x330   :  { %5360 = vrot.lane.b32.xlu2 %v6843_v56, %s5796_s16 }
 0x331   :  { %v7012_v46 = vpop.permute.xlu1 %5165  ;;  %v7014_v20 = vpop.permute.xlu0 %5150 }
 0x332   :  { %v7016_v15 = vpop.permute.xlu2 %5200 }
 0x337   :  { %5400 = vrot.lane.b32.xlu1 %v6464_v19, %s5805_s30  ;;  %5365 = vrot.lane.b32.xlu0 %v6464_v19, %s5797_s17 }
 0x338   :  { %5375 = vrot.lane.b32.xlu2 %v6778_v7, %s5797_s17 }
 0x339   :  { %v7030_v44 = vpop.permute.xlu1 %5190  ;;  %v7032_v59 = vpop.permute.xlu0 %5155 }
 0x33a   :  { %v7034_v37 = vpop.permute.xlu2 %5205 }
 0x33b   :  { %v9941_v23 = vunpack.i.l.bf16 %v7034_v37 }
 0x33d   :  { %v1666_v21 = vsel %vm295_vm10, %v10220_v38, %v9941_v23 }
 0x33e   :  { %3851 = vmatpush.msrb.mxu2 %v1666_v21  ;;  %v9946_v21 = vunpack.i.h.bf16 %v6650_v36 }
 0x33f   :  { %5415 = vrot.lane.b32.xlu1 %v6517_v53, %s5805_s30  ;;  %5380 = vrot.lane.b32.xlu0 %v6517_v53, %s5797_s17 }
 0x340   :  { %5390 = vrot.lane.b32.xlu2 %v6882_v45, %s5797_s17  ;;  %3852 = vmatpush.msrb.mxu2 %v1660_v9  ;;  %v1568_v9 = vsel %vm248_vm11, %v10224_v27, %v9946_v21  ;;  %v9954_v27 = vunpack.i.h.bf16 %v6654_v55 }
 0x341   :  { %v7060_v58 = vpop.permute.xlu1 %5195  ;;  %v7064_v23 = vpop.permute.xlu0 %5180 }
 0x342   :  { %v9945_v38 = vunpack.i.l.bf16 %v7060_v58  ;;  %v7066_v63 = vpop.permute.xlu2 %5225 }
 0x343   :  { %10222 = vst [vmem:[#allocation19_spill] sm:$0xff] %v7066_v63  ;;  %v10232_v63 = vunpack.i.h.bf16 %v6680_v31  ;;  %v10236_v31 = vunpack.i.h.bf16 %v6676_v3 }
 0x344   :  { %v1574_v28 = vsel %vm248_vm11, %v10223_v47, %v9945_v38 }
 0x345   :  { %3853 = vmatpush.msrb.mxu2 %v1574_v28 }
 0x347   :  { %5430 = vrot.lane.b32.xlu1 %v6843_v56, %s5805_s30  ;;  %3854 = vmatpush.msrb.mxu2 %v1568_v9  ;;  %v10227_v9 = vunpack.i.h.bf16 %v6694_v41  ;;  %v10228_v41 = vunpack.i.l.bf16 %v6654_v55 }
 0x348   :  { %5395 = vrot.lane.b32.xlu0 %v6843_v56, %s5797_s17  ;;  %5405 = vrot.lane.b32.xlu2 %v6492_v39, %s5805_s30  ;;  %s5806_s17 = smov 70  }
 0x349   :  { %v7085_v47 = vpop.permute.xlu1 %5220  ;;  %v7087_v5 = vpop.permute.xlu0 %5185 }
 0x34a   :  { %10225 = vst [vmem:[#allocation20_spill] sm:$0xff] %v7085_v47  ;;  %v7089_v28 = vpop.permute.xlu2 %5240  ;;  %v9949_v38 = vunpack.i.l.bf16 %v7087_v5 }
 0x34b   :  { %10226 = vst [vmem:[#allocation21_spill] sm:$0xff] %v7089_v28  ;;  %v10231_v28 = vunpack.i.l.bf16 %v6998_v42 }
 0x34c   :  { %v1482_v21 = vsel %vm201_vm13, %v10227_v9, %v9949_v38  ;;  %v1476_v9 = vsel %vm201_vm13, %v10228_v41, %v9954_v27  ;;  %v10233_v41 = vunpack.i.h.bf16 %v6648_v24 }
 0x34d   :  { %3855 = vmatpush.msrb.mxu2 %v1482_v21  ;;  %v1390_v17 = vsel %vm1381_vm15, %v10232_v63, %v10231_v28  ;;  %v9960_v21 = vunpack.i.l.bf16 %v7032_v59  ;;  %v10237_v28 = vunpack.i.l.bf16 %v6644_v50 }
 0x34f   :  { %5445 = vrot.lane.b32.xlu1 %v6778_v7, %s5798_s18  ;;  %3856 = vmatpush.msrb.mxu2 %v1476_v9  ;;  %v10234_v9 = vunpack.i.l.bf16 %v6648_v24  ;;  %v1291_v3 = vsel %vm154_vm8, %v10237_v28, %v9956_v12  ;;  %v10242_v28 = vunpack.i.h.bf16 %v6646_v10 }
 0x350   :  { %5410 = vrot.lane.b32.xlu0 %v6778_v7, %s5805_s30  ;;  %5420 = vrot.lane.b32.xlu2 %v6537_v26, %s5805_s30 }
 0x351   :  { %v7112_v38 = vpop.permute.xlu1 %5235  ;;  %v7115_v16 = vpop.permute.xlu0 %5210  ;;  %3857 = vmatpush.msrb.mxu2 %v1390_v17  ;;  %v1384_v27 = vsel %vm1381_vm15, %v10234_v9, %v10233_v41  ;;  %v9958_v17 = vunpack.i.h.bf16 %v6642_v62 }
 0x352   :  { %10229 = vst [vmem:[#allocation22_spill] sm:$0xff] %v7112_v38  ;;  %v7117_v47 = vpop.permute.xlu2 %5255  ;;  %v10244_v38 = vunpack.i.h.bf16 %v6674_v29  ;;  %v9962_v29 = vunpack.i.h.bf16 %v7034_v37 }
 0x353   :  { %10230 = vst [vmem:[#allocation23_spill] sm:$0xff] %v7117_v47  ;;  %3858 = vmatpush.msrb.mxu2 %v1384_v27  ;;  %v10235_v47 = vunpack.i.l.bf16 %v7012_v46  ;;  %v9959_v27 = vunpack.i.l.bf16 %v6968_v61 }
 0x355   :  { %v1297_v63 = vsel %vm154_vm8, %v10236_v31, %v10235_v47  ;;  %v10241_v31 = vunpack.i.h.bf16 %v6682_v54  ;;  %v1113_v54 = vsel %vm60_vm14, %v10244_v38, %v9959_v27  ;;  %v10250_v27 = vunpack.i.h.bf16 %v6652_v43 }
 0x356   :  { %3859 = vmatpush.msrb.mxu2 %v1297_v63  ;;  %v10251_v43 = vunpack.i.l.bf16 %v7060_v58 }
 0x357   :  { %5460 = vrot.lane.b32.xlu1 %v6882_v45, %s5798_s18  ;;  %v1205_v63 = vsel %vm107_vm12, %v10241_v31, %v9960_v21 }
 0x358   :  { %5425 = vrot.lane.b32.xlu0 %v6882_v45, %s5805_s30  ;;  %5435 = vrot.lane.b32.xlu2 %v6464_v19, %s5798_s18 }
 0x359   :  { %3860 = vmatpush.msrb.mxu2 %v1291_v3  ;;  %v7149_v47 = vpop.permute.xlu1 %5250  ;;  %v7152_v41 = vpop.permute.xlu0 %5215  ;;  %v10243_v3 = vunpack.i.l.bf16 %v6646_v10 }
 0x35a   :  { %10238 = vst [vmem:[#allocation24_spill] sm:$0xff] %v7149_v47  ;;  %v7154_v9 = vpop.permute.xlu2 %5270  ;;  %v9975_v47 = vunpack.i.l.bf16 %v6948_v25 }
 0x35b   :  { %10239 = vst [vmem:[#allocation25_spill] sm:$0xff] %v7152_v41  ;;  %3861 = vmatpush.msrb.mxu2 %v1205_v63  ;;  %v1199_v12 = vsel %vm107_vm12, %v10243_v3, %v10242_v28  ;;  %v9961_v3 = vunpack.i.l.bf16 %v6956_v30  ;;  %v9969_v41 = vunpack.i.h.bf16 %v6998_v42 }
 0x35c   :  { %10240 = vst [vmem:[#allocation26_spill] sm:$0xff] %v7154_v9 }
 0x35d   :  { %3862 = vmatpush.msrb.mxu2 %v1199_v12  ;;  %v10245_v12 = vunpack.i.l.bf16 %v6642_v62  ;;  %v1661_v21 = vsel %vm295_vm10, %v10250_v27, %v9961_v3 }
 0x35f   :  { %3863 = vmatpush.msrb.mxu2 %v1113_v54  ;;  %5475 = vrot.lane.b32.xlu1 %v6492_v39, %s5799_s19  ;;  %v1107_v31 = vsel %vm60_vm14, %v10245_v12, %v9958_v17  ;;  %v9965_v54 = vunpack.i.h.bf16 %v7060_v58  ;;  %v10249_v12 = vunpack.i.l.bf16 %v7034_v37  ;;  %v9970_v17 = vunpack.i.l.bf16 %v6982_v52 }
 0x360   :  { %5440 = vrot.lane.b32.xlu0 %v6492_v39, %s5798_s18  ;;  %5450 = vrot.lane.b32.xlu2 %v6517_v53, %s5798_s18 }
 0x361   :  { %3864 = vmatpush.msrb.mxu2 %v1107_v31  ;;  %v7185_v38 = vpop.permute.xlu1 %5265  ;;  %v7187_v63 = vpop.permute.xlu0 %5230  ;;  %v1667_v31 = vsel %vm295_vm10, %v10249_v12, %v9962_v29  ;;  %v1575_v27 = vsel %vm248_vm11, %v10251_v43, %v9965_v54  ;;  %v9968_v29 = vunpack.i.l.bf16 %v6984_v18  ;;  %v10253_v12 = vunpack.i.h.bf16 %v6650_v36 }
 0x362   :  { %10246 = vst [vmem:[#allocation27_spill] sm:$0xff] %v7185_v38  ;;  %v7189_v28 = vpop.permute.xlu2 %5285  ;;  %v10254_v43 = vunpack.i.h.bf16 %v7087_v5  ;;  %v10255_v54 = vunpack.i.l.bf16 %v7087_v5  ;;  %v5193_v38 = vunpack.i.h.bf16 %v7030_v44 }
 0x363   :  { %10247 = vst [vmem:[#allocation28_spill] sm:$0xff] %v7187_v63  ;;  %3865 = vmatpush.msrb.mxu2 %v6533_v6  ;;  %v1569_v9 = vsel %vm248_vm11, %v10253_v12, %v9970_v17  ;;  %v9978_v17 = vunpack.i.l.bf16 %v6966_v0  ;;  %v10260_v63 = vunpack.i.h.bf16 %v6644_v50  ;;  %v10261_v50 = vunpack.i.l.bf16 %v7032_v59 }
 0x364   :  { %10248 = vst [vmem:[#allocation29_spill] sm:$0xff] %v7189_v28  ;;  %v10256_v28 = vunpack.i.h.bf16 %v6654_v55 }
 0x365   :  { %3866 = vmatpush.msrb.mxu2 %v6483_v2 }
 0x366   :  { %3867 = vmatmul.f32.vlgmr.msrb.gmra.mxu2 %v6973_v13  ;;  %v1477_v36 = vsel %vm201_vm13, %v10256_v28, %v9968_v29 }
 0x367   :  { %3967 = vmatpush.msra.mxu2 %v1667_v31  ;;  %5490 = vrot.lane.b32.xlu1 %v6537_v26, %s5799_s19 }
 0x368   :  { %5455 = vrot.lane.b32.xlu0 %v6537_v26, %s5798_s18  ;;  %5465 = vrot.lane.b32.xlu2 %v6843_v56, %s5798_s18  ;;  %s5807_s18 = smov 56  }
 0x369   :  { %3968 = vmatpush.msra.mxu2 %v1661_v21  ;;  %v7219_v31 = vpop.permute.xlu1 %5280  ;;  %v7221_v3 = vpop.permute.xlu0 %5245 }
 0x36a   :  { %v7223_v21 = vpop.permute.xlu2 %5300 }
 0x36b   :  { %3969 = vmatpush.msra.mxu2 %v1575_v27  ;;  %10252 = vst [vmem:[#allocation30_spill] sm:$0xff] %v7223_v21  ;;  %v1483_v27 = vsel %vm201_vm13, %v10255_v54, %v10254_v43  ;;  %v9972_v43 = vunpack.i.l.bf16 %v6964_v33 }
 0x36d   :  { %3970 = vmatpush.msra.mxu2 %v1569_v9  ;;  %v10257_v9 = vunpack.i.l.bf16 %v6998_v42 }
 0x36e   :  { %3870 = vmatmul.f32.gmra.mxu2 %v7003_v57 }
 0x36f   :  { %3971 = vmatpush.msra.mxu2 %v1483_v27  ;;  %5505 = vrot.lane.b32.xlu1 %v6464_v19, %s5800_s20  ;;  %v1391_v55 = vsel %vm1381_vm15, %v10257_v9, %v9969_v41  ;;  %v9973_v27 = vunpack.i.h.bf16 %v7012_v46  ;;  %v9974_v9 = vunpack.i.h.bf16 %v7032_v59 }
 0x370   :  { %5470 = vrot.lane.b32.xlu0 %v6464_v19, %s5799_s19  ;;  %5480 = vrot.lane.b32.xlu2 %v6778_v7, %s5799_s19 }
 0x371   :  { %3972 = vmatpush.msra.mxu2 %v1477_v36  ;;  %v7255_v54 = vpop.permute.xlu1 %5295  ;;  %v7257_v28 = vpop.permute.xlu0 %5260  ;;  %v10258_v36 = vunpack.i.h.bf16 %v6648_v24  ;;  %v1292_v24 = vsel %vm154_vm8, %v10260_v63, %v9972_v43  ;;  %v10264_v43 = vunpack.i.h.bf16 %v6646_v10  ;;  %v9982_v10 = vunpack.i.l.bf16 %v7115_v16 }
 0x372   :  { %v7259_v12 = vpop.permute.xlu2 %5315 }
 0x373   :  { %3973 = vmatpush.msra.mxu2 %v1391_v55  ;;  %v1385_v29 = vsel %vm1381_vm15, %v10258_v36, %v9975_v47  ;;  %v10259_v55 = vunpack.i.l.bf16 %v7012_v46 }
 0x375   :  { %3974 = vmatpush.msra.mxu2 %v1385_v29  ;;  %v1298_v41 = vsel %vm154_vm8, %v10259_v55, %v9973_v27  ;;  %v9977_v29 = vunpack.i.h.bf16 %v6968_v61  ;;  %v1200_v27 = vsel %vm107_vm12, %v10264_v43, %v9978_v17  ;;  %v10271_v17 = vunpack.i.l.bf16 %v6956_v30 }
 0x376   :  { %3873 = vmatmul.f32.gmra.mxu2 %v7021_v51 }
 0x377   :  { %3975 = vmatpush.msra.mxu2 %v1298_v41  ;;  %5520 = vrot.lane.b32.xlu1 %v6517_v53, %s5800_s20  ;;  %v1206_v41 = vsel %vm107_vm12, %v10261_v50, %v9974_v9  ;;  %v10265_v50 = vunpack.i.l.bf16 %v6968_v61 }
 0x378   :  { %5485 = vrot.lane.b32.xlu0 %v6517_v53, %s5799_s19  ;;  %5495 = vrot.lane.b32.xlu2 %v6882_v45, %s5799_s19 }
 0x379   :  { %3976 = vmatpush.msra.mxu2 %v1292_v24  ;;  %v7293_v63 = vpop.permute.xlu1 %5310  ;;  %v7295_v36 = vpop.permute.xlu0 %5275  ;;  %v9976_v24 = vunpack.i.l.bf16 %v6940_v4  ;;  %v1114_v9 = vsel %vm60_vm14, %v10265_v50, %v9977_v29  ;;  %v9981_v29 = vunpack.i.l.bf16 %v7016_v15 }
 0x37a   :  { %10262 = vst [vmem:[#allocation31_spill] sm:$0xff] %v7293_v63  ;;  %v7297_v55 = vpop.permute.xlu2 %5330 }
 0x37b   :  { %3977 = vmatpush.msra.mxu2 %v1206_v41  ;;  %10263 = vst [vmem:[#allocation32_spill] sm:$0xff] %v7295_v36  ;;  %v10266_v41 = vunpack.i.h.bf16 %v6642_v62  ;;  %v9980_v62 = vunpack.i.h.bf16 %v6956_v30 }
 0x37d   :  { %3978 = vmatpush.msra.mxu2 %v1200_v27  ;;  %v1108_v47 = vsel %vm60_vm14, %v10266_v41, %v9976_v24  ;;  %v5549_v41 = vpack.i.bf16 0.0, %v6773_v48  ;;  %v9988_v24 = vunpack.i.h.bf16 %v6982_v52 }
 0x37e   :  { %3876 = vmatmul.f32.gmra.mxu2 %v7040_v49 }
 0x37f   :  { %3979 = vmatpush.msra.mxu2 %v1114_v9  ;;  %5535 = vrot.lane.b32.xlu1 %v6843_v56, %s5800_s20 }
 0x380   :  { %5500 = vrot.lane.b32.xlu0 %v6843_v56, %s5799_s19  ;;  %5510 = vrot.lane.b32.xlu2 %v6492_v39, %s5800_s20  ;;  %s5808_s19 = smov 53  }
 0x381   :  { %3980 = vmatpush.msra.mxu2 %v1108_v47  ;;  %v7323_v43 = vpop.permute.xlu1 %5325  ;;  %v7327_v27 = vpop.permute.xlu0 %5290  ;;  %v10270_v47 = vunpack.i.h.bf16 %v7034_v37  ;;  %v10272_v37 = vunpack.i.h.bf16 %v7060_v58  ;;  %v10276_v58 = vunpack.i.l.bf16 %v6982_v52 }
 0x382   :  { %10267 = vst [vmem:[#allocation33_spill] sm:$0xff] %v7323_v43  ;;  %v7329_v9 = vpop.permute.xlu2 %5345  ;;  %v9993_v43 = vunpack.i.h.bf16 %v6948_v25 }
 0x383   :  { %3981 = vmatpush.msra.mxu2 %v6865_v60  ;;  %10268 = vst [vmem:[#allocation34_spill] sm:$0xff] %v7327_v27  ;;  %v1668_v50 = vsel %vm295_vm10, %v10270_v47, %v9982_v10  ;;  %v1662_v27 = vsel %vm295_vm10, %v10271_v17, %v9980_v62  ;;  %v1576_v47 = vsel %vm248_vm11, %v10272_v37, %v9981_v29  ;;  %v9986_v29 = vunpack.i.l.bf16 %v7064_v23 }
 0x384   :  { %10269 = vst [vmem:[#allocation35_spill] sm:$0xff] %v7329_v9  ;;  %v1570_v37 = vsel %vm248_vm11, %v10276_v58, %v9988_v24  ;;  %v5564_v17 = vpack.i.bf16 %v6829_v35, %v6867_v34  ;;  %v10286_v24 = vunpack.i.l.bf16 %v6964_v33 }
 0x385   :  { %3982 = vmatpush.msra.mxu2 %v6487_v14 }
 0x386   :  { %3983 = vmatmul.f32.vlgmr.msra.gmra.mxu2 %v6973_v13 }
 0x387   :  { %4083 = vmatpush.msrb.mxu2 %v1668_v50  ;;  %5550 = vrot.lane.b32.xlu1 %v5549_v41, %s5801_s21 }
 0x388   :  { %5515 = vrot.lane.b32.xlu0 %v6778_v7, %s5800_s20  ;;  %5525 = vrot.lane.b32.xlu2 %v6537_v26, %s5800_s20 }
 0x389   :  { %4084 = vmatpush.msrb.mxu2 %v1662_v27  ;;  %v7356_v50 = vpop.permute.xlu1 %5340  ;;  %v9987_v27 = vunpack.i.l.bf16 %v7030_v44  ;;  %v7360_v41 = vpop.permute.xlu0 %5305 }
 0x38a   :  { %10273 = vst [vmem:[#allocation36_spill] sm:$0xff] %v7356_v50  ;;  %v7362_v62 = vpop.permute.xlu2 %5360 }
 0x38b   :  { %4085 = vmatpush.msrb.mxu2 %v1576_v47  ;;  %10274 = vst [vmem:[#allocation37_spill] sm:$0xff] %v7360_v41  ;;  %v10277_v47 = vunpack.i.h.bf16 %v7087_v5  ;;  %v10279_v41 = vunpack.i.l.bf16 %v6984_v18  ;;  %v5539_v5 = vpack.i.bf16 %v6483_v2, %v6460_v1 }
 0x38c   :  { %10275 = vst [vmem:[#allocation38_spill] sm:$0xff] %v7362_v62  ;;  %v10278_v62 = vunpack.i.h.bf16 %v6984_v18 }
 0x38d   :  { %4086 = vmatpush.msrb.mxu2 %v1570_v37  ;;  %v1484_v10 = vsel %vm201_vm13, %v10277_v47, %v9987_v27  ;;  %v9992_v27 = vunpack.i.l.bf16 %v6994_v22 }
 0x38e   :  { %v1478_v58 = vsel %vm201_vm13, %v10279_v41, %v10278_v62  ;;  %3986 = vmatmul.f32.gmra.mxu2 %v7003_v57  ;;  %v9991_v41 = vunpack.i.l.bf16 %v6986_v8 }
 0x38f   :  { %4087 = vmatpush.msrb.mxu2 %v1484_v10  ;;  %5565 = vrot.lane.b32.xlu1 %v5564_v17, %s5801_s21  ;;  %v10280_v10 = vunpack.i.h.bf16 %v6998_v42  ;;  %v9990_v17 = vunpack.i.h.bf16 %v6964_v33  ;;  %v10284_v42 = vunpack.i.l.bf16 %v6948_v25 }
 0x390   :  { %5530 = vrot.lane.b32.xlu0 %v6882_v45, %s5800_s20  ;;  %5540 = vrot.lane.b32.xlu2 %v5539_v5, %s5801_s21  ;;  %v10285_v5 = vunpack.i.h.bf16 %v7012_v46  ;;  %v7426_v46 = vpack.i.bf16 %v6531_v11, %v6513_v40  ;;  %s5809_s20 = smov 52  }
 0x391   :  { %4088 = vmatpush.msrb.mxu2 %v1478_v58  ;;  %v1392_v37 = vsel %vm1381_vm15, %v10280_v10, %v9986_v29  ;;  %v7395_v62 = vpop.permute.xlu1 %5355  ;;  %v7399_v47 = vpop.permute.xlu0 %5320  ;;  %v1386_v10 = vsel %vm1381_vm15, %v10284_v42, %v9993_v43  ;;  %v9998_v29 = vunpack.i.h.bf16 %v6966_v0  ;;  %v1293_v50 = vsel %vm154_vm8, %v10286_v24, %v9990_v17 }
 0x392   :  { %10281 = vst [vmem:[#allocation39_spill] sm:$0xff] %v7395_v62  ;;  %v7401_v58 = vpop.permute.xlu2 %5375  ;;  %v5544_v42 = vpack.i.bf16 %v6771_v32, %v6487_v14  ;;  %v10287_v24 = vunpack.i.h.bf16 %v7032_v59  ;;  %v10289_v59 = vunpack.i.l.bf16 %v6966_v0  ;;  %v10296_v62 = vld [vmem:[#allocation5_spill] sm:$0xff] }
 0x393   :  { %4089 = vmatpush.msrb.mxu2 %v1392_v37  ;;  %10282 = vst [vmem:[#allocation40_spill] sm:$0xff] %v7399_v47  ;;  %v1299_v37 = vsel %vm154_vm8, %v10285_v5, %v9991_v41  ;;  %v5213_v47 = vunpack.i.h.bf16 %v7115_v16 }
 0x394   :  { %10283 = vst [vmem:[#allocation41_spill] sm:$0xff] %v7401_v58  ;;  %v1207_v5 = vsel %vm107_vm12, %v10287_v24, %v9992_v27  ;;  %v10290_v24 = vunpack.i.h.bf16 %v6968_v61  ;;  %v10291_v27 = vunpack.i.l.bf16 %v6940_v4  ;;  %v5559_v58 = vpack.i.bf16 %v6865_v60, %v6533_v6 }
 0x395   :  { %4090 = vmatpush.msrb.mxu2 %v1386_v10  ;;  %v9997_v10 = vunpack.i.l.bf16 %v7014_v20  ;;  %v10292_v61 = vmov 0.0  }
 0x396   :  { %3989 = vmatmul.f32.gmra.mxu2 %v7021_v51 }
 0x397   :  { %4091 = vmatpush.msrb.mxu2 %v1299_v37  ;;  %5575 = vrot.lane.b32.xlu1 %v6492_v39, %s5806_s17  ;;  %v9996_v37 = vunpack.i.h.bf16 %v6940_v4 }
 0x398   :  { %5545 = vrot.lane.b32.xlu0 %v5544_v42, %s5801_s21  ;;  %5555 = vrot.lane.b32.xlu2 %v7426_v46, %s5801_s21  ;;  %v1201_v42 = vsel %vm107_vm12, %v10289_v59, %v9998_v29 }
 0x399   :  { %4092 = vmatpush.msrb.mxu2 %v1293_v50  ;;  %v7438_v50 = vpop.permute.xlu1 %5370  ;;  %v7441_v17 = vpop.permute.xlu0 %5335  ;;  %v1109_v43 = vsel %vm60_vm14, %v10291_v27, %v9996_v37 }
 0x39a   :  { %v7443_v41 = vpop.permute.xlu2 %5390 }
 0x39b   :  { %4093 = vmatpush.msrb.mxu2 %v1207_v5  ;;  %10288 = vst [vmem:[#allocation42_spill] sm:$0xff] %v7443_v41  ;;  %v1115_v5 = vsel %vm60_vm14, %v10290_v24, %v9997_v10  ;;  %v10293_v24 = vld [vmem:[#allocation9_spill] sm:$0xff]  ;;  %v10295_v10 = vunpack.i.h.bf16 %v6956_v30  ;;  %v5052_v41 = vunpack.i.l.bf16 %v10296_v62 }
 0x39d   :  { %4094 = vmatpush.msrb.mxu2 %v1201_v42 }
 0x39e   :  { %3992 = vmatmul.f32.gmra.mxu2 %v7040_v49 }
 0x39f   :  { %4095 = vmatpush.msrb.mxu2 %v1115_v5  ;;  %5590 = vrot.lane.b32.xlu1 %v6537_v26, %s5806_s17  ;;  %v5203_v5 = vunpack.i.h.bf16 %v7016_v15 }
 0x3a0   :  { %5560 = vrot.lane.b32.xlu0 %v5559_v58, %s5801_s21  ;;  %2670 = vrot.lane.b32.xlu2 %v10292_v61, %s5801_s21  ;;  %v10294_v58 = vunpack.i.l.bf16 %v7115_v16  ;;  %v10298_v16 = vunpack.i.h.bf16 %v6982_v52  ;;  %v10301_v52 = vunpack.i.h.bf16 %v6984_v18  ;;  %s5810_s21 = smov 55  }
 0x3a1   :  { %4096 = vmatpush.msrb.mxu2 %v1109_v43  ;;  %v7470_v59 = vpop.permute.xlu1 %5385  ;;  %v7472_v27 = vpop.permute.xlu0 %5350  ;;  %v5057_v43 = vunpack.i.l.bf16 %v10293_v24  ;;  %v10297_v24 = vunpack.i.l.bf16 %v7016_v15 }
 0x3a2   :  { %v7474_v42 = vpop.permute.xlu2 %5405  ;;  %v1669_v37 = vsel %vm295_vm10, %v10294_v58, %v5213_v47  ;;  %v1571_v30 = vsel %vm248_vm11, %v10298_v16, %v5052_v41  ;;  %v10303_v16 = vunpack.i.l.bf16 %v7064_v23 }
 0x3a3   :  { %4097 = vmatpush.msrb.mxu2 %v6867_v34  ;;  %v1663_v29 = vsel %vm295_vm10, %v10295_v10, %v5057_v43  ;;  %v1577_v21 = vsel %vm248_vm11, %v10297_v24, %v5203_v5  ;;  %v5183_v10 = vunpack.i.h.bf16 %v7064_v23  ;;  %v10302_v5 = vld [vmem:[#allocation12_spill] sm:$0xff]  ;;  %v5173_v24 = vunpack.i.h.bf16 %v6986_v8 }
 0x3a4   :  { %v5042_v58 = vunpack.i.l.bf16 %v10302_v5  ;;  %vm1842_vm10 = vcmask 867328   ;;  %vm10108_vm11 = vcmask 572416  }
 0x3a5   :  { %4098 = vmatpush.msrb.mxu2 %v6771_v32 }
 0x3a6   :  { %4099 = vmatmul.f32.vlgmr.msrb.gmra.mxu2 %v6973_v13 }
 0x3a7   :  { %4199 = vmatpush.msra.mxu2 %v1669_v37  ;;  %5605 = vrot.lane.b32.xlu1 %v6464_v19, %s5807_s18  ;;  %v10300_v37 = vunpack.i.l.bf16 %v7030_v44  ;;  %v10304_v44 = vunpack.i.h.bf16 %v6948_v25  ;;  %v10309_v25 = vunpack.i.h.bf16 %v6964_v33  ;;  %v10312_v33 = vunpack.i.h.bf16 %v6966_v0 }
 0x3a8   :  { %5570 = vrot.lane.b32.xlu0 %v6464_v19, %s5806_s17  ;;  %5580 = vrot.lane.b32.xlu2 %v6778_v7, %s5806_s17 }
 0x3a9   :  { %4200 = vmatpush.msra.mxu2 %v1663_v29  ;;  %v7499_v29 = vpop.permute.xlu1 %5400  ;;  %v7502_v15 = vpop.permute.xlu0 %5365  ;;  %v1485_v43 = vsel %vm201_vm13, %v10300_v37, %v5193_v38  ;;  %v1387_v18 = vsel %vm1381_vm15, %v10304_v44, %v5042_v58  ;;  %v10308_v37 = vunpack.i.l.bf16 %v6986_v8  ;;  %v5153_v58 = vunpack.i.h.bf16 %v7014_v20 }
 0x3aa   :  { %v7504_v62 = vpop.permute.xlu2 %5420 }
 0x3ab   :  { %4201 = vmatpush.msra.mxu2 %v1577_v21  ;;  %v10299_v21 = vld [vmem:[#allocation13_spill] sm:$0xff] }
 0x3ac   :  { %v5047_v47 = vunpack.i.l.bf16 %v10299_v21 }
 0x3ad   :  { %4202 = vmatpush.msra.mxu2 %v1571_v30  ;;  %v1393_v30 = vsel %vm1381_vm15, %v10303_v16, %v5183_v10  ;;  %v10311_v16 = vunpack.i.l.bf16 %v6994_v22  ;;  %vm3136_vm15 = vcmask 433152  }
 0x3ae   :  { %v1479_v41 = vsel %vm201_vm13, %v10301_v52, %v5047_v47  ;;  %4102 = vmatmul.f32.gmra.mxu2 %v7003_v57  ;;  %v10307_v47 = vld [vmem:[#allocation8_spill] sm:$0xff]  ;;  %vm10105_vm13 = vcmask 457728  }
 0x3af   :  { %4203 = vmatpush.msra.mxu2 %v1485_v43  ;;  %5620 = vrot.lane.b32.xlu1 %v6517_v53, %s5807_s18  ;;  %v5037_v10 = vunpack.i.l.bf16 %v10307_v47  ;;  %v1300_v43 = vsel %vm154_vm8, %v10308_v37, %v5173_v24 }
 0x3b0   :  { %5585 = vrot.lane.b32.xlu0 %v6517_v53, %s5806_s17  ;;  %5595 = vrot.lane.b32.xlu2 %v6882_v45, %s5806_s17  ;;  %v5163_v53 = vunpack.i.h.bf16 %v6994_v22 }
 0x3b1   :  { %4204 = vmatpush.msra.mxu2 %v1479_v41  ;;  %v7528_v38 = vpop.permute.xlu1 %5415  ;;  %v7531_v23 = vpop.permute.xlu0 %5380  ;;  %v1294_v52 = vsel %vm154_vm8, %v10309_v25, %v5037_v10  ;;  %v10310_v41 = vld [vmem:[#allocation15_spill] sm:$0xff]  ;;  %vm2303_vm8 = vcmask 719872  }
 0x3b2   :  { %10305 = vst [vmem:[#allocation9_spill] sm:$0xff] %v7528_v38  ;;  %v7533_v21 = vpop.permute.xlu2 %5435  ;;  %v5032_v5 = vunpack.i.l.bf16 %v10310_v41 }
 0x3b3   :  { %4205 = vmatpush.msra.mxu2 %v1393_v30  ;;  %10306 = vst [vmem:[#allocation5_spill] sm:$0xff] %v7531_v23  ;;  %v1208_v30 = vsel %vm107_vm12, %v10311_v16, %v5163_v53 }
 0x3b4   :  { %v1202_v8 = vsel %vm107_vm12, %v10312_v33, %v5032_v5  ;;  %v5679_v33 = vpack.i.bf16 %v6460_v1, %v6531_v11  ;;  %vm10091_vm12 = vcmask 424960  }
 0x3b5   :  { %4206 = vmatpush.msra.mxu2 %v1387_v18  ;;  %v10314_v18 = vld [vmem:[#allocation16_spill] sm:$0xff] }
 0x3b6   :  { %4105 = vmatmul.f32.gmra.mxu2 %v7021_v51  ;;  %v5027_v47 = vunpack.i.l.bf16 %v10314_v18 }
 0x3b7   :  { %4207 = vmatpush.msra.mxu2 %v1300_v43  ;;  %5635 = vrot.lane.b32.xlu1 %v6843_v56, %s5807_s18 }
 0x3b8   :  { %5600 = vrot.lane.b32.xlu0 %v6843_v56, %s5806_s17  ;;  %5610 = vrot.lane.b32.xlu2 %v6492_v39, %s5807_s18  ;;  %v10315_v56 = vunpack.i.l.bf16 %v7014_v20  ;;  %v10316_v39 = vunpack.i.h.bf16 %v6940_v4 }
 0x3b9   :  { %4208 = vmatpush.msra.mxu2 %v1294_v52  ;;  %v7557_v24 = vpop.permute.xlu1 %5430 }
 0x3ba   :  { %10313 = vst [vmem:[#allocation13_spill] sm:$0xff] %v7557_v24  ;;  %v7560_v22 = vpop.permute.xlu0 %5395  ;;  %v7562_v44 = vpop.permute.xlu2 %5450  ;;  %v1116_v10 = vsel %vm60_vm14, %v10315_v56, %v5153_v58  ;;  %v1110_v0 = vsel %vm60_vm14, %v10316_v39, %v5027_v47  ;;  %v10005_v16 = vunpack.i.l.bf16 %v7557_v24  ;;  %v10340_v24 = vld [vmem:[#allocation14_spill] sm:$0xff]  ;;  %vm3606_vm14 = vcmask 130048  }
 0x3bb   :  { %4209 = vmatpush.msra.mxu2 %v1208_v30  ;;  %v5452_v4 = vunpack.i.l.bf16 %v7562_v44 }
 0x3bd   :  { %4210 = vmatpush.msra.mxu2 %v1202_v8 }
 0x3be   :  { %4108 = vmatmul.f32.gmra.mxu2 %v7040_v49 }
 0x3bf   :  { %4211 = vmatpush.msra.mxu2 %v1116_v10  ;;  %5650 = vrot.lane.b32.xlu1 %v6464_v19, %s5808_s19 }
 0x3c0   :  { %5615 = vrot.lane.b32.xlu0 %v6778_v7, %s5807_s18  ;;  %5625 = vrot.lane.b32.xlu2 %v6537_v26, %s5807_s18  ;;  %v10319_v26 = vld [vmem:[#allocation17_spill] sm:$0xff] }
 0x3c1   :  { %4212 = vmatpush.msra.mxu2 %v1110_v0  ;;  %v7578_v20 = vpop.permute.xlu1 %5445  ;;  %v5639_v25 = vpack.i.bf16 %v6513_v40, %v10319_v26 }
 0x3c2   :  { %v10008_v53 = vunpack.i.h.bf16 %v7578_v20  ;;  %v7584_v37 = vpop.permute.xlu0 %5410  ;;  %v7586_v43 = vpop.permute.xlu2 %5465  ;;  %v10007_v10 = vunpack.i.l.bf16 %v7578_v20 }
 0x3c3   :  { %4213 = vmatpush.msra.mxu2 %v6829_v35  ;;  %10317 = vst [vmem:[#allocation12_spill] sm:$0xff] %v7586_v43  ;;  %v10006_v41 = vunpack.i.l.bf16 %v7586_v43  ;;  %v10045_v43 = vunpack.i.h.bf16 %v10340_v24 }
 0x3c4   :  { %v7591_v7 = vsel %vm577_vm3, %v10008_v53, %v5452_v4  ;;  %v5402_v53 = vunpack.i.l.bf16 %v7499_v29 }
 0x3c5   :  { %4214 = vmatpush.msra.mxu2 %v6773_v48  ;;  %10318 = vst [vmem:[#allocation8_spill] sm:$0xff] %v7591_v7 }
 0x3c6   :  { %4215 = vmatmul.f32.vlgmr.msra.gmra.mxu2 %v6973_v13 }
 0x3c7   :  { %5665 = vrot.lane.b32.xlu1 %v6464_v19, %s5809_s20 }
 0x3c8   :  { %5630 = vrot.lane.b32.xlu0 %v6882_v45, %s5807_s18  ;;  %5640 = vrot.lane.b32.xlu2 %v5639_v25, %s5810_s21 }
 0x3c9   :  { %v7600_v52 = vpop.permute.xlu1 %5460 }
 0x3ca   :  { %v10009_v5 = vunpack.i.h.bf16 %v7600_v52  ;;  %v7605_v58 = vpop.permute.xlu0 %5425  ;;  %v7610_v45 = vpop.permute.xlu2 %5480 }
 0x3cb   :  { %v5428_v40 = vunpack.i.h.bf16 %v7605_v58  ;;  %v10012_v30 = vunpack.i.l.bf16 %v7605_v58  ;;  %10320 = vst [vmem:[#allocation15_spill] sm:$0xff] %v7610_v45  ;;  %v10003_v1 = vunpack.i.l.bf16 %v7610_v45 }
 0x3cc   :  { %v7617_v13 = vsel %vm577_vm3, %v10009_v5, %v10006_v41  ;;  %v10016_v5 = vunpack.i.l.bf16 %v7504_v62 }
 0x3cd   :  { %v7624_v8 = vsel %vm2303_vm8, %v10012_v30, %v5428_v40  ;;  %v7629_v18 = vsel %vm2303_vm8, %v5428_v40, %v10005_v16 }
 0x3ce   :  { %4218 = vmatmul.f32.gmra.mxu2 %v7003_v57  ;;  %v7656_v57 = vpack.i.bf16 %v6487_v14, %v6865_v60 }
 0x3cf   :  { %5680 = vrot.lane.b32.xlu1 %v5679_v33, %s5810_s21  ;;  %v10014_v33 = vunpack.i.h.bf16 %v7533_v21 }
 0x3d0   :  { %5645 = vrot.lane.b32.xlu0 %v7426_v46, %s5808_s19  ;;  %5655 = vrot.lane.b32.xlu2 %v7426_v46, %s5809_s20 }
 0x3d1   :  { %v7636_v47 = vpop.permute.xlu1 %5475 }
 0x3d2   :  { %10321 = vst [vmem:[#allocation16_spill] sm:$0xff] %v7636_v47  ;;  %v10004_v11 = vunpack.i.h.bf16 %v7636_v47  ;;  %v7641_v56 = vpop.permute.xlu0 %5440  ;;  %v7645_v0 = vpop.permute.xlu2 %5495 }
 0x3d3   :  { %v10013_v39 = vunpack.i.h.bf16 %v7641_v56  ;;  %10322 = vst [vmem:[#allocation17_spill] sm:$0xff] %v7645_v0  ;;  %v10010_v14 = vunpack.i.l.bf16 %v7645_v0 }
 0x3d4   :  { %v7652_v4 = vsel %vm10093_vm2, %v10004_v11, %v10003_v1  ;;  %v5437_v1 = vunpack.i.l.bf16 %v7533_v21  ;;  %v5453_v11 = vunpack.i.h.bf16 %v7562_v44  ;;  %v5709_v44 = vpack.i.bf16 %v6483_v2, %v6533_v6 }
 0x3d5   :  { %10323 = vst [vmem:[#allocation43_spill] sm:$0xff] %v7652_v4  ;;  %v7663_v26 = vsel %vm577_vm3, %v10013_v39, %v10007_v10  ;;  %v10019_v10 = vunpack.i.h.bf16 %v7499_v29  ;;  %v5367_v39 = vunpack.i.l.bf16 %v7502_v15  ;;  %v10029_v4 = vunpack.i.h.bf16 %v7610_v45 }
 0x3d6   :  { %4221 = vmatmul.f32.gmra.mxu2 %v7021_v51  ;;  %v5418_v51 = vunpack.i.h.bf16 %v7528_v38 }
 0x3d7   :  { %5695 = vrot.lane.b32.xlu1 %v7656_v57, %s5808_s19 }
 0x3d8   :  { %5660 = vrot.lane.b32.xlu0 %v7426_v46, %s5811_s7  ;;  %5670 = vrot.lane.b32.xlu2 %v6464_v19, %s5811_s7  ;;  %v2310_v6 = vsel %vm2303_vm8, %v5418_v51, %v10016_v5 }
 0x3d9   :  { %v7671_v25 = vpop.permute.xlu1 %5490 }
 0x3da   :  { %v10011_v60 = vunpack.i.h.bf16 %v7671_v25  ;;  %v7676_v40 = vpop.permute.xlu0 %5455  ;;  %v7682_v16 = vpop.permute.xlu2 %5510 }
 0x3db   :  { %v10015_v46 = vunpack.i.l.bf16 %v7676_v40  ;;  %10324 = vst [vmem:[#allocation44_spill] sm:$0xff] %v7682_v16 }
 0x3dc   :  { %v7689_v19 = vsel %vm10093_vm2, %v10011_v60, %v10010_v14  ;;  %v2396_v14 = vsel %vm577_vm3, %v5437_v1, %v10014_v33  ;;  %v10017_v1 = vunpack.i.l.bf16 %v7682_v16  ;;  %v10020_v33 = vunpack.i.l.bf16 %v7636_v47 }
 0x3dd   :  { %10325 = vst [vmem:[#allocation45_spill] sm:$0xff] %v7689_v19  ;;  %v2402_v41 = vsel %vm577_vm3, %v5453_v11, %v10015_v46  ;;  %v5383_v11 = vunpack.i.h.bf16 %v7531_v23  ;;  %v7740_v46 = vpack.i.bf16 %v6771_v32, %v6867_v34  ;;  %v10328_v32 = vunpack.i.h.bf16 %v7502_v15 }
 0x3de   :  { %3648 = vmatpush.msrb.mxu3 %v2402_v41  ;;  %4224 = vmatmul.f32.gmra.mxu2 %v7040_v49  ;;  %v10021_v41 = vunpack.i.l.bf16 %v7470_v59  ;;  %v2304_v49 = vsel %vm2303_vm8, %v5402_v53, %v10019_v10  ;;  %v5348_v10 = vunpack.i.h.bf16 %v7329_v9  ;;  %v10030_v47 = vunpack.i.l.bf16 %v7671_v25 }
 0x3df   :  { %5710 = vrot.lane.b32.xlu1 %v5709_v44, %s5809_s20  ;;  %v2211_v34 = vsel %vm530_vm4, %v5367_v39, %v10328_v32  ;;  %v10031_v39 = vunpack.i.l.bf16 %v7259_v12 }
 0x3e0   :  { %5675 = vrot.lane.b32.xlu0 %v5709_v44, %s5808_s19  ;;  %3649 = vmatpush.msrb.mxu3 %v2396_v14  ;;  %v2217_v60 = vsel %vm530_vm4, %v5383_v11, %v10021_v41 }
 0x3e1   :  { %5685 = vrot.lane.b32.xlu2 %v5709_v44, %s5811_s7  ;;  %v7707_v2 = vpop.permute.xlu1 %5505 }
 0x3e2   :  { %v10018_v14 = vunpack.i.h.bf16 %v7707_v2  ;;  %v7717_v30 = vpop.permute.xlu0 %5470  ;;  %3650 = vmatpush.msrb.mxu3 %v2310_v6  ;;  %v7722_v51 = vpop.permute.xlu2 %5525  ;;  %v10028_v6 = vunpack.i.l.bf16 %v7472_v27 }
 0x3e3   :  { %v10326_v53 = vunpack.i.h.bf16 %v7717_v30 }
 0x3e4   :  { %3651 = vmatpush.msrb.mxu3 %v2304_v49  ;;  %v7732_v5 = vsel %vm671_vm1, %v10018_v14, %v10017_v1  ;;  %v10026_v1 = vunpack.i.h.bf16 %v7297_v55  ;;  %v5332_v14 = vunpack.i.l.bf16 %v7297_v55  ;;  %v2125_v41 = vsel %vm483_vm5, %v5348_v10, %v10028_v6 }
 0x3e5   :  { %v7747_v49 = vsel %vm10093_vm2, %v10326_v53, %v10020_v33  ;;  %v5297_v53 = vunpack.i.l.bf16 %v7255_v54  ;;  %v5313_v33 = vunpack.i.h.bf16 %v7293_v63  ;;  %v7780_v10 = vpack.i.bf16 %v6773_v48, %v6829_v35 }
 0x3e6   :  { %10327 = vst [vmem:[#allocation46_spill] sm:$0xff] %v7747_v49  ;;  %3652 = vmatpush.msrb.mxu3 %v2217_v60  ;;  %v2119_v11 = vsel %vm483_vm5, %v5332_v14, %v10026_v1  ;;  %v5278_v14 = vunpack.i.h.bf16 %v7295_v36  ;;  %v5262_v6 = vunpack.i.l.bf16 %v7257_v28  ;;  %v10335_v36 = vunpack.i.h.bf16 %v7257_v28 }
 0x3e7   :  { %5725 = vrot.lane.b32.xlu1 %v7740_v46, %s5810_s21  ;;  %v2033_v1 = vsel %vm436_vm6, %v5313_v33, %v10031_v39  ;;  %v10330_v33 = vunpack.i.h.bf16 %v7255_v54  ;;  %v10337_v39 = vld [vmem:[#allocation7_spill] sm:$0xff] }
 0x3e8   :  { %5690 = vrot.lane.b32.xlu0 %v5709_v44, %s5810_s21  ;;  %3653 = vmatpush.msrb.mxu3 %v2211_v34  ;;  %v10027_v44 = vunpack.i.l.bf16 %v7722_v51  ;;  %v1935_v23 = vsel %vm389_vm7, %v5262_v6, %v10335_v36  ;;  %v10044_v38 = vunpack.i.l.bf16 %v10337_v39  ;;  %v4982_v36 = vunpack.i.l.bf16 %v10340_v24 }
 0x3e9   :  { %5700 = vrot.lane.b32.xlu2 %v7656_v57, %s5811_s7  ;;  %v7763_v60 = vpop.permute.xlu1 %5520 }
 0x3ea   :  { %v5523_v32 = vunpack.i.h.bf16 %v7763_v60  ;;  %v5486_v34 = vpop.permute.xlu0 %5485  ;;  %3654 = vmatpush.msrb.mxu3 %v2125_v41  ;;  %v7776_v9 = vpop.permute.xlu2 %5540 }
 0x3eb   :  { %v5488_v19 = vunpack.i.h.bf16 %v5486_v34  ;;  %v5487_v63 = vunpack.i.l.bf16 %v5486_v34 }
 0x3ec   :  { %3655 = vmatpush.msrb.mxu3 %v2119_v11  ;;  %v7785_v41 = vsel %vm671_vm1, %v5523_v32, %v10027_v44  ;;  %v10036_v32 = vunpack.i.l.bf16 %v7219_v31 }
 0x3ed   :  { %v7794_v34 = vsel %vm10093_vm2, %v5488_v19, %v10030_v47  ;;  %v7799_v11 = vsel %vm10093_vm2, %v10029_v4, %v5487_v63  ;;  %v2027_v19 = vsel %vm436_vm6, %v5297_v53, %v10330_v33  ;;  %v10332_v47 = vld [vmem:[#allocation19_spill] sm:$0xff]  ;;  %v10333_v53 = vld [vmem:[#allocation21_spill] sm:$0xff] }
 0x3ee   :  { %10329 = vst [vmem:[#allocation47_spill] sm:$0xff] %v7799_v11  ;;  %3656 = vmatpush.msrb.mxu3 %v2033_v1  ;;  %v1941_v4 = vsel %vm389_vm7, %v5278_v14, %v10036_v32  ;;  %v5227_v44 = vunpack.i.l.bf16 %v10332_v47  ;;  %v5243_v33 = vunpack.i.h.bf16 %v10333_v53  ;;  %v10336_v14 = vld [vmem:[#allocation10_spill] sm:$0xff]  ;;  %v10338_v53 = vunpack.i.l.bf16 %v7221_v3 }
 0x3ef   :  { %5740 = vrot.lane.b32.xlu1 %v7780_v10, %s5811_s7  ;;  %v5063_v32 = vunpack.i.h.bf16 %v10336_v14 }
 0x3f0   :  { %5705 = vrot.lane.b32.xlu0 %v7656_v57, %s5810_s21  ;;  %3657 = vmatpush.msrb.mxu3 %v2027_v19  ;;  %v10043_v19 = vunpack.i.h.bf16 %v7645_v0 }
 0x3f1   :  { %5715 = vrot.lane.b32.xlu2 %v7740_v46, %s5808_s19  ;;  %v7814_v1 = vpop.permute.xlu1 %5535 }
 0x3f2   :  { %10331 = vst [vmem:[#allocation48_spill] sm:$0xff] %v7814_v1  ;;  %v7822_v11 = vpop.permute.xlu0 %5500  ;;  %3658 = vmatpush.msrb.mxu3 %v1941_v4  ;;  %v7826_v45 = vpop.permute.xlu2 %5555  ;;  %v1849_v4 = vsel %vm1842_vm10, %v5243_v33, %v10338_v53  ;;  %v10049_v53 = vunpack.i.h.bf16 %v7676_v40 }
 0x3f3   :  { %10334 = vst [vmem:[#allocation19_spill] sm:$0xff] %v7822_v11  ;;  %v10042_v63 = vunpack.i.l.bf16 %v7822_v11 }
 0x3f4   :  { %3659 = vmatpush.msrb.mxu3 %v1935_v23  ;;  %v10341_v23 = vunpack.i.h.bf16 %v10332_v47 }
 0x3f5   :  { %v7841_v7 = vsel %vm10093_vm2, %v10043_v19, %v10042_v63  ;;  %vm2950_vm2 = vcmask 449536  }
 0x3f6   :  { %10339 = vst [vmem:[#allocation7_spill] sm:$0xff] %v7841_v7  ;;  %3660 = vmatpush.msrb.mxu3 %v1849_v4  ;;  %v1843_v6 = vsel %vm1842_vm10, %v5227_v44, %v10341_v23  ;;  %v1756_v4 = vsel %vm342_vm9, %v5063_v32, %v10044_v38  ;;  %v1750_v44 = vsel %vm342_vm9, %v4982_v36, %v10045_v43  ;;  %v7869_v23 = vld [vmem:[%s9898_s2 + $0x8] sm:$0xff]  ;;  %v10344_v43 = vunpack.i.l.bf16 %v7676_v40 }
 0x3f7   :  { %5755 = vrot.lane.b32.xlu1 %v10292_v61, %s5808_s19  ;;  %v10350_v36 = vunpack.i.h.bf16 %v7533_v21 }
 0x3f8   :  { %5720 = vrot.lane.b32.xlu0 %v7740_v46, %s5811_s7  ;;  %3661 = vmatpush.msrb.mxu3 %v1843_v6  ;;  %v5522_v6 = vunpack.i.l.bf16 %v7763_v60  ;;  %v10345_v60 = vunpack.i.h.bf16 %v7682_v16 }
 0x3f9   :  { %5730 = vrot.lane.b32.xlu2 %v7656_v57, %s5809_s20  ;;  %v7855_v33 = vpop.permute.xlu1 %5550  ;;  %v2403_v57 = vsel %vm577_vm3, %v10344_v43, %v10049_v53  ;;  %v10050_v43 = vunpack.i.l.bf16 %v7474_v42  ;;  %v10357_v53 = vunpack.i.l.bf16 %v7470_v59 }
 0x3fa   :  { %10342 = vst [vmem:[#allocation14_spill] sm:$0xff] %v7855_v33  ;;  %v7861_v19 = vpop.permute.xlu0 %5515  ;;  %3662 = vmatpush.msrb.mxu3 %v1756_v4  ;;  %v2671_v63 = vpop.permute.xlu2 %2670  ;;  %v5769_v4 = vpack.i.bf16 %v6829_v35, %v6773_v48  ;;  %v10349_v35 = vunpack.i.l.bf16 %v7641_v56 }
 0x3fb   :  { %10343 = vst [vmem:[#allocation49_spill] sm:$0xff] %v7861_v19  ;;  %v10048_v38 = vunpack.i.l.bf16 %v7861_v19 }
 0x3fc   :  { %3663 = vmatpush.msrb.mxu3 %v1750_v44  ;;  %v10347_v44 = vunpack.i.h.bf16 %v7861_v19  ;;  %v2397_v11 = vsel %vm577_vm3, %v10350_v36, %v10349_v35  ;;  %v10377_v19 = vunpack.i.h.bf16 %v7776_v9 }
 0x3fd   :  { %3664 = vmatmul.f32.vlgmr.msrb.gmra.mxu3 %v7869_v23  ;;  %v7889_v32 = vsel %vm671_vm1, %v10345_v60, %v10048_v38  ;;  %v10052_v60 = vunpack.i.h.bf16 %v7470_v59 }
 0x3fe   :  { %10346 = vst [vmem:[#allocation50_spill] sm:$0xff] %v7889_v32  ;;  %v7894_v48 = vsel %vm671_vm1, %v10347_v44, %v5522_v6  ;;  %3764 = vmatpush.msra.mxu3 %v2403_v57  ;;  %v10351_v57 = vunpack.i.h.bf16 %v7504_v62  ;;  %v10352_v6 = vunpack.i.l.bf16 %v7504_v62 }
 0x3ff   :  { %10348 = vst [vmem:[#allocation51_spill] sm:$0xff] %v7894_v48  ;;  %5770 = vrot.lane.b32.xlu1 %v5769_v4, %s5809_s20 }
 0x400   :  { %3765 = vmatpush.msra.mxu3 %v2397_v11  ;;  %5735 = vrot.lane.b32.xlu0 %v7780_v10, %s5808_s19  ;;  %v2311_v21 = vsel %vm2303_vm8, %v10352_v6, %v10351_v57  ;;  %v7928_v57 = vld [vmem:[%s9898_s2 + $0x28] sm:$0xff]  ;;  %v2218_v6 = vsel %vm530_vm4, %v10357_v53, %v10052_v60  ;;  %v10358_v11 = vunpack.i.h.bf16 %v7722_v51  ;;  %v10365_v60 = vunpack.i.l.bf16 %v7438_v50 }
 0x401   :  { %5745 = vrot.lane.b32.xlu2 %v7780_v10, %s5810_s21  ;;  %v7913_v36 = vpop.permute.xlu1 %5565  ;;  %v10355_v10 = vunpack.i.h.bf16 %v7499_v29 }
 0x402   :  { %10353 = vst [vmem:[#allocation52_spill] sm:$0xff] %v7913_v36  ;;  %3766 = vmatpush.msra.mxu3 %v2311_v21  ;;  %v10051_v44 = vunpack.i.h.bf16 %v7913_v36  ;;  %v7918_v35 = vpop.permute.xlu0 %5530  ;;  %v7933_v4 = vpop.permute.xlu2 %5580 }
 0x403   :  { %10354 = vst [vmem:[#allocation53_spill] sm:$0xff] %v7918_v35  ;;  %v2305_v38 = vsel %vm2303_vm8, %v10355_v10, %v10050_v43  ;;  %v10053_v21 = vunpack.i.l.bf16 %v7918_v35  ;;  %v5582_v10 = vunpack.i.l.bf16 %v7933_v4 }
 0x404   :  { %3767 = vmatpush.msra.mxu3 %v2305_v38  ;;  %v7941_v43 = vsel %vm718_vm0, %v10051_v44, %v2671_v63  ;;  %v10360_v38 = vunpack.i.l.bf16 %v7814_v1  ;;  %v10361_v63 = vunpack.i.h.bf16 %v7918_v35  ;;  %v10372_v1 = vunpack.i.h.bf16 %v7297_v55 }
 0x405   :  { %10356 = vst [vmem:[#allocation54_spill] sm:$0xff] %v7941_v43  ;;  %3667 = vmatmul.f32.gmra.mxu3 %v7928_v57  ;;  %v7954_v29 = vsel %vm671_vm1, %v10358_v11, %v10053_v21  ;;  %v10363_v43 = vunpack.i.h.bf16 %v7933_v4  ;;  %v10366_v11 = vunpack.i.h.bf16 %v7502_v15  ;;  %v10375_v15 = vunpack.i.h.bf16 %v7259_v12 }
 0x406   :  { %10359 = vst [vmem:[#allocation55_spill] sm:$0xff] %v7954_v29  ;;  %v7961_v44 = vsel %vm671_vm1, %v10361_v63, %v10360_v38  ;;  %3768 = vmatpush.msra.mxu3 %v2218_v6  ;;  %v10367_v6 = vunpack.i.h.bf16 %v7472_v27  ;;  %v10371_v38 = vunpack.i.l.bf16 %v7441_v17  ;;  %v10396_v35 = vunpack.i.h.bf16 %v7826_v45 }
 0x407   :  { %10362 = vst [vmem:[#allocation56_spill] sm:$0xff] %v7961_v44  ;;  %v7967_v53 = vsel %vm10108_vm11, %v5582_v10, %v10363_v43  ;;  %v2212_v21 = vsel %vm530_vm4, %v10366_v11, %v10365_v60  ;;  %v10368_v43 = vunpack.i.l.bf16 %v7472_v27  ;;  %v10369_v60 = vld [vmem:[#allocation30_spill] sm:$0xff] }
 0x408   :  { %10364 = vst [vmem:[#allocation57_spill] sm:$0xff] %v7967_v53  ;;  %3769 = vmatpush.msra.mxu3 %v2212_v21  ;;  %5750 = vrot.lane.b32.xlu0 %v7740_v46, %s5809_s20  ;;  %v2120_v7 = vsel %vm483_vm5, %v10372_v1, %v10371_v38 }
 0x409   :  { %5760 = vrot.lane.b32.xlu2 %v10292_v61, %s5811_s7  ;;  %v2126_v63 = vsel %vm483_vm5, %v10368_v43, %v10367_v6  ;;  %v7984_v48 = vpop.permute.xlu1 %5575  ;;  %v7999_v6 = vld [vmem:[%s9898_s2 + $0x48] sm:$0xff] }
 0x40a   :  { %3770 = vmatpush.msra.mxu3 %v2126_v63  ;;  %v7989_v11 = vpop.permute.xlu0 %5545  ;;  %v8005_v46 = vpop.permute.xlu2 %5595  ;;  %v10373_v1 = vunpack.i.h.bf16 %v7984_v48  ;;  %v10376_v63 = vunpack.i.l.bf16 %v7259_v12 }
 0x40b   :  { %10370 = vst [vmem:[#allocation30_spill] sm:$0xff] %v7989_v11  ;;  %v10060_v21 = vunpack.i.l.bf16 %v7989_v11  ;;  %v5597_v55 = vunpack.i.l.bf16 %v8005_v46  ;;  %v10382_v53 = vunpack.i.h.bf16 %v8005_v46 }
 0x40c   :  { %3771 = vmatpush.msra.mxu3 %v2120_v7  ;;  %v8012_v38 = vsel %vm10108_vm11, %v10373_v1, %v5582_v10  ;;  %v2034_v43 = vsel %vm436_vm6, %v10376_v63, %v10375_v15  ;;  %v10379_v7 = vunpack.i.l.bf16 %v7855_v33  ;;  %v10380_v10 = vunpack.i.h.bf16 %v7989_v11  ;;  %v10400_v11 = vld [vmem:[#allocation11_spill] sm:$0xff] }
 0x40d   :  { %10374 = vst [vmem:[#allocation58_spill] sm:$0xff] %v8012_v38  ;;  %3670 = vmatmul.f32.gmra.mxu3 %v7999_v6  ;;  %v8025_v44 = vsel %vm718_vm0, %v10377_v19, %v10060_v21  ;;  %v8037_v0 = vsel %vm10108_vm11, %v5597_v55, %v10382_v53  ;;  %v10384_v15 = vunpack.i.l.bf16 %v10369_v60  ;;  %v10385_v63 = vunpack.i.h.bf16 %v7255_v54  ;;  %v10386_v21 = vld [vmem:[#allocation27_spill] sm:$0xff]  ;;  %v10389_v54 = vld [vmem:[#allocation28_spill] sm:$0xff] }
 0x40e   :  { %10378 = vst [vmem:[#allocation59_spill] sm:$0xff] %v8025_v44  ;;  %v8032_v1 = vsel %vm718_vm0, %v10380_v10, %v10379_v7  ;;  %3772 = vmatpush.msra.mxu3 %v2034_v43  ;;  %v10063_v32 = vunpack.i.l.bf16 %v10386_v21  ;;  %v10387_v43 = vunpack.i.h.bf16 %v7219_v31  ;;  %v10388_v10 = vunpack.i.l.bf16 %v7219_v31 }
 0x40f   :  { %10381 = vst [vmem:[#allocation60_spill] sm:$0xff] %v8032_v1  ;;  %v2028_v19 = vsel %vm436_vm6, %v10385_v63, %v10384_v15  ;;  %v10391_v7 = vunpack.i.h.bf16 %v7257_v28  ;;  %v10072_v38 = vunpack.i.l.bf16 %v10400_v11 }
 0x410   :  { %10383 = vst [vmem:[#allocation61_spill] sm:$0xff] %v8037_v0  ;;  %3773 = vmatpush.msra.mxu3 %v2028_v19  ;;  %5765 = vrot.lane.b32.xlu0 %v10292_v61, %s5810_s21  ;;  %v1942_v53 = vsel %vm389_vm7, %v10388_v10, %v10387_v43  ;;  %v8069_v43 = vld [vmem:[%s9898_s2 + $0x68] sm:$0xff]  ;;  %v10395_v10 = vunpack.i.l.bf16 %v7221_v3  ;;  %v10401_v0 = vunpack.i.l.bf16 %v10389_v54 }
 0x411   :  { %v8053_v33 = vpop.permute.xlu1 %5590  ;;  %5775 = vrot.lane.b32.xlu2 %v10292_v61, %s5809_s20  ;;  %v1936_v1 = vsel %vm389_vm7, %v10391_v7, %v10063_v32  ;;  %v10394_v61 = vunpack.i.h.bf16 %v7221_v3 }
 0x412   :  { %3774 = vmatpush.msra.mxu3 %v1942_v53  ;;  %v8059_v19 = vpop.permute.xlu0 %5560  ;;  %v8075_v63 = vpop.permute.xlu2 %5610  ;;  %v10392_v28 = vunpack.i.h.bf16 %v8053_v33 }
 0x413   :  { %10390 = vst [vmem:[#allocation27_spill] sm:$0xff] %v8059_v19  ;;  %v10068_v15 = vunpack.i.l.bf16 %v8059_v19  ;;  %v1850_v53 = vsel %vm1842_vm10, %v10395_v10, %v10394_v61  ;;  %v10402_v61 = vunpack.i.h.bf16 %v10332_v47  ;;  %v10405_v47 = vunpack.i.h.bf16 %v10340_v24 }
 0x414   :  { %3775 = vmatpush.msra.mxu3 %v1936_v1  ;;  %v8080_v7 = vsel %vm10108_vm11, %v10392_v28, %v5597_v55  ;;  %v10397_v55 = vunpack.i.l.bf16 %v7913_v36  ;;  %v10398_v28 = vunpack.i.h.bf16 %v8059_v19  ;;  %v10431_v19 = vld [vmem:[#allocation29_spill] sm:$0xff] }
 0x415   :  { %10393 = vst [vmem:[#allocation28_spill] sm:$0xff] %v8080_v7  ;;  %3673 = vmatmul.f32.gmra.mxu3 %v8069_v43  ;;  %v8094_v1 = vsel %vm718_vm0, %v10396_v35, %v10068_v15  ;;  %v1844_v10 = vsel %vm1842_vm10, %v10402_v61, %v10401_v0  ;;  %v10403_v35 = vunpack.i.h.bf16 %v10337_v39  ;;  %v10404_v15 = vunpack.i.l.bf16 %v10337_v39 }
 0x416   :  { %v8101_v32 = vsel %vm718_vm0, %v10398_v28, %v10397_v55  ;;  %3776 = vmatpush.msra.mxu3 %v1850_v53  ;;  %v10071_v55 = vunpack.i.l.bf16 %v7600_v52  ;;  %v1751_v0 = vsel %vm342_vm9, %v10405_v47, %v10072_v38  ;;  %v10409_v47 = vunpack.i.l.bf16 %v7605_v58 }
 0x417   :  { %10399 = vst [vmem:[#allocation62_spill] sm:$0xff] %v8101_v32  ;;  %v1757_v36 = vsel %vm342_vm9, %v10404_v15, %v10403_v35  ;;  %v10406_v15 = vunpack.i.h.bf16 %v7676_v40  ;;  %v10408_v35 = vunpack.i.l.bf16 %v7641_v56 }
 0x418   :  { %3777 = vmatpush.msra.mxu3 %v1844_v10  ;;  %v10407_v10 = vunpack.i.h.bf16 %v7641_v56  ;;  %v10412_v56 = vunpack.i.h.bf16 %v7474_v42 }
 0x419   :  { %v8114_v14 = vpop.permute.xlu1 %5605  ;;  %v2404_v61 = vsel %vm577_vm3, %v10406_v15, %v10071_v55  ;;  %v10411_v55 = vld [vmem:[#allocation42_spill] sm:$0xff] }
 0x41a   :  { %3778 = vmatpush.msra.mxu3 %v1757_v36  ;;  %v8117_v53 = vpop.permute.xlu0 %5570  ;;  %v8119_v28 = vpop.permute.xlu2 %5625  ;;  %v2398_v24 = vsel %vm577_vm3, %v10408_v35, %v10407_v10  ;;  %v10073_v38 = vunpack.i.l.bf16 %v10411_v55  ;;  %v10413_v10 = vunpack.i.l.bf16 %v7474_v42 }
 0x41c   :  { %3779 = vmatpush.msra.mxu3 %v1751_v0  ;;  %v10410_v0 = vunpack.i.h.bf16 %v7504_v62  ;;  %v2306_v35 = vsel %vm2303_vm8, %v10413_v10, %v10412_v56  ;;  %v10418_v10 = vunpack.i.h.bf16 %v7438_v50 }
 0x41d   :  { %3780 = vmatmul.f32.vlgmr.msra.gmra.mxu3 %v7869_v23 }
 0x41e   :  { %3880 = vmatpush.msrb.mxu3 %v2404_v61  ;;  %v2312_v40 = vsel %vm2303_vm8, %v10410_v0, %v10409_v47  ;;  %v10415_v0 = vunpack.i.h.bf16 %v7933_v4  ;;  %v10417_v61 = vld [vmem:[#allocation39_spill] sm:$0xff]  ;;  %v10421_v4 = vunpack.i.h.bf16 %v7472_v27 }
 0x41f   :  { %v10076_v32 = vunpack.i.l.bf16 %v10417_v61  ;;  %v10468_v7 = vunpack.i.l.bf16 %v10417_v61 }
 0x420   :  { %3881 = vmatpush.msrb.mxu3 %v2398_v24  ;;  %v10414_v24 = vunpack.i.h.bf16 %v7470_v59 }
 0x421   :  { %v8143_v15 = vpop.permute.xlu1 %5620 }
 0x422   :  { %3882 = vmatpush.msrb.mxu3 %v2312_v40  ;;  %v8147_v36 = vpop.permute.xlu0 %5585  ;;  %v8155_v62 = vpop.permute.xlu2 %5640  ;;  %v2219_v47 = vsel %vm530_vm4, %v10414_v24, %v10073_v38  ;;  %v10420_v24 = vld [vmem:[#allocation40_spill] sm:$0xff]  ;;  %v10425_v38 = vunpack.i.h.bf16 %v7259_v12  ;;  %v10079_v12 = vunpack.i.l.bf16 %v10431_v19 }
 0x423   :  { %v5587_v58 = vunpack.i.l.bf16 %v8147_v36 }
 0x424   :  { %3883 = vmatpush.msrb.mxu3 %v2306_v35  ;;  %v10419_v35 = vunpack.i.l.bf16 %v7438_v50 }
 0x425   :  { %v8165_v40 = vsel %vm10108_vm11, %v10415_v0, %v5587_v58  ;;  %3783 = vmatmul.f32.gmra.mxu3 %v7928_v57  ;;  %v2127_v58 = vsel %vm483_vm5, %v10421_v4, %v10076_v32  ;;  %v10424_v32 = vunpack.i.l.bf16 %v10420_v24 }
 0x426   :  { %3884 = vmatpush.msrb.mxu3 %v2219_v47  ;;  %10416 = vst [vmem:[#allocation11_spill] sm:$0xff] %v8165_v40  ;;  %v2213_v59 = vsel %vm530_vm4, %v10419_v35, %v10418_v10  ;;  %v10422_v10 = vunpack.i.h.bf16 %v7441_v17  ;;  %v10423_v35 = vunpack.i.l.bf16 %v7441_v17 }
 0x427   :  { %v2035_v40 = vsel %vm436_vm6, %v10425_v38, %v10424_v32  ;;  %v10433_v38 = vunpack.i.h.bf16 %v10369_v60 }
 0x428   :  { %3885 = vmatpush.msrb.mxu3 %v2213_v59  ;;  %v2121_v59 = vsel %vm483_vm5, %v10423_v35, %v10422_v10 }
 0x429   :  { %v8181_v0 = vpop.permute.xlu1 %5635 }
 0x42a   :  { %3886 = vmatpush.msrb.mxu3 %v2127_v58  ;;  %v5638_v56 = vunpack.i.h.bf16 %v8181_v0  ;;  %v5601_v16 = vpop.permute.xlu0 %5600  ;;  %v8191_v29 = vpop.permute.xlu2 %5655  ;;  %v10426_v44 = vunpack.i.l.bf16 %v8181_v0 }
 0x42b   :  { %v5603_v47 = vunpack.i.h.bf16 %v5601_v16  ;;  %v5602_v27 = vunpack.i.l.bf16 %v5601_v16  ;;  %v5657_v58 = vunpack.i.l.bf16 %v8191_v29  ;;  %v10428_v16 = vunpack.i.h.bf16 %v8005_v46 }
 0x42c   :  { %3887 = vmatpush.msrb.mxu3 %v2121_v59  ;;  %v8203_v10 = vsel %vm10105_vm13, %v10426_v44, %v5638_v56  ;;  %v10432_v32 = vunpack.i.h.bf16 %v8191_v29  ;;  %v10434_v46 = vunpack.i.l.bf16 %v10369_v60  ;;  %v10435_v56 = vunpack.i.h.bf16 %v7219_v31 }
 0x42d   :  { %10427 = vst [vmem:[#allocation42_spill] sm:$0xff] %v8203_v10  ;;  %v8208_v35 = vsel %vm10108_vm11, %v10428_v16, %v5602_v27  ;;  %v8211_v59 = vsel %vm10108_vm11, %v5602_v27, %v5603_v47  ;;  %3786 = vmatmul.f32.gmra.mxu3 %v7999_v6  ;;  %v10436_v16 = vld [vmem:[#allocation24_spill] sm:$0xff]  ;;  %v5622_v31 = vunpack.i.l.bf16 %v8143_v15  ;;  %v10441_v10 = vunpack.i.h.bf16 %v7221_v3 }
 0x42e   :  { %3888 = vmatpush.msrb.mxu3 %v2035_v40  ;;  %10429 = vst [vmem:[#allocation39_spill] sm:$0xff] %v8208_v35  ;;  %v3236_v44 = vsel %vm10091_vm12, %v5657_v58, %v10432_v32  ;;  %v2029_v40 = vsel %vm436_vm6, %v10434_v46, %v10433_v38  ;;  %v1943_v47 = vsel %vm389_vm7, %v10435_v56, %v10079_v12  ;;  %v10438_v38 = vunpack.i.l.bf16 %v10386_v21  ;;  %v10439_v12 = vld [vmem:[#allocation25_spill] sm:$0xff] }
 0x42f   :  { %10430 = vst [vmem:[#allocation40_spill] sm:$0xff] %v8211_v59  ;;  %3720 = vmatpush.msra.mxu1 %v3236_v44  ;;  %v10437_v59 = vunpack.i.h.bf16 %v10386_v21  ;;  %v10080_v46 = vunpack.i.h.bf16 %v8075_v63  ;;  %v10081_v4 = vunpack.i.l.bf16 %v10439_v12  ;;  %v10440_v58 = vunpack.i.l.bf16 %v10436_v16 }
 0x430   :  { %3889 = vmatpush.msrb.mxu3 %v2029_v40  ;;  %v10445_v3 = vunpack.i.h.bf16 %v10389_v54  ;;  %v10487_v49 = vunpack.i.h.bf16 %v10436_v16 }
 0x431   :  { %v8229_v27 = vpop.permute.xlu1 %5650  ;;  %v1937_v44 = vsel %vm389_vm7, %v10438_v38, %v10437_v59  ;;  %v1851_v35 = vsel %vm1842_vm10, %v10441_v10, %v10440_v58  ;;  %v10446_v10 = vunpack.i.l.bf16 %v10389_v54  ;;  %v10447_v58 = vunpack.i.h.bf16 %v10337_v39 }
 0x432   :  { %3890 = vmatpush.msrb.mxu3 %v1943_v47  ;;  %v5616_v32 = vpop.permute.xlu0 %5615  ;;  %v8240_v47 = vpop.permute.xlu2 %5670  ;;  %v10451_v39 = vunpack.i.l.bf16 %v7600_v52 }
 0x433   :  { %v5618_v40 = vunpack.i.h.bf16 %v5616_v32  ;;  %v5617_v56 = vunpack.i.l.bf16 %v5616_v32 }
 0x434   :  { %3891 = vmatpush.msrb.mxu3 %v1937_v44 }
 0x435   :  { %v8251_v59 = vsel %vm10105_vm13, %v10080_v46, %v5617_v56  ;;  %v8254_v38 = vsel %vm10105_vm13, %v5617_v56, %v5618_v40  ;;  %v8257_v32 = vsel %vm10105_vm13, %v5618_v40, %v5622_v31  ;;  %3789 = vmatmul.f32.gmra.mxu3 %v8069_v43  ;;  %v1758_v56 = vsel %vm342_vm9, %v10447_v58, %v10081_v4 }
 0x436   :  { %3892 = vmatpush.msrb.mxu3 %v1851_v35  ;;  %10442 = vst [vmem:[#allocation29_spill] sm:$0xff] %v8251_v59  ;;  %v1845_v35 = vsel %vm1842_vm10, %v10446_v10, %v10445_v3  ;;  %v10450_v10 = vunpack.i.h.bf16 %v7600_v52  ;;  %v10082_v58 = vunpack.i.h.bf16 %v8119_v28  ;;  %v8291_v59 = vld [vmem:[%s9898_s2 + $0x18] sm:$0xff] }
 0x437   :  { %10443 = vst [vmem:[#allocation24_spill] sm:$0xff] %v8254_v38  ;;  %v10449_v38 = vunpack.i.l.bf16 %v10400_v11 }
 0x438   :  { %10444 = vst [vmem:[#allocation25_spill] sm:$0xff] %v8257_v32  ;;  %3893 = vmatpush.msrb.mxu3 %v1845_v35  ;;  %v10448_v32 = vunpack.i.h.bf16 %v10400_v11  ;;  %v2405_v35 = vsel %vm577_vm3, %v10451_v39, %v10450_v10  ;;  %v10083_v39 = vunpack.i.l.bf16 %v7584_v37 }
 0x439   :  { %v8271_v31 = vpop.permute.xlu1 %5665  ;;  %10452 = vst [vmem:[#allocation63_spill] sm:$0xff] %v8291_v59 }
 0x43a   :  { %3894 = vmatpush.msrb.mxu3 %v1758_v56  ;;  %v5667_v46 = vunpack.i.l.bf16 %v8271_v31  ;;  %v5631_v44 = vpop.permute.xlu0 %5630  ;;  %v1752_v3 = vsel %vm342_vm9, %v10449_v38, %v10448_v32  ;;  %v10453_v38 = vunpack.i.h.bf16 %v8271_v31 }
 0x43b   :  { %v5633_v56 = vunpack.i.h.bf16 %v5631_v44  ;;  %v5632_v4 = vunpack.i.l.bf16 %v5631_v44  ;;  %v8286_v40 = vpop.permute.xlu2 %5685 }
 0x43c   :  { %3895 = vmatpush.msrb.mxu3 %v1752_v3  ;;  %v3230_v52 = vsel %vm10091_vm12, %v5667_v46, %v10453_v38  ;;  %v10456_v3 = vunpack.i.l.bf16 %v8181_v0  ;;  %v10458_v0 = vunpack.i.h.bf16 %v7474_v42  ;;  %v10460_v46 = vld [vmem:[#allocation41_spill] sm:$0xff]  ;;  %v10461_v42 = vunpack.i.h.bf16 %v10411_v55 }
 0x43d   :  { %3721 = vmatpush.msra.mxu1 %v3230_v52  ;;  %v8299_v32 = vsel %vm10105_vm13, %v10082_v58, %v5632_v4  ;;  %v8302_v44 = vsel %vm10105_vm13, %v5632_v4, %v5633_v56  ;;  %3896 = vmatmul.f32.vlgmr.msrb.gmra.mxu3 %v7869_v23  ;;  %v5652_v52 = vunpack.i.l.bf16 %v8229_v27  ;;  %v10464_v58 = vunpack.i.h.bf16 %v7438_v50 }
 0x43e   :  { %3996 = vmatpush.msra.mxu3 %v2405_v35  ;;  %10454 = vst [vmem:[#allocation64_spill] sm:$0xff] %v8299_v32  ;;  %v8307_v10 = vsel %vm10105_vm13, %v5633_v56, %v10456_v3  ;;  %4660 = vmatmul.msk.f32.vlgmr.msra.gmra.mxu1 %vm3606_vm14, %v8291_v59  ;;  %v2307_v35 = vsel %vm2303_vm8, %v10458_v0, %v10083_v39  ;;  %v10462_v0 = vunpack.i.l.bf16 %v10411_v55  ;;  %v10474_v32 = vunpack.i.l.bf16 %v10420_v24 }
 0x43f   :  { %10455 = vst [vmem:[#allocation65_spill] sm:$0xff] %v8302_v44  ;;  %vm3043_vm12 = vcmask 441344  }
 0x440   :  { %10457 = vst [vmem:[#allocation66_spill] sm:$0xff] %v8307_v10  ;;  %3997 = vmatpush.msra.mxu3 %v7663_v26  ;;  %v10087_v10 = vunpack.i.l.bf16 %v10460_v46  ;;  %v2220_v39 = vsel %vm530_vm4, %v10462_v0, %v10461_v42  ;;  %v10465_v42 = vunpack.i.h.bf16 %v8229_v27 }
 0x441   :  { %v8316_v4 = vpop.permute.xlu1 %5680 }
 0x442   :  { %3998 = vmatpush.msra.mxu3 %v7624_v8  ;;  %v8323_v56 = vpop.permute.xlu0 %5645  ;;  %v2214_v44 = vsel %vm530_vm4, %v10464_v58, %v10087_v10  ;;  %v3137_v0 = vsel %vm3136_vm15, %v5652_v52, %v10465_v42  ;;  %v10471_v52 = vunpack.i.h.bf16 %v7441_v17  ;;  %v5812_v17 = vmov 0  }
 0x443   :  { %v10086_v26 = vunpack.i.h.bf16 %v8323_v56  ;;  %v5647_v3 = vunpack.i.l.bf16 %v8323_v56  ;;  %v8329_v8 = vpop.permute.xlu2 %5700  ;;  %5779 = vset.pattern.permute.xlu0 %v5812_v17  ;;  %5780 = vset.pattern.permute.xlu1 %v5812_v17 }
 0x444   :  { %3999 = vmatpush.msra.mxu3 %v2307_v35  ;;  %10459 = vst [vmem:[#allocation67_spill] sm:$0xff] %v8329_v8  ;;  %v8341_v35 = vld [vmem:[%s9898_s2 + $0x38] sm:$0xff]  ;;  %5781 = vset.pattern.permute.xlu2 %v5812_v17  ;;  %v10484_v8 = vunpack.i.h.bf16 %v10386_v21  ;;  %v10485_v21 = vunpack.i.h.bf16 %v8316_v4 }
 0x445   :  { %10463 = vst [vmem:[#allocation41_spill] sm:$0xff] %v8341_v35  ;;  %v3143_v38 = vsel %vm3136_vm15, %v5647_v3, %v10086_v26  ;;  %3899 = vmatmul.f32.gmra.mxu3 %v7928_v57  ;;  %v10467_v26 = vunpack.i.h.bf16 %v10417_v61  ;;  %v3582_v3 = vld [vmem:[%s9899_s3] sm:$0xff] }
 0x446   :  { %4000 = vmatpush.msra.mxu3 %v2220_v39  ;;  %3677 = vmatpush.msra.mxu0 %v3143_v38  ;;  %v10466_v39 = vld [vmem:[#allocation36_spill] sm:$0xff] }
 0x447   :  { %4661 = vmatmul.msk.f32.gmra.mxu1 %vm3606_vm14, %v8341_v35  ;;  %v10088_v59 = vunpack.i.l.bf16 %v10466_v39  ;;  %v2128_v50 = vsel %vm483_vm5, %v10468_v7, %v10467_v26  ;;  %v5672_v26 = vunpack.i.l.bf16 %v8240_v47  ;;  %3588 = vperm.xlu0 %5779, %v3582_v3   ;;  %v5643_v3 = vunpack.i.h.bf16 %v8155_v62 }
 0x448   :  { %4001 = vmatpush.msra.mxu3 %v2214_v44  ;;  %3678 = vmatpush.msra.mxu0 %v3137_v0  ;;  %v10470_v44 = vld [vmem:[#allocation37_spill] sm:$0xff]  ;;  %v5642_v7 = vunpack.i.l.bf16 %v8155_v62  ;;  %v5607_v62 = vunpack.i.l.bf16 %v8114_v14 }
 0x449   :  { %v8364_v58 = vpop.permute.xlu1 %5695  ;;  %v2122_v42 = vsel %vm483_vm5, %v10471_v52, %v10088_v59  ;;  %v10473_v59 = vunpack.i.h.bf16 %v10420_v24 }
 0x44a   :  { %4002 = vmatpush.msra.mxu3 %v2128_v50  ;;  %10469 = vst [vmem:[#allocation36_spill] sm:$0xff] %v8364_v58  ;;  %v8372_v10 = vpop.permute.xlu0 %5660  ;;  %v10489_v58 = vunpack.i.l.bf16 %v8119_v28 }
 0x44b   :  { %v10094_v0 = vunpack.i.h.bf16 %v8372_v10  ;;  %v5662_v50 = vunpack.i.l.bf16 %v8372_v10  ;;  %v8381_v38 = vpop.permute.xlu2 %5715  ;;  %v2036_v35 = vsel %vm436_vm6, %v10474_v32, %v10473_v59  ;;  %v10476_v59 = vunpack.i.l.bf16 %v10470_v44 }
 0x44c   :  { %4003 = vmatpush.msra.mxu3 %v2122_v42  ;;  %10472 = vst [vmem:[#allocation37_spill] sm:$0xff] %v8381_v38  ;;  %v8392_v42 = vld [vmem:[%s9898_s2 + $0x58] sm:$0xff]  ;;  %v10477_v32 = vunpack.i.h.bf16 %v10369_v60 }
 0x44d   :  { %10475 = vst [vmem:[#allocation68_spill] sm:$0xff] %v8392_v42  ;;  %v3050_v52 = vsel %vm3043_vm12, %v5662_v50, %v10094_v0  ;;  %3902 = vmatmul.f32.gmra.mxu3 %v7999_v6  ;;  %v10479_v0 = vld [vmem:[#allocation26_spill] sm:$0xff] }
 0x44e   :  { %4004 = vmatpush.msra.mxu3 %v2036_v35  ;;  %v2030_v38 = vsel %vm436_vm6, %v10477_v32, %v10476_v59  ;;  %3679 = vmatpush.msra.mxu0 %v3050_v52  ;;  %v10478_v35 = vunpack.i.h.bf16 %v8240_v47  ;;  %v10480_v59 = vunpack.i.h.bf16 %v10431_v19  ;;  %v10481_v52 = vunpack.i.l.bf16 %v10431_v19 }
 0x44f   :  { %4662 = vmatmul.msk.f32.gmra.mxu1 %vm3606_vm14, %v8392_v42  ;;  %v10483_v42 = vunpack.i.l.bf16 %v10479_v0 }
 0x450   :  { %4005 = vmatpush.msra.mxu3 %v2030_v38  ;;  %v3044_v50 = vsel %vm3043_vm12, %v5672_v26, %v10478_v35  ;;  %v1944_v32 = vsel %vm389_vm7, %v10481_v52, %v10480_v59  ;;  %v5623_v38 = vunpack.i.h.bf16 %v8143_v15  ;;  %v10482_v35 = vunpack.i.l.bf16 %v8316_v4  ;;  %v3583_v15 = vld [vmem:[%s9899_s3 + $0x8] sm:$0xff] }
 0x451   :  { %3680 = vmatpush.msra.mxu0 %v3044_v50  ;;  %v8420_v26 = vpop.permute.xlu1 %5710  ;;  %v1938_v59 = vsel %vm389_vm7, %v10484_v8, %v10483_v42  ;;  %v2951_v8 = vsel %vm2950_vm2, %v5642_v7, %v10485_v21  ;;  %3593 = vperm.xlu1 %5780, %v3583_v15   ;;  %v10486_v42 = vld [vmem:[#allocation22_spill] sm:$0xff]  ;;  %v10488_v52 = vunpack.i.l.bf16 %v10436_v16  ;;  %v10491_v21 = vunpack.i.h.bf16 %v8323_v56 }
 0x452   :  { %4006 = vmatpush.msra.mxu3 %v1944_v32  ;;  %v2957_v17 = vsel %vm2950_vm2, %v5643_v3, %v10482_v35  ;;  %v8431_v50 = vpop.permute.xlu0 %5675  ;;  %v5588_v3 = vunpack.i.h.bf16 %v8147_v36  ;;  %v2864_v7 = vsel %vm10105_vm13, %v5623_v38, %v10489_v58  ;;  %v8464_v35 = vld [vmem:[%s9898_s2 + $0x78] sm:$0xff]  ;;  %v10493_v36 = vunpack.i.h.bf16 %v10389_v54 }
 0x453   :  { %3681 = vmatpush.msra.mxu0 %v2957_v17  ;;  %v8439_v32 = vpop.permute.xlu2 %5730  ;;  %v10099_v17 = vunpack.i.l.bf16 %v10486_v42  ;;  %v10490_v15 = vunpack.i.l.bf16 %v8431_v50  ;;  %v10100_v56 = vunpack.i.l.bf16 %v8053_v33  ;;  %v10495_v54 = vunpack.i.h.bf16 %v10439_v12 }
 0x454   :  { %4007 = vmatpush.msra.mxu3 %v1938_v59  ;;  %v1852_v59 = vsel %vm1842_vm10, %v10488_v52, %v10487_v49  ;;  %v10492_v49 = vld [vmem:[#allocation6_spill] sm:$0xff]  ;;  %v10101_v52 = vunpack.i.l.bf16 %v8286_v40  ;;  %v10508_v38 = vunpack.i.h.bf16 %v7826_v45 }
 0x455   :  { %3682 = vmatpush.msra.mxu0 %v2951_v8  ;;  %v3144_v60 = vsel %vm3136_vm15, %v10491_v21, %v10490_v15  ;;  %3905 = vmatmul.f32.gmra.mxu3 %v8069_v43  ;;  %v1846_v58 = vsel %vm1842_vm10, %v10493_v36, %v10099_v17  ;;  %v5572_v8 = vunpack.i.l.bf16 %v8117_v53  ;;  %v10497_v17 = vunpack.i.h.bf16 %v8431_v50 }
 0x456   :  { %4008 = vmatpush.msra.mxu3 %v1852_v59  ;;  %3793 = vmatpush.msrb.mxu1 %v3144_v60  ;;  %v10494_v59 = vunpack.i.h.bf16 %v8114_v14 }
 0x457   :  { %3683 = vmatpush.msra.mxu0 %v2864_v7  ;;  %v10496_v7 = vunpack.i.l.bf16 %v10439_v12  ;;  %4663 = vmatmul.msk.f32.gmra.mxu1 %vm3606_vm14, %v8464_v35 }
 0x458   :  { %4009 = vmatpush.msra.mxu3 %v1846_v58  ;;  %v2858_v15 = vsel %vm10105_vm13, %v5607_v62, %v10494_v59  ;;  %v10498_v58 = vunpack.i.h.bf16 %v8229_v27  ;;  %v5557_v62 = vunpack.i.l.bf16 %v7826_v45 }
 0x459   :  { %v1759_v36 = vsel %vm342_vm9, %v10496_v7, %v10495_v54  ;;  %3684 = vmatpush.msra.mxu0 %v2858_v15  ;;  %v8494_v59 = vpop.permute.xlu1 %5725  ;;  %v2771_v54 = vsel %vm10108_vm11, %v5588_v3, %v10100_v56  ;;  %v10499_v15 = vunpack.i.l.bf16 %v10492_v49  ;;  %v10500_v7 = vunpack.i.h.bf16 %v10400_v11  ;;  %v10502_v3 = vld [vmem:[#allocation18_spill] sm:$0xff] }
 0x45a   :  { %v3138_v60 = vsel %vm3136_vm15, %v10498_v58, %v10497_v17  ;;  %4010 = vmatpush.msra.mxu3 %v1759_v36  ;;  %v10104_v58 = vunpack.i.l.bf16 %v8494_v59  ;;  %v8506_v21 = vpop.permute.xlu0 %5690  ;;  %v10501_v36 = vunpack.i.h.bf16 %v8372_v10  ;;  %v4943_v56 = vunpack.i.h.bf16 %v10502_v3 }
 0x45b   :  { %3794 = vmatpush.msrb.mxu1 %v3138_v60  ;;  %v1753_v27 = vsel %vm342_vm9, %v10500_v7, %v10499_v15  ;;  %3685 = vmatpush.msra.mxu0 %v2771_v54  ;;  %v5692_v11 = vunpack.i.l.bf16 %v8506_v21  ;;  %v8516_v15 = vpop.permute.xlu2 %5745  ;;  %v10503_v7 = vunpack.i.h.bf16 %v8117_v53  ;;  %v10505_v3 = vunpack.i.h.bf16 %v8240_v47 }
 0x45c   :  { %v3051_v60 = vsel %vm3043_vm12, %v10501_v36, %v10101_v52  ;;  %4011 = vmatpush.msra.mxu3 %v1753_v27  ;;  %v10102_v10 = vunpack.i.h.bf16 %v8516_v15  ;;  %v10103_v36 = vunpack.i.l.bf16 %v8516_v15  ;;  %v10504_v27 = vunpack.i.h.bf16 %v8286_v40 }
 0x45d   :  { %3795 = vmatpush.msrb.mxu1 %v3051_v60  ;;  %v2765_v54 = vsel %vm10108_vm11, %v5572_v8, %v10503_v7  ;;  %v5413_v60 = vunpack.i.h.bf16 %v7584_v37  ;;  %v10506_v8 = vunpack.i.h.bf16 %v7578_v20  ;;  %v10507_v7 = vunpack.i.l.bf16 %v7578_v20  ;;  %4012 = vmatmul.f32.vlgmr.msra.gmra.mxu3 %v7869_v23 }
 0x45e   :  { %4112 = vmatpush.msrb.mxu3 %v7617_v13  ;;  %3686 = vmatpush.msra.mxu0 %v2765_v54  ;;  %v3045_v52 = vsel %vm3043_vm12, %v10505_v3, %v10504_v27  ;;  %v2678_v13 = vsel %vm718_vm0, %v5557_v62, %v10508_v38  ;;  %v10509_v54 = vunpack.i.l.bf16 %v8316_v4  ;;  %v8549_v20 = vsel %vm2950_vm2, %v10104_v58, %v10103_v36 }
 0x45f   :  { %3796 = vmatpush.msrb.mxu1 %v3045_v52  ;;  %v2400_v17 = vsel %vm577_vm3, %v10507_v7, %v10506_v8  ;;  %v10510_v45 = vunpack.i.h.bf16 %v8494_v59  ;;  %v5397_v38 = vunpack.i.l.bf16 %v7560_v22  ;;  %v5507_v62 = vunpack.i.l.bf16 %v7707_v2 }
 0x460   :  { %v2958_v47 = vsel %vm2950_vm2, %v10509_v54, %v5692_v11  ;;  %4113 = vmatpush.msrb.mxu3 %v2400_v17  ;;  %3687 = vmatpush.msra.mxu0 %v2678_v13  ;;  %v10511_v17 = vunpack.i.l.bf16 %v7776_v9  ;;  %v10512_v3 = vunpack.i.h.bf16 %v8506_v21  ;;  %v10513_v8 = vunpack.i.h.bf16 %v8316_v4 }
 0x461   :  { %v8556_v52 = vsel %vm2950_vm2, %v10510_v45, %v10102_v10  ;;  %3797 = vmatpush.msrb.mxu1 %v2958_v47  ;;  %v5378_v13 = vunpack.i.h.bf16 %v10460_v46  ;;  %v10514_v23 = vunpack.i.l.bf16 %v7584_v37  ;;  %v8576_v47 = vpop.permute.xlu1 %5740  ;;  %v10518_v10 = vunpack.i.h.bf16 %v7707_v2 }
 0x462   :  { %v2672_v27 = vsel %vm718_vm0, %v4943_v56, %v10511_v17  ;;  %4114 = vmatpush.msrb.mxu3 %v7629_v18  ;;  %v2952_v7 = vsel %vm2950_vm2, %v10513_v8, %v10512_v3  ;;  %v5612_v18 = vunpack.i.l.bf16 %v8075_v63  ;;  %v5743_v56 = vunpack.i.h.bf16 %v8576_v47  ;;  %v8581_v45 = vpop.permute.xlu0 %5705 }
 0x463   :  { %3688 = vmatpush.msra.mxu0 %v2672_v27  ;;  %3798 = vmatpush.msrb.mxu1 %v2952_v7  ;;  %v2308_v54 = vsel %vm2303_vm8, %v10514_v23, %v5413_v60  ;;  %v5742_v4 = vunpack.i.l.bf16 %v8576_v47  ;;  %v10515_v17 = vunpack.i.h.bf16 %v8119_v28  ;;  %v10516_v27 = vunpack.i.l.bf16 %v8119_v28  ;;  %v5761_v7 = vpop.permute.xlu2 %5760 }
 0x464   :  { %4115 = vmatpush.msrb.mxu3 %v2308_v54  ;;  %v5472_v8 = vunpack.i.l.bf16 %v7717_v30  ;;  %v10517_v23 = vunpack.i.h.bf16 %v10411_v55  ;;  %v5763_v36 = vunpack.i.h.bf16 %v5761_v7  ;;  %v5762_v58 = vunpack.i.l.bf16 %v5761_v7  ;;  %v3585_v55 = vld [vmem:[%s9899_s3 + $0x18] sm:$0xff] }
 0x465   :  { %3689 = vmatpush.msra.mxu0 %v7785_v41  ;;  %v2865_v3 = vsel %vm10105_vm13, %v10516_v27, %v10515_v17  ;;  %v2580_v41 = vsel %vm671_vm1, %v5507_v62, %v10518_v10  ;;  %v10519_v28 = vunpack.i.h.bf16 %v8114_v14  ;;  %v10106_v27 = vunpack.i.h.bf16 %v10466_v39  ;;  %3603 = vperm.xlu1 %5780, %v3585_v55  }
 0x466   :  { %3799 = vmatpush.msrb.mxu1 %v2865_v3  ;;  %v2221_v54 = vsel %vm530_vm4, %v10517_v23, %v5397_v38  ;;  %v10520_v3 = vld [vmem:[#allocation38_spill] sm:$0xff]  ;;  %v5712_v10 = vunpack.i.l.bf16 %v8420_v26  ;;  %v10521_v62 = vunpack.i.l.bf16 %v10460_v46  ;;  %v10107_v14 = vunpack.i.l.bf16 %v7984_v48  ;;  %4015 = vmatmul.f32.gmra.mxu3 %v7928_v57 }
 0x467   :  { %4116 = vmatpush.msrb.mxu3 %v2221_v54  ;;  %3690 = vmatpush.msra.mxu0 %v2580_v41  ;;  %v2859_v17 = vsel %vm10105_vm13, %v10519_v28, %v5612_v18  ;;  %v10110_v2 = vunpack.i.l.bf16 %v10520_v3  ;;  %v10522_v23 = vunpack.i.h.bf16 %v8053_v33  ;;  %v10523_v54 = vunpack.i.l.bf16 %v8053_v33  ;;  %v8624_v28 = vld [vmem:[%s9898_s2 + $0x10] sm:$0xff] }
 0x468   :  { %3800 = vmatpush.msrb.mxu1 %v2859_v17  ;;  %v2215_v7 = vsel %vm530_vm4, %v10521_v62, %v5378_v13  ;;  %v8629_v17 = vsel %vm3043_vm12, %v5742_v4, %v5762_v58  ;;  %v5713_v55 = vunpack.i.h.bf16 %v8420_v26  ;;  %v10524_v33 = vunpack.i.h.bf16 %v10417_v61 }
 0x469   :  { %4117 = vmatpush.msrb.mxu3 %v2215_v7  ;;  %3691 = vmatpush.msra.mxu0 %v7794_v34  ;;  %v2772_v41 = vsel %vm10108_vm11, %v10523_v54, %v10522_v23  ;;  %v8634_v34 = vsel %vm3043_vm12, %v5743_v56, %v5763_v36  ;;  %v10525_v7 = vunpack.i.h.bf16 %v7717_v30  ;;  %vm10526_vm13 = vcmask 596992   ;;  %v10527_v23 = vld [vmem:[#allocation33_spill] sm:$0xff] }
 0x46a   :  { %3801 = vmatpush.msrb.mxu1 %v2772_v41  ;;  %v2129_v62 = vsel %vm483_vm5, %v10524_v33, %v10110_v2  ;;  %v10109_v54 = vunpack.i.l.bf16 %v10527_v23  ;;  %v10125_v36 = vunpack.i.l.bf16 %v8439_v32  ;;  %v10528_v26 = vunpack.i.h.bf16 %v8117_v53  ;;  %v10532_v53 = vld [vmem:[#allocation34_spill] sm:$0xff] }
 0x46b   :  { %v2488_v58 = vsel %vm10526_vm13, %v5472_v8, %v10525_v7  ;;  %4118 = vmatpush.msrb.mxu3 %v2129_v62  ;;  %v10122_v61 = vunpack.i.h.bf16 %v10470_v44  ;;  %v10529_v30 = vunpack.i.l.bf16 %v10466_v39  ;;  %v10530_v33 = vunpack.i.h.bf16 %v8191_v29  ;;  %v8663_v7 = vpop.permute.xlu1 %5755 }
 0x46c   :  { %3692 = vmatpush.msra.mxu0 %v2488_v58  ;;  %v2766_v41 = vsel %vm10108_vm11, %v10528_v26, %v10107_v14  ;;  %vm10531_vm13 = vcmask 424960   ;;  %v10117_v58 = vunpack.i.l.bf16 %v10532_v53  ;;  %v8666_v26 = vpop.permute.xlu0 %5720  ;;  %v10534_v14 = vunpack.i.h.bf16 %v8271_v31 }
 0x46d   :  { %3802 = vmatpush.msrb.mxu1 %v2766_v41  ;;  %v2123_v8 = vsel %vm483_vm5, %v10529_v30, %v10106_v27  ;;  %3693 = vmatmul.f32.vlgmr.msra.gmra.mxu0 %v8624_v28  ;;  %v3237_v62 = vsel %vm10531_vm13, %v10530_v33, %v5712_v10  ;;  %v10533_v41 = vunpack.i.h.bf16 %v10420_v24  ;;  %v10124_v27 = vunpack.i.h.bf16 %v8439_v32  ;;  %vm10537_vm11 = vmmov %vm10531_vm13 }
 0x46e   :  { %4119 = vmatpush.msrb.mxu3 %v2123_v8  ;;  %3836 = vmatpush.msrb.mxu0 %v3237_v62  ;;  %v10111_v29 = vunpack.i.h.bf16 %v8666_v26  ;;  %v10112_v33 = vunpack.i.l.bf16 %v8666_v26  ;;  %v3231_v8 = vsel %vm10531_vm13, %v10534_v14, %v5713_v55  ;;  %v10535_v62 = vunpack.i.h.bf16 %v7776_v9  ;;  %v5776_v14 = vpop.permute.xlu2 %5775 }
 0x46f   :  { %v2037_v30 = vsel %vm436_vm6, %v10533_v41, %v10109_v54  ;;  %3803 = vmatpush.msrb.mxu1 %v8094_v1  ;;  %v10536_v24 = vunpack.i.l.bf16 %v7776_v9  ;;  %v3238_v54 = vsel %vm10537_vm11, %v5712_v10, %v10125_v36  ;;  %v10114_v2 = vunpack.i.h.bf16 %v10479_v0  ;;  %4018 = vmatmul.f32.gmra.mxu3 %v7999_v6  ;;  %v10563_v36 = vld [vmem:[#allocation41_spill] sm:$0xff] }
 0x470   :  { %4120 = vmatpush.msrb.mxu3 %v2037_v30  ;;  %3837 = vmatpush.msrb.mxu0 %v3231_v8  ;;  %v10538_v1 = vunpack.i.l.bf16 %v10470_v44  ;;  %v8699_v9 = vsel %vm3043_vm12, %v10112_v33, %v5742_v4  ;;  %v10539_v10 = vunpack.i.h.bf16 %v7722_v51  ;;  %v10540_v30 = vunpack.i.l.bf16 %v7722_v51  ;;  %v8709_v8 = vld [vmem:[%s9898_s2 + $0x30] sm:$0xff] }
 0x471   :  { %v2673_v41 = vsel %vm718_vm0, %v10536_v24, %v10535_v62  ;;  %v8716_v62 = vsel %vm3043_vm12, %v10111_v29, %v5743_v56  ;;  %v3232_v51 = vsel %vm10537_vm11, %v5713_v55, %v10124_v27  ;;  %v10541_v4 = vunpack.i.h.bf16 %v10431_v19  ;;  %v10542_v56 = vld [vmem:[#allocation23_spill] sm:$0xff]  ;;  %v10548_v29 = vld [vmem:[#allocation36_spill] sm:$0xff] }
 0x472   :  { %3804 = vmatpush.msrb.mxu1 %v2673_v41  ;;  %3952 = vmatpush.msra.mxu0 %v3238_v54  ;;  %v2031_v31 = vsel %vm436_vm6, %v10538_v1, %v10122_v61  ;;  %v2587_v54 = vsel %vm671_vm1, %v10540_v30, %v10539_v10  ;;  %v5778_v47 = vunpack.i.h.bf16 %v5776_v14  ;;  %v10116_v41 = vunpack.i.h.bf16 %v10486_v42  ;;  %v10561_v61 = vld [vmem:[#allocation13_spill] sm:$0xff] }
 0x473   :  { %4121 = vmatpush.msrb.mxu3 %v2031_v31  ;;  %v1945_v24 = vsel %vm389_vm7, %v10541_v4, %v10117_v58  ;;  %v10113_v1 = vunpack.i.l.bf16 %v10542_v56  ;;  %v10543_v31 = vunpack.i.l.bf16 %v10479_v0  ;;  %v8736_v19 = vpop.permute.xlu1 %5770  ;;  %v10544_v30 = vunpack.i.h.bf16 %v7671_v25 }
 0x474   :  { %3805 = vmatpush.msrb.mxu1 %v2587_v54  ;;  %3953 = vmatpush.msra.mxu0 %v3232_v51  ;;  %v10115_v10 = vunpack.i.h.bf16 %v8736_v19  ;;  %v10545_v54 = vunpack.i.l.bf16 %v7671_v25  ;;  %vm10546_vm13 = vcmask 596992   ;;  %v5777_v4 = vunpack.i.l.bf16 %v5776_v14  ;;  %v10550_v14 = vld [vmem:[#allocation46_spill] sm:$0xff] }
 0x475   :  { %4122 = vmatpush.msrb.mxu3 %v1945_v24  ;;  %v1939_v55 = vsel %vm389_vm7, %v10543_v31, %v10114_v2  ;;  %3696 = vmatmul.f32.gmra.mxu0 %v8709_v8  ;;  %v10547_v24 = vunpack.i.h.bf16 %v10436_v16  ;;  %v10123_v25 = vunpack.i.h.bf16 %v10492_v49  ;;  %v10551_v16 = vunpack.i.l.bf16 %v10486_v42 }
 0x476   :  { %3806 = vmatpush.msrb.mxu1 %v7732_v5  ;;  %v2495_v51 = vsel %vm10546_vm13, %v10545_v54, %v10544_v30  ;;  %v10119_v5 = vunpack.i.l.bf16 %v8736_v19  ;;  %v8754_v33 = vsel %vm10537_vm11, %v10115_v10, %v5778_v47  ;;  %v10549_v30 = vld [vmem:[#allocation20_spill] sm:$0xff]  ;;  %v10121_v47 = vunpack.i.h.bf16 %v10548_v29  ;;  %vm10556_vm13 = vmmov %vm10537_vm11 }
 0x477   :  { %4123 = vmatpush.msrb.mxu3 %v1939_v55  ;;  %v1853_v31 = vsel %vm1842_vm10, %v10547_v24, %v10113_v1  ;;  %v10118_v55 = vunpack.i.l.bf16 %v10548_v29  ;;  %v10120_v54 = vunpack.i.l.bf16 %v10549_v30  ;;  %4684 = vmatpush.msrb.mxu2 %v8754_v33  ;;  %v10552_v24 = vld [vmem:[#allocation12_spill] sm:$0xff]  ;;  %v10553_v1 = vld [vmem:[#allocation67_spill] sm:$0xff]  ;;  %v10570_v37 = vunpack.i.h.bf16 %v8075_v63 }
 0x478   :  { %3807 = vmatpush.msrb.mxu1 %v2495_v51  ;;  %v1847_v51 = vsel %vm1842_vm10, %v10551_v16, %v10116_v41  ;;  %v5702_v2 = vunpack.i.l.bf16 %v10553_v1  ;;  %v8777_v16 = vld [vmem:[%s9898_s2 + $0x50] sm:$0xff]  ;;  %4021 = vmatmul.f32.gmra.mxu3 %v8069_v43  ;;  %v8788_v58 = vsel %vm10556_vm13, %v10119_v5, %v5777_v4  ;;  %v10558_v4 = vunpack.i.l.bf16 %v10492_v49 }
 0x479   :  { %4124 = vmatpush.msrb.mxu3 %v1853_v31  ;;  %v5468_v31 = vunpack.i.h.bf16 %v10552_v24  ;;  %4686 = vmatpush.msrb.mxu2 %v8788_v58  ;;  %v10576_v46 = vunpack.i.h.bf16 %v7984_v48 }
 0x47a   :  { %3808 = vmatpush.msrb.mxu1 %v10550_v14  ;;  %v10554_v14 = vunpack.i.l.bf16 %v8431_v50  ;;  %v1754_v5 = vsel %vm342_vm9, %v10558_v4, %v10123_v25  ;;  %v5433_v4 = vunpack.i.h.bf16 %v10561_v61  ;;  %v5708_v25 = vunpack.i.h.bf16 %v8581_v45 }
 0x47b   :  { %4125 = vmatpush.msrb.mxu3 %v1847_v51  ;;  %3809 = vmatmul.f32.vlgmr.msrb.gmra.mxu1 %v8624_v28  ;;  %v10555_v51 = vunpack.i.h.bf16 %v10439_v12  ;;  %v10557_v12 = vunpack.i.h.bf16 %v8431_v50  ;;  %v10559_v50 = vunpack.i.l.bf16 %v8286_v40 }
 0x47c   :  { %v3145_v10 = vsel %vm3136_vm15, %v10554_v14, %v10118_v55  ;;  %v3584_v14 = vld [vmem:[%s9899_s3 + $0x10] sm:$0xff]  ;;  %v5703_v55 = vunpack.i.h.bf16 %v10553_v1 }
 0x47d   :  { %3909 = vmatpush.msra.mxu1 %v3145_v10  ;;  %v1760_v41 = vsel %vm342_vm9, %v10555_v51, %v10120_v54  ;;  %v8794_v10 = vpop.permute.xlu0 %5735  ;;  %v3139_v51 = vsel %vm3136_vm15, %v10557_v12, %v10121_v47  ;;  %3699 = vmatmul.f32.gmra.mxu0 %v8777_v16  ;;  %v8808_v54 = vpop.f32.mrf.mxu2  ;;  %v3052_v12 = vsel %vm3043_vm12, %v10559_v50, %v5702_v2  ;;  %v5398_v50 = vunpack.i.h.bf16 %v7560_v22 }
 0x47e   :  { %4126 = vmatpush.msrb.mxu3 %v1760_v41  ;;  %v10126_v41 = vunpack.i.l.bf16 %v8581_v45  ;;  %3598 = vperm.xlu2 %5781, %v3584_v14  }
 0x47f   :  { %3910 = vmatpush.msra.mxu1 %v3139_v51  ;;  %v10560_v51 = vunpack.i.l.bf16 %v10552_v24  ;;  %4681 = vmatmul.msk.f32.vlgmr.msrb.gmra.mxu2 %vm3606_vm14, %v10563_v36  ;;  %v10564_v24 = vld [vmem:[#allocation8_spill] sm:$0xff] }
 0x480   :  { %4127 = vmatpush.msrb.mxu3 %v1754_v5  ;;  %v10562_v5 = vunpack.i.h.bf16 %v8286_v40  ;;  %v8838_v40 = vld [vmem:[%s9898_s2 + $0x70] sm:$0xff] }
 0x481   :  { %v2407_v47 = vsel %vm577_vm3, %v10560_v51, %v5468_v31  ;;  %3911 = vmatpush.msra.mxu1 %v3052_v12  ;;  %v2959_v31 = vsel %vm2950_vm2, %v5692_v11, %v10126_v41  ;;  %v10566_v12 = vunpack.i.l.bf16 %v10561_v61  ;;  %v10567_v51 = vunpack.i.h.bf16 %v8506_v21 }
 0x482   :  { %4228 = vmatpush.msra.mxu3 %v2407_v47  ;;  %v3046_v27 = vsel %vm3043_vm12, %v10562_v5, %v5703_v55  ;;  %v10565_v47 = vld [vmem:[#allocation9_spill] sm:$0xff]  ;;  %v5363_v61 = vunpack.i.h.bf16 %v10520_v3  ;;  %v2222_v21 = vsel %vm530_vm4, %v5397_v38, %v5398_v50  ;;  %vm10571_vm3 = vcmask 457728   ;;  %v10573_v50 = vld [vmem:[#allocation35_spill] sm:$0xff] }
 0x483   :  { %3912 = vmatpush.msra.mxu1 %v3046_v27  ;;  %v5417_v14 = vunpack.i.l.bf16 %v10565_v47  ;;  %v8845_v27 = vld [vmem:[%s9898_s2 + $0x8] sm:$0xff]  ;;  %v2315_v11 = vsel %vm2303_vm8, %v10566_v12, %v5433_v4  ;;  %v2953_v5 = vsel %vm2950_vm2, %v10567_v51, %v5708_v25  ;;  %v10569_v4 = vld [vmem:[#allocation64_spill] sm:$0xff]  ;;  %v5328_v38 = vunpack.i.h.bf16 %v10527_v23 }
 0x484   :  { %4229 = vmatpush.msra.mxu3 %v10564_v24  ;;  %3812 = vmatmul.f32.gmra.mxu1 %v8709_v8  ;;  %v10568_v24 = vld [vmem:[#allocation5_spill] sm:$0xff]  ;;  %v5347_v51 = vunpack.i.l.bf16 %v10573_v50  ;;  %v5293_v50 = vunpack.i.h.bf16 %v10532_v53 }
 0x485   :  { %3913 = vmatpush.msra.mxu1 %v2959_v31  ;;  %4128 = vmatmul.f32.vlgmr.msrb.gmra.mxu3 %v8845_v27  ;;  %v5382_v31 = vunpack.i.l.bf16 %v10568_v24  ;;  %v2309_v47 = vsel %vm2303_vm8, %v5413_v60, %v5417_v14  ;;  %v8861_v41 = vpop.permute.xlu0 %5750  ;;  %v8868_v12 = vpop.f32.mrf.mxu2  ;;  %v2860_v60 = vsel %vm10571_vm3, %v5612_v18, %v10570_v37  ;;  %v10572_v14 = vld [vmem:[#allocation68_spill] sm:$0xff]  ;;  %vm10582_vm8 = vmmov %vm10537_vm11 }
 0x486   :  { %4230 = vmatpush.msra.mxu3 %v2315_v11  ;;  %3702 = vmatmul.f32.gmra.mxu0 %v8838_v40  ;;  %v5752_v11 = vunpack.i.l.bf16 %v8861_v41  ;;  %v5753_v63 = vunpack.i.h.bf16 %v8861_v41  ;;  %v10574_v18 = vld [vmem:[#allocation28_spill] sm:$0xff]  ;;  %v5737_v41 = vunpack.i.l.bf16 %v8794_v10 }
 0x487   :  { %3914 = vmatpush.msra.mxu1 %v2953_v5  ;;  %4682 = vmatmul.msk.f32.gmra.mxu2 %vm3606_vm14, %v10572_v14  ;;  %v2216_v22 = vsel %vm530_vm4, %v5378_v13, %v5382_v31  ;;  %v10575_v5 = vunpack.i.l.bf16 %v10520_v3  ;;  %v10577_v13 = vunpack.i.l.bf16 %v7984_v48  ;;  %vm10578_vm4 = vcmask 572416  }
 0x488   :  { %4231 = vmatpush.msra.mxu3 %v2309_v47  ;;  %v10579_v47 = vunpack.i.h.bf16 %v10466_v39  ;;  %v10586_v39 = vld [vmem:[#allocation31_spill] sm:$0xff] }
 0x489   :  { %3915 = vmatpush.msra.mxu1 %v10569_v4  ;;  %v2130_v24 = vsel %vm483_vm5, %v10575_v5, %v5363_v61  ;;  %v2767_v31 = vsel %vm10578_vm4, %v10577_v13, %v10576_v46  ;;  %v10583_v61 = vld [vmem:[#allocation27_spill] sm:$0xff]  ;;  %v10588_v5 = vunpack.i.h.bf16 %v8439_v32  ;;  %v10590_v46 = vld [vmem:[#allocation32_spill] sm:$0xff] }
 0x48a   :  { %4232 = vmatpush.msra.mxu3 %v2222_v21  ;;  %v2124_v4 = vsel %vm483_vm5, %v10579_v47, %v5347_v51  ;;  %v10580_v21 = vld [vmem:[#allocation63_spill] sm:$0xff]  ;;  %v10584_v37 = vunpack.i.h.bf16 %v10583_v61  ;;  %v10585_v48 = vunpack.i.l.bf16 %v10583_v61  ;;  %v10587_v51 = vunpack.i.l.bf16 %v10527_v23  ;;  %vm10589_vm5 = vmmov %vm10582_vm8 }
 0x48b   :  { %3916 = vmatpush.msra.mxu1 %v2860_v60  ;;  %v5277_v13 = vunpack.i.l.bf16 %v10590_v46  ;;  %v10592_v47 = vunpack.i.h.bf16 %v10470_v44  ;;  %v5258_v23 = vunpack.i.h.bf16 %v10542_v56 }
 0x48c   :  { %4233 = vmatpush.msra.mxu3 %v2216_v22  ;;  %3815 = vmatmul.f32.gmra.mxu1 %v8777_v16  ;;  %v2680_v60 = vsel %vm718_vm0, %v10585_v48, %v10584_v37  ;;  %v5312_v22 = vunpack.i.l.bf16 %v10586_v39  ;;  %v10598_v48 = vld [vmem:[#allocation37_spill] sm:$0xff]  ;;  %v10599_v39 = vunpack.i.h.bf16 %v10479_v0  ;;  %v10603_v0 = vld [vmem:[#allocation16_spill] sm:$0xff] }
 0x48d   :  { %3917 = vmatpush.msra.mxu1 %v10574_v18  ;;  %4131 = vmatmul.f32.gmra.mxu3 %v7928_v57  ;;  %v10581_v57 = vunpack.i.l.bf16 %v8439_v32  ;;  %v2038_v18 = vsel %vm436_vm6, %v10587_v51, %v5328_v38  ;;  %v10593_v38 = vld [vmem:[#allocation55_spill] sm:$0xff]  ;;  %v10594_v32 = vunpack.i.l.bf16 %v10532_v53  ;;  %v10600_v53 = vld [vmem:[#allocation21_spill] sm:$0xff]  ;;  %v5718_v51 = vunpack.i.h.bf16 %v10598_v48 }
 0x48e   :  { %4234 = vmatpush.msra.mxu3 %v2130_v24  ;;  %4664 = vmatmul.msk.f32.vlgmr.msrb.gmra.mxu0 %vm3606_vm14, %v10580_v21  ;;  %v3233_v24 = vsel %vm10589_vm5, %v10588_v5, %v5753_v63  ;;  %v10602_v5 = vunpack.i.l.bf16 %v10542_v56  ;;  %v10604_v46 = vunpack.i.h.bf16 %v10603_v0 }
 0x48f   :  { %3918 = vmatpush.msra.mxu1 %v2767_v31  ;;  %v3239_v3 = vsel %vm10582_vm8, %v10581_v57, %v5752_v11  ;;  %v10591_v31 = vld [vmem:[#allocation59_spill] sm:$0xff]  ;;  %v1946_v57 = vsel %vm389_vm7, %v10594_v32, %v5293_v50  ;;  %v5242_v50 = vunpack.i.l.bf16 %v10600_v53  ;;  %v10620_v53 = vld [vmem:[#allocation61_spill] sm:$0xff] }
 0x490   :  { %4235 = vmatpush.msra.mxu3 %v2124_v4  ;;  %4068 = vmatpush.msrb.mxu0 %v3239_v3  ;;  %v2032_v4 = vsel %vm436_vm6, %v10592_v47, %v5312_v22  ;;  %v10595_v3 = vld [vmem:[#allocation44_spill] sm:$0xff]  ;;  %v1940_v22 = vsel %vm389_vm7, %v10599_v39, %v5277_v13  ;;  %v10605_v13 = vunpack.i.l.bf16 %v10603_v0  ;;  %vm10606_vm6 = vcmask 596992   ;;  %vm10623_vm7 = vmmov %vm10589_vm5 }
 0x491   :  { %3919 = vmatpush.msra.mxu1 %v2680_v60  ;;  %v10596_v61 = vunpack.i.h.bf16 %v10595_v3  ;;  %v10597_v44 = vunpack.i.l.bf16 %v10595_v3  ;;  %v5717_v60 = vunpack.i.l.bf16 %v10598_v48  ;;  %v10607_v47 = vunpack.i.h.bf16 %v10486_v42 }
 0x492   :  { %4236 = vmatpush.msra.mxu3 %v2038_v18  ;;  %4069 = vmatpush.msrb.mxu0 %v3233_v24  ;;  %v10601_v18 = vld [vmem:[#allocation45_spill] sm:$0xff]  ;;  %v1854_v24 = vsel %vm1842_vm10, %v10602_v5, %v5258_v23  ;;  %v10609_v23 = vld [vmem:[#allocation10_spill] sm:$0xff]  ;;  %v10611_v3 = vunpack.i.h.bf16 %v10548_v29  ;;  %v10613_v39 = vunpack.i.l.bf16 %v8666_v26 }
 0x493   :  { %3920 = vmatpush.msra.mxu1 %v10591_v31  ;;  %v2582_v37 = vsel %vm671_vm1, %v10597_v44, %v10596_v61  ;;  %v2490_v31 = vsel %vm10606_vm6, %v10605_v13, %v10604_v46  ;;  %v5062_v32 = vunpack.i.l.bf16 %v10609_v23  ;;  %v10612_v44 = vunpack.i.h.bf16 %v10492_v49 }
 0x494   :  { %4237 = vmatpush.msra.mxu3 %v2032_v4  ;;  %3818 = vmatmul.f32.gmra.mxu1 %v8838_v40  ;;  %v1848_v4 = vsel %vm1842_vm10, %v10607_v47, %v5242_v50  ;;  %v3140_v61 = vsel %vm3136_vm15, %v10611_v3, %v5718_v51  ;;  %v10624_v50 = vld [vmem:[#allocation62_spill] sm:$0xff]  ;;  %v10628_v46 = vunpack.i.l.bf16 %v8736_v19  ;;  %vm10637_vm10 = vmmov %vm10606_vm6  ;;  %v10638_v3 = vld [vmem:[#allocation43_spill] sm:$0xff] }
 0x495   :  { %3921 = vmatpush.msra.mxu1 %v10593_v38  ;;  %4134 = vmatmul.f32.gmra.mxu3 %v7999_v6  ;;  %v5223_v6 = vunpack.i.h.bf16 %v10549_v30  ;;  %v10608_v38 = vunpack.i.l.bf16 %v10548_v29  ;;  %v10614_v29 = vunpack.i.h.bf16 %v8666_v26  ;;  %v10617_v26 = vunpack.i.h.bf16 %v8494_v59 }
 0x496   :  { %4238 = vmatpush.msra.mxu3 %v1946_v57  ;;  %4665 = vmatmul.msk.f32.gmra.mxu0 %vm3606_vm14, %v10563_v36  ;;  %v10610_v57 = vunpack.i.l.bf16 %v10549_v30  ;;  %v10615_v30 = vunpack.i.l.bf16 %v8494_v59  ;;  %v5783_v59 = vld [vmem:[%s9898_s2 + $0x28] sm:$0xff] }
 0x497   :  { %3922 = vmatpush.msra.mxu1 %v2582_v37  ;;  %v3146_v56 = vsel %vm3136_vm15, %v10608_v38, %v5717_v60  ;;  %v1755_v37 = vsel %vm342_vm9, %v10612_v44, %v5062_v32  ;;  %v3047_v49 = vsel %vm3043_vm12, %v5703_v55, %v10614_v29  ;;  %v2954_v1 = vsel %vm2950_vm2, %v5708_v25, %v10617_v26  ;;  %v10618_v55 = vld [vmem:[#allocation65_spill] sm:$0xff]  ;;  %v10647_v26 = vld [vmem:[#allocation56_spill] sm:$0xff] }
 0x498   :  { %4239 = vmatpush.msra.mxu3 %v1940_v22  ;;  %v1761_v42 = vsel %vm342_vm9, %v10610_v57, %v5223_v6  ;;  %v10619_v6 = vld [vmem:[#allocation29_spill] sm:$0xff]  ;;  %v10622_v25 = vunpack.i.h.bf16 %v8736_v19  ;;  %vm10629_vm9 = vmmov %vm10589_vm5  ;;  %v5784_v19 = vld [vmem:[%s9898_s2 + $0x48] sm:$0xff] }
 0x499   :  { %3923 = vmatpush.msra.mxu1 %v10601_v18  ;;  %v10625_v18 = vld [vmem:[#allocation30_spill] sm:$0xff]  ;;  %v3234_v13 = vsel %vm10629_vm9, %v5753_v63, %v10628_v46 }
 0x49a   :  { %4240 = vmatpush.msra.mxu3 %v1854_v24  ;;  %v10626_v5 = vunpack.i.h.bf16 %v10625_v18  ;;  %v10627_v24 = vunpack.i.l.bf16 %v10625_v18  ;;  %v10633_v63 = vld [vmem:[#allocation50_spill] sm:$0xff] }
 0x49b   :  { %3924 = vmatpush.msra.mxu1 %v2490_v31  ;;  %v9031_v31 = vpop.f32.mrf.mxu3 }
 0x49c   :  { %4241 = vmatpush.msra.mxu3 %v1848_v4  ;;  %3925 = vmatmul.f32.vlgmr.msra.gmra.mxu1 %v8624_v28  ;;  %v2675_v0 = vsel %vm718_vm0, %v10627_v24, %v10626_v5  ;;  %v5766_v5 = vpop.permute.xlu0 %5765 }
 0x49d   :  { %4025 = vmatpush.msrb.mxu1 %v3146_v56  ;;  %4137 = vmatmul.f32.gmra.mxu3 %v8069_v43  ;;  %v3053_v43 = vsel %vm3043_vm12, %v5702_v2, %v10613_v39  ;;  %v10616_v2 = vunpack.i.l.bf16 %v8581_v45  ;;  %v10621_v45 = vld [vmem:[#allocation58_spill] sm:$0xff]  ;;  %v10634_v56 = vld [vmem:[#allocation17_spill] sm:$0xff]  ;;  %vm10655_vm12 = vmmov %vm10606_vm6 }
 0x49e   :  { %4242 = vmatpush.msra.mxu3 %v1761_v42  ;;  %4666 = vmatmul.msk.f32.gmra.mxu0 %vm3606_vm14, %v10572_v14  ;;  %v10635_v23 = vunpack.i.h.bf16 %v10634_v56  ;;  %v10636_v32 = vunpack.i.l.bf16 %v10634_v56  ;;  %v5738_v42 = vunpack.i.h.bf16 %v8794_v10  ;;  %v5785_v39 = vld [vmem:[%s9898_s2 + $0x68] sm:$0xff]  ;;  %v9069_v10 = vpop.f32.mrf.mxu2 }
 0x49f   :  { %4026 = vmatpush.msrb.mxu1 %v3140_v61  ;;  %v2960_v22 = vsel %vm2950_vm2, %v10616_v2, %v10615_v30  ;;  %v3147_v61 = vsel %vm3136_vm15, %v5717_v60, %v5737_v41  ;;  %v10639_v60 = vld [vmem:[#allocation66_spill] sm:$0xff] }
 0x4a0   :  { %4243 = vmatpush.msra.mxu3 %v1755_v37  ;;  %v2497_v57 = vsel %vm10637_vm10, %v10636_v32, %v10635_v23  ;;  %v3141_v37 = vsel %vm3136_vm15, %v5718_v51, %v5738_v42  ;;  %v10658_v23 = vld [vmem:[#allocation42_spill] sm:$0xff]  ;;  %v10659_v32 = vld [vmem:[#allocation25_spill] sm:$0xff] }
 0x4a1   :  { %4027 = vmatpush.msrb.mxu1 %v3053_v43  ;;  %v10643_v43 = vld [vmem:[#allocation52_spill] sm:$0xff] }
 0x4a2   :  { %4685 = vmatpush.msrb.mxu3 %v8754_v33  ;;  %v10644_v29 = vunpack.i.h.bf16 %v10643_v43 }
 0x4a3   :  { %4028 = vmatpush.msrb.mxu1 %v3047_v49  ;;  %v9056_v44 = vpop.f32.mrf.mxu3 }
 0x4a4   :  { %4687 = vmatpush.msrb.mxu3 %v8788_v58  ;;  %3928 = vmatmul.f32.gmra.mxu1 %v8709_v8 }
 0x4a5   :  { %4029 = vmatpush.msrb.mxu1 %v2960_v22  ;;  %4244 = vmatmul.f32.vlgmr.msra.gmra.mxu3 %v8845_v27  ;;  %v3240_v27 = vsel %vm10623_vm7, %v5752_v11, %v10622_v25  ;;  %v10630_v11 = vld [vmem:[#allocation53_spill] sm:$0xff]  ;;  %v10646_v22 = vld [vmem:[#allocation60_spill] sm:$0xff]  ;;  %v10652_v25 = vld [vmem:[#allocation15_spill] sm:$0xff] }
 0x4a6   :  { %4667 = vmatmul.msk.f32.gmra.mxu0 %vm3606_vm14, %v8464_v35  ;;  %v10631_v47 = vunpack.i.h.bf16 %v10630_v11  ;;  %v10632_v4 = vunpack.i.l.bf16 %v10630_v11  ;;  %v9083_v51 = vpop.f32.mrf.mxu2  ;;  %v5768_v11 = vunpack.i.h.bf16 %v5766_v5 }
 0x4a7   :  { %4030 = vmatpush.msrb.mxu1 %v2954_v1  ;;  %v10648_v1 = vld [vmem:[#allocation49_spill] sm:$0xff] }
 0x4a8   :  { %v2589_v38 = vsel %vm671_vm1, %v10632_v4, %v10631_v47  ;;  %v10656_v4 = vunpack.i.l.bf16 %v8516_v15 }
 0x4a9   :  { %4031 = vmatpush.msrb.mxu1 %v10618_v55  ;;  %v10649_v55 = vunpack.i.h.bf16 %v10648_v1 }
 0x4ab   :  { %4032 = vmatpush.msrb.mxu1 %v10619_v6  ;;  %v9076_v48 = vpop.f32.mrf.mxu3  ;;  %v10650_v6 = vunpack.i.l.bf16 %v10648_v1  ;;  %v10666_v1 = vld [vmem:[#allocation19_spill] sm:$0xff] }
 0x4ac   :  { %3931 = vmatmul.f32.gmra.mxu1 %v8777_v16 }
 0x4ad   :  { %4033 = vmatpush.msrb.mxu1 %v10620_v53  ;;  %4247 = vmatmul.f32.gmra.mxu3 %v5783_v59  ;;  %v2584_v53 = vsel %vm671_vm1, %v10650_v6, %v10649_v55  ;;  %v5757_v59 = vunpack.i.l.bf16 %v8663_v7  ;;  %v5503_v55 = vunpack.i.h.bf16 %v10666_v1 }
 0x4ae   :  { %4668 = vmatmul.msk.f32.vlgmr.msra.gmra.mxu0 %vm3606_vm14, %v10580_v21 }
 0x4af   :  { %4034 = vmatpush.msrb.mxu1 %v10621_v45  ;;  %4184 = vmatpush.msra.mxu0 %v3240_v27  ;;  %v10651_v45 = vld [vmem:[#allocation7_spill] sm:$0xff]  ;;  %v10653_v27 = vunpack.i.h.bf16 %v10652_v25  ;;  %v3148_v24 = vsel %vm3136_vm15, %v5737_v41, %v5757_v59  ;;  %v10657_v41 = vunpack.i.h.bf16 %v8516_v15  ;;  %v10660_v15 = vld [vmem:[#allocation40_spill] sm:$0xff] }
 0x4b0   :  { %v10668_v59 = vld [vmem:[#allocation51_spill] sm:$0xff] }
 0x4b1   :  { %4035 = vmatpush.msrb.mxu1 %v10624_v50  ;;  %4185 = vmatpush.msra.mxu0 %v3234_v13  ;;  %v10654_v50 = vunpack.i.l.bf16 %v10652_v25  ;;  %v10669_v25 = vunpack.i.l.bf16 %v10666_v1 }
 0x4b3   :  { %4036 = vmatpush.msrb.mxu1 %v2675_v0  ;;  %v9095_v30 = vpop.f32.mrf.mxu3  ;;  %v2492_v18 = vsel %vm10655_vm12, %v10654_v50, %v10653_v27 }
 0x4b4   :  { %3934 = vmatmul.f32.gmra.mxu1 %v8838_v40 }
 0x4b5   :  { %4037 = vmatpush.msrb.mxu1 %v2589_v38  ;;  %4250 = vmatmul.f32.gmra.mxu3 %v5784_v19 }
 0x4b6   :  { %4669 = vmatmul.msk.f32.gmra.mxu0 %vm3606_vm14, %v10563_v36 }
 0x4b7   :  { %4038 = vmatpush.msrb.mxu1 %v10633_v63  ;;  %v2956_v63 = vsel %vm2950_vm2, %v10657_v41, %v5768_v11 }
 0x4b9   :  { %4039 = vmatpush.msrb.mxu1 %v2497_v57  ;;  %v9132_v19 = vpop.permute.xlu0 %3588 }
 0x4bb   :  { %4040 = vmatpush.msrb.mxu1 %v10638_v3  ;;  %v3723_v2 = vpop.f32.mrf.mxu1  ;;  %v9119_v0 = vpop.f32.mrf.mxu3  ;;  %v10661_v3 = vld [vmem:[#allocation14_spill] sm:$0xff] }
 0x4bc   :  { %4041 = vmatmul.f32.vlgmr.msrb.gmra.mxu1 %v8624_v28 }
 0x4bd   :  { %4141 = vmatpush.msra.mxu1 %v3147_v61  ;;  %4253 = vmatmul.f32.gmra.mxu3 %v5785_v39  ;;  %v5553_v61 = vunpack.i.h.bf16 %v10661_v3 }
 0x4be   :  { %4670 = vmatmul.msk.f32.gmra.mxu0 %vm3606_vm14, %v10572_v14 }
 0x4bf   :  { %4142 = vmatpush.msra.mxu1 %v3141_v37 }
 0x4c1   :  { %4143 = vmatpush.msra.mxu1 %v8699_v9  ;;  %v10640_v9 = vld [vmem:[#allocation24_spill] sm:$0xff] }
 0x4c3   :  { %4144 = vmatpush.msra.mxu1 %v8716_v62  ;;  %v10641_v62 = vld [vmem:[#allocation39_spill] sm:$0xff]  ;;  %v9151_v37 = vpop.permute.xlu1 %3593 }
 0x4c4   :  { %4044 = vmatmul.f32.gmra.mxu1 %v8709_v8  ;;  %v3726_v46 = vpop.f32.mrf.mxu1 }
 0x4c5   :  { %4145 = vmatpush.msra.mxu1 %v8549_v20  ;;  %4683 = vmatmul.msk.f32.vlgmr.msrb.gmra.mxu3 %vm3606_vm14, %v8464_v35  ;;  %v10642_v20 = vld [vmem:[#allocation57_spill] sm:$0xff] }
 0x4c6   :  { %4671 = vmatmul.msk.f32.gmra.mxu0 %vm3606_vm14, %v8464_v35 }
 0x4c7   :  { %4146 = vmatpush.msra.mxu1 %v8556_v52  ;;  %v10645_v52 = vunpack.i.l.bf16 %v10643_v43 }
 0x4c9   :  { %4147 = vmatpush.msra.mxu1 %v10639_v60  ;;  %v2682_v49 = vsel %vm718_vm0, %v10645_v52, %v10644_v29  ;;  %v10662_v60 = vld [vmem:[#allocation11_spill] sm:$0xff]  ;;  %v10664_v29 = vld [vmem:[#allocation54_spill] sm:$0xff]  ;;  %v3640_v52 = vadd.f32 %v8868_v12, %v9151_v37 }
 0x4cb   :  { %4148 = vmatpush.msra.mxu1 %v10640_v9 }
 0x4cc   :  { %4047 = vmatmul.f32.gmra.mxu1 %v8777_v16  ;;  %v3729_v56 = vpop.f32.mrf.mxu1 }
 0x4cd   :  { %4149 = vmatpush.msra.mxu1 %v10641_v62  ;;  %v10663_v62 = vld [vmem:[#allocation48_spill] sm:$0xff] }
 0x4ce   :  { %4672 = vmatmul.msk.f32.vlgmr.msrb.gmra.mxu0 %vm3606_vm14, %v10580_v21 }
 0x4cf   :  { %4150 = vmatpush.msra.mxu1 %v10642_v20  ;;  %4300 = vmatpush.msrb.mxu0 %v8754_v33  ;;  %v9107_v33 = vpop.f32.mrf.mxu2  ;;  %v5538_v20 = vunpack.i.h.bf16 %v10663_v62 }
 0x4d1   :  { %4151 = vmatpush.msra.mxu1 %v2682_v49  ;;  %4301 = vmatpush.msrb.mxu0 %v8788_v58  ;;  %v5758_v58 = vunpack.i.h.bf16 %v8663_v7  ;;  %v5767_v7 = vunpack.i.l.bf16 %v5766_v5  ;;  %v10665_v49 = vunpack.i.l.bf16 %v10661_v3 }
 0x4d3   :  { %4152 = vmatpush.msra.mxu1 %v10646_v22  ;;  %v3142_v13 = vsel %vm3136_vm15, %v5738_v42, %v5758_v58  ;;  %v2962_v38 = vsel %vm2950_vm2, %v10656_v4, %v5767_v7  ;;  %v2677_v22 = vsel %vm718_vm0, %v10665_v49, %v5553_v61  ;;  %vm10670_vm0 = vmmov %vm10606_vm6 }
 0x4d4   :  { %4050 = vmatmul.f32.gmra.mxu1 %v8838_v40  ;;  %v2499_v27 = vsel %vm10670_vm0, %v10669_v25, %v5503_v55 }
 0x4d5   :  { %4153 = vmatpush.msra.mxu1 %v10647_v26 }
 0x4d6   :  { %4673 = vmatmul.msk.f32.gmra.mxu0 %vm3606_vm14, %v10563_v36 }
 0x4d7   :  { %4154 = vmatpush.msra.mxu1 %v2584_v53  ;;  %v9126_v47 = vpop.f32.mrf.mxu2  ;;  %v9192_v11 = vpop.permute.xlu1 %3603 }
 0x4d8   :  { %v9175_v12 = vpop.permute.xlu2 %3598  ;;  %v3756_v3 = vadd.f32 %v9126_v47, %v9151_v37 }
 0x4d9   :  { %4155 = vmatpush.msra.mxu1 %v10651_v45 }
 0x4db   :  { %4156 = vmatpush.msra.mxu1 %v2492_v18 }
 0x4dc   :  { %4157 = vmatmul.f32.vlgmr.msra.gmra.mxu1 %v8624_v28 }
 0x4dd   :  { %4257 = vmatpush.msrb.mxu1 %v3148_v24  ;;  %v10671_v24 = vld [vmem:[#allocation47_spill] sm:$0xff] }
 0x4de   :  { %4674 = vmatmul.msk.f32.gmra.mxu0 %vm3606_vm14, %v10572_v14 }
 0x4df   :  { %4258 = vmatpush.msrb.mxu1 %v3142_v13  ;;  %v9146_v57 = vpop.f32.mrf.mxu2 }
 0x4e1   :  { %4259 = vmatpush.msrb.mxu1 %v8629_v17  ;;  %v9137_v17 = vpop.f32.mrf.mxu3 }
 0x4e3   :  { %4260 = vmatpush.msrb.mxu1 %v8634_v34  ;;  %v3637_v34 = vadd.f32 %v8808_v54, %v9132_v19 }
 0x4e4   :  { %4160 = vmatmul.f32.gmra.mxu1 %v8709_v8 }
 0x4e5   :  { %4261 = vmatpush.msrb.mxu1 %v2962_v38  ;;  %v3666_v42 = vadd.f32 %v9031_v31, %v3637_v34  ;;  %v3732_v31 = vpop.f32.mrf.mxu1 }
 0x4e6   :  { %4675 = vmatmul.msk.f32.gmra.mxu0 %vm3606_vm14, %v8464_v35 }
 0x4e7   :  { %4262 = vmatpush.msrb.mxu1 %v2956_v63  ;;  %v3761_v45 = vpop.f32.mrf.mxu2 }
 0x4e8   :  { %v3762_v49 = vadd.f32 %v3761_v45, %v9192_v11 }
 0x4e9   :  { %4263 = vmatpush.msrb.mxu1 %v10658_v23  ;;  %v9156_v54 = vpop.f32.mrf.mxu3 }
 0x4ea   :  { %v3694_v39 = vpop.f32.mrf.mxu0 }
 0x4eb   :  { %4264 = vmatpush.msrb.mxu1 %v10659_v32  ;;  %v3695_v9 = vadd.f32 %v3694_v39, %v3666_v42 }
 0x4ec   :  { %4163 = vmatmul.f32.gmra.mxu1 %v8777_v16 }
 0x4ed   :  { %4265 = vmatpush.msrb.mxu1 %v10660_v15  ;;  %v3724_v43 = vadd.f32 %v3723_v2, %v3695_v9  ;;  %v10667_v2 = vunpack.i.l.bf16 %v10663_v62  ;;  %v3759_v9 = vadd.f32 %v9146_v57, %v9175_v12 }
 0x4ee   :  { %4676 = vmatmul.msk.f32.vlgmr.msra.gmra.mxu0 %vm3606_vm14, %v10580_v21  ;;  %v3669_v21 = vadd.f32 %v9056_v44, %v3640_v52  ;;  %v3643_v44 = vadd.f32 %v9069_v10, %v9175_v12  ;;  %v3646_v10 = vadd.f32 %v9083_v51, %v9192_v11 }
 0x4ef   :  { %4266 = vmatpush.msrb.mxu1 %v10662_v60  ;;  %v9166_v26 = vmax.f32 %v3724_v43, 0.0  ;;  %v2591_v6 = vsel %vm671_vm1, %v10667_v2, %v5538_v20  ;;  %v3868_v38 = vpop.f32.mrf.mxu2  ;;  %v3788_v43 = vadd.f32 %v9156_v54, %v3759_v9 }
 0x4f0   :  { %v3672_v7 = vadd.f32 %v9076_v48, %v3643_v44  ;;  %v3753_v48 = vadd.f32 %v9107_v33, %v9132_v19 }
 0x4f1   :  { %4267 = vmatpush.msrb.mxu1 %v10664_v29  ;;  %4339 = vrot.lane.b32.xlu2 %v9166_v26, %s5787_s26  ;;  %v3790_v18 = vpop.f32.mrf.mxu3 }
 0x4f2   :  { %v3697_v53 = vpop.f32.mrf.mxu0  ;;  %v3791_v55 = vadd.f32 %v3790_v18, %v3762_v49 }
 0x4f3   :  { %4268 = vmatpush.msrb.mxu1 %v2677_v22  ;;  %v3698_v58 = vadd.f32 %v3697_v53, %v3669_v21  ;;  %v3869_v21 = vadd.f32 %v3868_v38, %v9132_v19 }
 0x4f4   :  { %4166 = vmatmul.f32.gmra.mxu1 %v8838_v40 }
 0x4f5   :  { %4269 = vmatpush.msrb.mxu1 %v2591_v6  ;;  %v3727_v50 = vadd.f32 %v3726_v46, %v3698_v58 }
 0x4f6   :  { %4677 = vmatmul.msk.f32.gmra.mxu0 %vm3606_vm14, %v10563_v36 }
 0x4f7   :  { %4270 = vmatpush.msrb.mxu1 %v10668_v59  ;;  %v9186_v5 = vmax.f32 %v3727_v50, 0.0  ;;  %v3871_v42 = vpop.f32.mrf.mxu2 }
 0x4f8   :  { %v3810_v13 = vpop.f32.mrf.mxu1  ;;  %v3872_v18 = vadd.f32 %v3871_v42, %v9151_v37 }
 0x4f9   :  { %4271 = vmatpush.msrb.mxu1 %v2499_v27  ;;  %4341 = vrot.lane.b32.xlu0 %v9186_v5, %s5787_s26  ;;  %v3897_v23 = vpop.f32.mrf.mxu3 }
 0x4fa   :  { %v3700_v46 = vpop.f32.mrf.mxu0  ;;  %v3898_v58 = vadd.f32 %v3897_v23, %v3869_v21 }
 0x4fb   :  { %4272 = vmatpush.msrb.mxu1 %v10671_v24  ;;  %v3701_v4 = vadd.f32 %v3700_v46, %v3672_v7 }
 0x4fc   :  { %4273 = vmatmul.f32.vlgmr.msrb.gmra.mxu1 %v8624_v28  ;;  %v3675_v28 = vadd.f32 %v9095_v30, %v3646_v10 }
 0x4fd   :  { %v3730_v36 = vadd.f32 %v3729_v56, %v3701_v4 }
 0x4fe   :  { %4678 = vmatmul.msk.f32.gmra.mxu0 %vm3606_vm14, %v10572_v14  ;;  %v3782_v14 = vadd.f32 %v9119_v0, %v3753_v48  ;;  %v3785_v0 = vadd.f32 %v9137_v17, %v3756_v3 }
 0x4ff   :  { %v9199_v41 = vmax.f32 %v3730_v36, 0.0  ;;  %v3874_v62 = vpop.f32.mrf.mxu2 }
 0x500   :  { %v3811_v33 = vadd.f32 %v3810_v13, %v3782_v14  ;;  %v3875_v23 = vadd.f32 %v3874_v62, %v9175_v12 }
 0x501   :  { %v3813_v63 = vpop.f32.mrf.mxu1  ;;  %4343 = vrot.lane.b32.xlu1 %v9199_v41, %s5787_s26  ;;  %v3900_v61 = vpop.f32.mrf.mxu3 }
 0x502   :  { %v3814_v47 = vadd.f32 %v3813_v63, %v3785_v0  ;;  %v3901_v7 = vadd.f32 %v3900_v61, %v3872_v18 }
 0x503   :  { %v3703_v56 = vpop.f32.mrf.mxu0 }
 0x504   :  { %v3704_v34 = vadd.f32 %v3703_v56, %v3675_v28  ;;  %4276 = vmatmul.f32.gmra.mxu1 %v8709_v8 }
 0x506   :  { %v3733_v51 = vadd.f32 %v3732_v31, %v3704_v34  ;;  %4679 = vmatmul.msk.f32.gmra.mxu0 %vm3606_vm14, %v8464_v35  ;;  %v5786_v35 = vld [vmem:[%s9898_s2 + $0x18] sm:$0xff] }
 0x507   :  { %v3877_v57 = vpop.f32.mrf.mxu2 }
 0x508   :  { %v9210_v32 = vmax.f32 %v3733_v51, 0.0  ;;  %v3878_v42 = vadd.f32 %v3877_v57, %v9192_v11 }
 0x509   :  { %v3816_v15 = vpop.f32.mrf.mxu1  ;;  %v3903_v17 = vpop.f32.mrf.mxu3 }
 0x50a   :  { %4345 = vrot.lane.b32.xlu2 %v9210_v32, %s5787_s26  ;;  %v3817_v52 = vadd.f32 %v3816_v15, %v3788_v43  ;;  %v3904_v56 = vadd.f32 %v3903_v17, %v3875_v23 }
 0x50b   :  { %v3839_v30 = vpop.f32.mrf.mxu0 }
 0x50c   :  { %v3840_v8 = vadd.f32 %v3839_v30, %v3811_v33  ;;  %4279 = vmatmul.f32.gmra.mxu1 %v8777_v16 }
 0x50e   :  { %v9218_v39 = vmax.f32 %v3840_v8, 0.0  ;;  %4680 = vmatmul.msk.f32.vlgmr.msrb.gmra.mxu0 %vm3606_vm14, %v5786_v35 }
 0x50f   :  { %v3984_v45 = vpop.f32.mrf.mxu2 }
 0x510   :  { %4347 = vrot.lane.b32.xlu0 %v9218_v39, %s5787_s26 }
 0x511   :  { %v3819_v60 = vpop.f32.mrf.mxu1  ;;  %v3906_v6 = vpop.f32.mrf.mxu3 }
 0x512   :  { %v3820_v54 = vadd.f32 %v3819_v60, %v3791_v55  ;;  %v3907_v61 = vadd.f32 %v3906_v6, %v3878_v42  ;;  %v3985_v60 = vadd.f32 %v3984_v45, %v9132_v19 }
 0x513   :  { %v3842_v16 = vpop.f32.mrf.mxu0 }
 0x514   :  { %v3843_v20 = vadd.f32 %v3842_v16, %v3814_v47  ;;  %4282 = vmatmul.f32.gmra.mxu1 %v8838_v40 }
 0x516   :  { %v9230_v29 = vmax.f32 %v3843_v20, 0.0 }
 0x517   :  { %v3987_v4 = vpop.f32.mrf.mxu2 }
 0x518   :  { %4349 = vrot.lane.b32.xlu1 %v9230_v29, %s5787_s26 }
 0x519   :  { %v3926_v31 = vpop.f32.mrf.mxu1  ;;  %v4013_v50 = vpop.f32.mrf.mxu3 }
 0x51a   :  { %v3927_v44 = vadd.f32 %v3926_v31, %v3898_v58  ;;  %v4014_v16 = vadd.f32 %v4013_v50, %v3985_v60 }
 0x51b   :  { %v3845_v22 = vpop.f32.mrf.mxu0 }
 0x51c   :  { %v3846_v1 = vadd.f32 %v3845_v22, %v3817_v52  ;;  %v3988_v52 = vadd.f32 %v3987_v4, %v9151_v37 }
 0x51e   :  { %v9235_v2 = vmax.f32 %v3846_v1, 0.0 }
 0x51f   :  { %v3990_v51 = vpop.f32.mrf.mxu2 }
 0x520   :  { %4351 = vrot.lane.b32.xlu2 %v9235_v2, %s5787_s26  ;;  %v3991_v21 = vadd.f32 %v3990_v51, %v9175_v12 }
 0x521   :  { %v3929_v40 = vpop.f32.mrf.mxu1  ;;  %v4016_v63 = vpop.f32.mrf.mxu3 }
 0x522   :  { %v3930_v10 = vadd.f32 %v3929_v40, %v3901_v7  ;;  %v4017_v57 = vadd.f32 %v4016_v63, %v3988_v52 }
 0x523   :  { %v3848_v53 = vpop.f32.mrf.mxu0 }
 0x524   :  { %v3849_v59 = vadd.f32 %v3848_v53, %v3820_v54 }
 0x526   :  { %v9240_v25 = vmax.f32 %v3849_v59, 0.0 }
 0x527   :  { %v3993_v9 = vpop.f32.mrf.mxu2 }
 0x528   :  { %4353 = vrot.lane.b32.xlu0 %v9240_v25, %s5787_s26  ;;  %4414 = vrot.lane.b32.xlu2 %v9166_v26, %s5790_s10  ;;  %v3994_v18 = vadd.f32 %v3993_v9, %v9192_v11 }
 0x529   :  { %v3932_v27 = vpop.f32.mrf.mxu1  ;;  %v4019_v3 = vpop.f32.mrf.mxu3 }
 0x52a   :  { %v3933_v14 = vadd.f32 %v3932_v27, %v3904_v56  ;;  %v4020_v58 = vadd.f32 %v4019_v3, %v3991_v21 }
 0x52b   :  { %v3955_v24 = vpop.f32.mrf.mxu0 }
 0x52c   :  { %v3956_v13 = vadd.f32 %v3955_v24, %v3927_v44 }
 0x52e   :  { %v9247_v46 = vmax.f32 %v3956_v13, 0.0 }
 0x52f   :  { %v4100_v1 = vpop.f32.mrf.mxu2 }
 0x530   :  { %4416 = vrot.lane.b32.xlu0 %v9186_v5, %s5790_s10  ;;  %4355 = vrot.lane.b32.xlu1 %v9247_v46, %s5787_s26  ;;  %v4101_v23 = vadd.f32 %v4100_v1, %v9132_v19 }
 0x531   :  { %v3935_v36 = vpop.f32.mrf.mxu1  ;;  %v4022_v20 = vpop.f32.mrf.mxu3 }
 0x532   :  { %v3936_v0 = vadd.f32 %v3935_v36, %v3907_v61  ;;  %v4023_v4 = vadd.f32 %v4022_v20, %v3994_v18 }
 0x533   :  { %v3958_v38 = vpop.f32.mrf.mxu0 }
 0x534   :  { %v3959_v48 = vadd.f32 %v3958_v38, %v3930_v10 }
 0x536   :  { %v9254_v28 = vmax.f32 %v3959_v48, 0.0 }
 0x537   :  { %v4103_v45 = vpop.f32.mrf.mxu2 }
 0x538   :  { %4357 = vrot.lane.b32.xlu2 %v9254_v28, %s5787_s26  ;;  %4418 = vrot.lane.b32.xlu1 %v9199_v41, %s5790_s10 }
 0x539   :  { %v4042_v34 = vpop.f32.mrf.mxu1  ;;  %v4129_v6 = vpop.f32.mrf.mxu3 }
 0x53a   :  { %v4043_v43 = vadd.f32 %v4042_v34, %v4014_v16 }
 0x53b   :  { %v3961_v15 = vpop.f32.mrf.mxu0 }
 0x53c   :  { %v3962_v33 = vadd.f32 %v3961_v15, %v3933_v14  ;;  %v4130_v14 = vadd.f32 %v4129_v6, %v4101_v23 }
 0x53e   :  { %v9261_v30 = vmax.f32 %v3962_v33, 0.0  ;;  %v4104_v33 = vadd.f32 %v4103_v45, %v9151_v37 }
 0x53f   :  { %v4106_v38 = vpop.f32.mrf.mxu2 }
 0x540   :  { %4359 = vrot.lane.b32.xlu0 %v9261_v30, %s5787_s26  ;;  %4420 = vrot.lane.b32.xlu2 %v9210_v32, %s5790_s10  ;;  %v4107_v20 = vadd.f32 %v4106_v38, %v9175_v12 }
 0x541   :  { %v4045_v8 = vpop.f32.mrf.mxu1  ;;  %4424 = vrot.lane.b32.xlu1 %v9230_v29, %s5790_s10  ;;  %v4132_v24 = vpop.f32.mrf.mxu3 }
 0x542   :  { %v4046_v40 = vadd.f32 %v4045_v8, %v4017_v57 }
 0x543   :  { %v3964_v35 = vpop.f32.mrf.mxu0 }
 0x544   :  { %v3965_v47 = vadd.f32 %v3964_v35, %v3936_v0  ;;  %v4133_v0 = vadd.f32 %v4132_v24, %v4104_v33 }
 0x546   :  { %v9270_v62 = vmax.f32 %v3965_v47, 0.0 }
 0x547   :  { %v4109_v61 = vpop.f32.mrf.mxu2 }
 0x548   :  { %4422 = vrot.lane.b32.xlu0 %v9218_v39, %s5790_s10  ;;  %4426 = vrot.lane.b32.xlu2 %v9235_v2, %s5790_s10  ;;  %v4110_v6 = vadd.f32 %v4109_v61, %v9192_v11 }
 0x549   :  { %v4048_v17 = vpop.f32.mrf.mxu1  ;;  %4361 = vrot.lane.b32.xlu1 %v9270_v62, %s5787_s26  ;;  %v4135_v56 = vpop.f32.mrf.mxu3 }
 0x54a   :  { %v4049_v27 = vadd.f32 %v4048_v17, %v4020_v58  ;;  %v4136_v52 = vadd.f32 %v4135_v56, %v4107_v20 }
 0x54b   :  { %v4071_v31 = vpop.f32.mrf.mxu0  ;;  %v9317_v60 = vpop.permute.xlu2 %4339 }
 0x54c   :  { %v4072_v49 = vadd.f32 %v4071_v31, %v4043_v43 }
 0x54e   :  { %v9279_v22 = vmax.f32 %v4072_v49, 0.0 }
 0x54f   :  { %v4216_v31 = vpop.f32.mrf.mxu2 }
 0x550   :  { %10672 = vst [vmem:[#allocation26_spill] sm:$0xff] %v9279_v22  ;;  %4428 = vrot.lane.b32.xlu0 %v9240_v25, %s5790_s10  ;;  %4363 = vrot.lane.b32.xlu2 %v9279_v22, %s5787_s26 }
 0x551   :  { %v4051_v55 = vpop.f32.mrf.mxu1  ;;  %4430 = vrot.lane.b32.xlu1 %v9247_v46, %s5790_s10  ;;  %v4138_v35 = vpop.f32.mrf.mxu3 }
 0x552   :  { %v4052_v36 = vadd.f32 %v4051_v55, %v4023_v4 }
 0x553   :  { %v4074_v54 = vpop.f32.mrf.mxu0 }
 0x554   :  { %v4075_v53 = vadd.f32 %v4074_v54, %v4046_v40 }
 0x556   :  { %v9288_v59 = vmax.f32 %v4075_v53, 0.0  ;;  %v4139_v53 = vadd.f32 %v4138_v35, %v4110_v6 }
 0x557   :  { %v4219_v45 = vpop.f32.mrf.mxu2 }
 0x558   :  { %10673 = vst [vmem:[#allocation22_spill] sm:$0xff] %v9288_v59  ;;  %4365 = vrot.lane.b32.xlu0 %v9288_v59, %s5787_s26  ;;  %4432 = vrot.lane.b32.xlu2 %v9254_v28, %s5790_s10 }
 0x559   :  { %4436 = vrot.lane.b32.xlu1 %v9270_v62, %s5790_s10  ;;  %v4158_v50 = vpop.f32.mrf.mxu1  ;;  %v4245_v1 = vpop.f32.mrf.mxu3 }
 0x55a   :  { %v4159_v51 = vadd.f32 %v4158_v50, %v4130_v14 }
 0x55b   :  { %v4077_v44 = vpop.f32.mrf.mxu0 }
 0x55c   :  { %v4078_v13 = vadd.f32 %v4077_v44, %v4049_v27  ;;  %v4217_v44 = vadd.f32 %v4216_v31, %v9132_v19 }
 0x55e   :  { %v9297_v7 = vmax.f32 %v4078_v13, 0.0 }
 0x55f   :  { %v4222_v23 = vpop.f32.mrf.mxu2 }
 0x560   :  { %10674 = vst [vmem:[#allocation6_spill] sm:$0xff] %v9297_v7  ;;  %4434 = vrot.lane.b32.xlu0 %v9261_v30, %s5790_s10  ;;  %4438 = vrot.lane.b32.xlu2 %v9279_v22, %s5790_s10 }
 0x561   :  { %4367 = vrot.lane.b32.xlu1 %v9297_v7, %s5787_s26  ;;  %v4161_v10 = vpop.f32.mrf.mxu1  ;;  %v4248_v18 = vpop.f32.mrf.mxu3 }
 0x562   :  { %v4162_v47 = vadd.f32 %v4161_v10, %v4133_v0 }
 0x563   :  { %v4080_v63 = vpop.f32.mrf.mxu0 }
 0x564   :  { %v4081_v48 = vadd.f32 %v4080_v63, %v4052_v36  ;;  %v9326_v49 = vpop.permute.xlu2 %4345  ;;  %v4246_v36 = vadd.f32 %v4245_v1, %v4217_v44  ;;  %v4387_v63 = vlaneseq }
 0x566   :  { %v9306_v34 = vmax.f32 %v4081_v48, 0.0 }
 0x567   :  { %v4225_v35 = vpop.f32.mrf.mxu2 }
 0x568   :  { %10675 = vst [vmem:[#allocation18_spill] sm:$0xff] %v9306_v34  ;;  %4440 = vrot.lane.b32.xlu0 %v9288_v59, %s5790_s10  ;;  %4369 = vrot.lane.b32.xlu2 %v9306_v34, %s5787_s26 }
 0x569   :  { %4442 = vrot.lane.b32.xlu1 %v9297_v7, %s5790_s10  ;;  %v4164_v15 = vpop.f32.mrf.mxu1  ;;  %v4251_v14 = vpop.f32.mrf.mxu3 }
 0x56a   :  { %v4165_v57 = vadd.f32 %v4164_v15, %v4136_v52 }
 0x56b   :  { %v4187_v42 = vpop.f32.mrf.mxu0 }
 0x56c   :  { %v4188_v3 = vadd.f32 %v4187_v42, %v4159_v51  ;;  %v9354_v51 = vand.u32 127, %v4387_v63  ;;  %v9358_v42 = vpop.permute.xlu0 %4341 }
 0x56e   :  { %v9315_v8 = vmax.f32 %v4188_v3, 0.0  ;;  %vm4389_vm1 = vcmp.lt.s32.totalorder %v9354_v51, 127  ;;  %vm4462_vm2 = vcmp.lt.s32.totalorder %v9354_v51, 110  ;;  %vm4535_vm14 = vcmp.lt.s32.totalorder %v9354_v51, 109 }
 0x570   :  { %10676 = vst [vmem:[#allocation38_spill] sm:$0xff] %v9315_v8  ;;  %4371 = vrot.lane.b32.xlu0 %v9315_v8, %s5787_s26  ;;  %4444 = vrot.lane.b32.xlu2 %v9306_v34, %s5790_s10 }
 0x571   :  { %v4167_v9 = vpop.f32.mrf.mxu1 }
 0x572   :  { %v4168_v27 = vadd.f32 %v4167_v9, %v4139_v53 }
 0x573   :  { %v4190_v16 = vpop.f32.mrf.mxu0  ;;  %v9350_v10 = vpop.permute.xlu1 %4343 }
 0x574   :  { %v4191_v17 = vadd.f32 %v4190_v16, %v4162_v47  ;;  %10680 = vst [vmem:[#allocation36_spill] sm:$0xff] %v9350_v10  ;;  %v4254_v47 = vpop.f32.mrf.mxu3  ;;  %v4220_v16 = vadd.f32 %v4219_v45, %v9151_v37  ;;  %v4223_v37 = vadd.f32 %v4222_v23, %v9175_v12 }
 0x576   :  { %v9324_v43 = vmax.f32 %v4191_v17, 0.0  ;;  %v4226_v17 = vadd.f32 %v4225_v35, %v9192_v11  ;;  %v4249_v31 = vadd.f32 %v4248_v18, %v4220_v16 }
 0x578   :  { %10677 = vst [vmem:[#allocation33_spill] sm:$0xff] %v9324_v43  ;;  %4446 = vrot.lane.b32.xlu0 %v9315_v8, %s5790_s10  ;;  %4373 = vrot.lane.b32.xlu1 %v9324_v43, %s5787_s26  ;;  %v4255_v1 = vadd.f32 %v4254_v47, %v4226_v17 }
 0x579   :  { %v4274_v54 = vpop.f32.mrf.mxu1 }
 0x57a   :  { %v9335_v58 = vpop.permute.xlu2 %4351  ;;  %v4275_v38 = vadd.f32 %v4274_v54, %v4246_v36 }
 0x57b   :  { %v4193_v55 = vpop.f32.mrf.mxu0 }
 0x57c   :  { %v4194_v40 = vadd.f32 %v4193_v55, %v4165_v57  ;;  %v4306_v57 = vpop.f32.mrf.mxu2 }
 0x57e   :  { %v9333_v21 = vmax.f32 %v4194_v40, 0.0  ;;  %v4312_v40 = vpop.f32.mrf.mxu3 }
 0x580   :  { %10678 = vst [vmem:[#allocation34_spill] sm:$0xff] %v9333_v21  ;;  %4375 = vrot.lane.b32.xlu2 %v9333_v21, %s5787_s26  ;;  %4448 = vrot.lane.b32.xlu1 %v9324_v43, %s5790_s10 }
 0x581   :  { %v4277_v4 = vpop.f32.mrf.mxu1 }
 0x582   :  { %v9352_v19 = vpop.permute.xlu2 %4414  ;;  %v9377_v9 = vpop.permute.xlu0 %4347  ;;  %v4278_v55 = vadd.f32 %v4277_v4, %v4249_v31 }
 0x583   :  { %v4196_v50 = vpop.f32.mrf.mxu0  ;;  %10681 = vst [vmem:[#allocation20_spill] sm:$0xff] %v9352_v19 }
 0x584   :  { %v4197_v24 = vadd.f32 %v4196_v50, %v4168_v27  ;;  %v4307_v11 = vadd.f32 %v4306_v57, %v4278_v55  ;;  %v4252_v50 = vadd.f32 %v4251_v14, %v4223_v37  ;;  %v4309_v4 = vpop.f32.mrf.mxu2 }
 0x586   :  { %v9342_v13 = vmax.f32 %v4197_v24, 0.0  ;;  %v9405_v18 = vmax.f32 %v4307_v11, 0.0 }
 0x588   :  { %10679 = vst [vmem:[#allocation23_spill] sm:$0xff] %v9342_v13  ;;  %4377 = vrot.lane.b32.xlu0 %v9342_v13, %s5787_s26  ;;  %4450 = vrot.lane.b32.xlu2 %v9333_v21, %s5790_s10 }
 0x589   :  { %4491 = vrot.lane.b32.xlu1 %v9199_v41, %s5791_s11  ;;  %v4280_v33 = vpop.f32.mrf.mxu1 }
 0x58a   :  { %v9367_v3 = vpop.permute.xlu1 %4349  ;;  %v4281_v24 = vadd.f32 %v4280_v33, %v4252_v50 }
 0x58b   :  { %v4303_v48 = vpop.f32.mrf.mxu0 }
 0x58c   :  { %v4304_v56 = vadd.f32 %v4303_v48, %v4275_v38  ;;  %v4310_v12 = vadd.f32 %v4309_v4, %v4281_v24 }
 0x58e   :  { %v9356_v15 = vmax.f32 %v4304_v56, 0.0  ;;  %v9423_v56 = vmax.f32 %v4310_v12, 0.0 }
 0x590   :  { %10682 = vst [vmem:[#allocation46_spill] sm:$0xff] %v9356_v15  ;;  %4452 = vrot.lane.b32.xlu0 %v9342_v13, %s5790_s10  ;;  %4487 = vrot.lane.b32.xlu2 %v9166_v26, %s5791_s11 }
 0x591   :  { %4379 = vrot.lane.b32.xlu1 %v9356_v15, %s5787_s26  ;;  %v4283_v52 = vpop.f32.mrf.mxu1  ;;  %10685 = vst [vmem:[#allocation13_spill] sm:$0xff] %v9423_v56 }
 0x592   :  { %v9369_v61 = vpop.permute.xlu2 %4357  ;;  %v4284_v6 = vadd.f32 %v4283_v52, %v4255_v1 }
 0x593   :  { %v9375_v0 = vsel %vm4389_vm1, %v9367_v3, %v9369_v61 }
 0x594   :  { %v4313_v45 = vadd.f32 %v4312_v40, %v4284_v6 }
 0x596   :  { %v9407_v36 = vmax.f32 %v4313_v45, 0.0 }
 0x598   :  { %4489 = vrot.lane.b32.xlu0 %v9186_v5, %s5791_s11  ;;  %4493 = vrot.lane.b32.xlu2 %v9210_v32, %s5791_s11  ;;  %10683 = vst [vmem:[#allocation12_spill] sm:$0xff] %v9407_v36 }
 0x599   :  { %4454 = vrot.lane.b32.xlu1 %v9356_v15, %s5790_s10 }
 0x59a   :  { %v9386_v20 = vpop.permute.xlu2 %4420  ;;  %v9389_v54 = vpop.permute.xlu0 %4353 }
 0x5a0   :  { %4495 = vrot.lane.b32.xlu0 %v9218_v39, %s5791_s11  ;;  %4499 = vrot.lane.b32.xlu2 %v9235_v2, %s5791_s11 }
 0x5a1   :  { %4497 = vrot.lane.b32.xlu1 %v9230_v29, %s5791_s11 }
 0x5a2   :  { %v9398_v53 = vpop.permute.xlu2 %4426  ;;  %v4356_v27 = vpop.permute.xlu1 %4355 }
 0x5a3   :  { %v9403_v44 = vsel %vm4389_vm1, %v9377_v9, %v4356_v27  ;;  %v9415_v38 = vpop.permute.xlu0 %4416 }
 0x5a8   :  { %4501 = vrot.lane.b32.xlu0 %v9240_v25, %s5791_s11  ;;  %4381 = vrot.lane.b32.xlu2 %v9405_v18, %s5787_s26 }
 0x5a9   :  { %4385 = vrot.lane.b32.xlu1 %v9407_v36, %s5787_s26 }
 0x5aa   :  { %v4364_v63 = vpop.permute.xlu2 %4363  ;;  %v9421_v48 = vpop.permute.xlu1 %4418 }
 0x5ab   :  { %v9419_v23 = vsel %vm4389_vm1, %v4356_v27, %v4364_v63  ;;  %10684 = vst [vmem:[#allocation67_spill] sm:$0xff] %v9421_v48 }
 0x5b0   :  { %4383 = vrot.lane.b32.xlu0 %v9423_v56, %s5787_s26  ;;  %4456 = vrot.lane.b32.xlu2 %v9405_v18, %s5790_s10 }
 0x5b1   :  { %4460 = vrot.lane.b32.xlu1 %v9407_v36, %s5790_s10 }
 0x5b2   :  { %v4360_v14 = vpop.permute.xlu0 %4359  ;;  %v4433_v33 = vpop.permute.xlu2 %4432 }
 0x5b3   :  { %v9435_v35 = vsel %vm4389_vm1, %v9335_v58, %v4360_v14  ;;  %v9437_v47 = vpop.permute.xlu1 %4424 }
 0x5b4   :  { %v9442_v16 = vsel %vm4462_vm2, %v9437_v47, %v4433_v33 }
 0x5b8   :  { %4458 = vrot.lane.b32.xlu0 %v9423_v56, %s5790_s10  ;;  %4505 = vrot.lane.b32.xlu2 %v9254_v28, %s5791_s11 }
 0x5b9   :  { %4503 = vrot.lane.b32.xlu1 %v9247_v46, %s5791_s11 }
 0x5ba   :  { %v9450_v17 = vpop.permute.xlu0 %4422  ;;  %v4439_v31 = vpop.permute.xlu2 %4438 }
 0x5bb   :  { %v4362_v52 = vpop.permute.xlu1 %4361 }
 0x5bc   :  { %v9455_v1 = vsel %vm4389_vm1, %v9389_v54, %v4362_v52 }
 0x5c0   :  { %4507 = vrot.lane.b32.xlu0 %v9261_v30, %s5791_s11  ;;  %4511 = vrot.lane.b32.xlu2 %v9279_v22, %s5791_s11 }
 0x5c1   :  { %4509 = vrot.lane.b32.xlu1 %v9270_v62, %s5791_s11 }
 0x5c2   :  { %v9463_v57 = vpop.permute.xlu0 %4428  ;;  %v4370_v55 = vpop.permute.xlu2 %4369 }
 0x5c3   :  { %v9467_v6 = vsel %vm4389_vm1, %v4362_v52, %v4370_v55  ;;  %v4431_v40 = vpop.permute.xlu1 %4430 }
 0x5c4   :  { %v9471_v37 = vsel %vm4462_vm2, %v4431_v40, %v4439_v31  ;;  %v9476_v11 = vsel %vm4462_vm2, %v9450_v17, %v4431_v40 }
 0x5c8   :  { %4513 = vrot.lane.b32.xlu0 %v9288_v59, %s5791_s11  ;;  %4517 = vrot.lane.b32.xlu2 %v9306_v34, %s5791_s11 }
 0x5c9   :  { %4515 = vrot.lane.b32.xlu1 %v9297_v7, %s5791_s11 }
 0x5ca   :  { %v4366_v45 = vpop.permute.xlu0 %4365  ;;  %v4445_v27 = vpop.permute.xlu2 %4444 }
 0x5cb   :  { %v9487_v50 = vsel %vm4389_vm1, %v9369_v61, %v4366_v45  ;;  %v4437_v24 = vpop.permute.xlu1 %4436 }
 0x5cc   :  { %v9491_v4 = vsel %vm4462_vm2, %v4437_v24, %v4445_v27  ;;  %v9496_v12 = vsel %vm4462_vm2, %v9463_v57, %v4437_v24 }
 0x5d0   :  { %4519 = vrot.lane.b32.xlu0 %v9315_v8, %s5791_s11  ;;  %4523 = vrot.lane.b32.xlu2 %v9333_v21, %s5791_s11 }
 0x5d1   :  { %4521 = vrot.lane.b32.xlu1 %v9324_v43, %s5791_s11 }
 0x5d2   :  { %v4435_v61 = vpop.permute.xlu0 %4434 }
 0x5d3   :  { %v9507_v52 = vsel %vm4462_vm2, %v9398_v53, %v4435_v61  ;;  %v9509_v40 = vpop.permute.xlu1 %4367 }
 0x5d4   :  { %v9514_v24 = vsel %vm4389_vm1, %v4360_v14, %v9509_v40 }
 0x5d8   :  { %4525 = vrot.lane.b32.xlu0 %v9342_v13, %s5791_s11  ;;  %4529 = vrot.lane.b32.xlu2 %v9405_v18, %s5791_s11 }
 0x5d9   :  { %4527 = vrot.lane.b32.xlu1 %v9356_v15, %s5791_s11 }
 0x5da   :  { %v4441_v21 = vpop.permute.xlu0 %4440  ;;  %v9522_v8 = vpop.permute.xlu2 %4375 }
 0x5db   :  { %v9526_v34 = vsel %vm4462_vm2, %v4433_v33, %v4441_v21  ;;  %v9528_v43 = vpop.permute.xlu1 %4442 }
 0x5dc   :  { %v9533_v14 = vsel %vm4462_vm2, %v4435_v61, %v9528_v43 }
 0x5dd   :  { %10686 = vst [vmem:[#allocation41_spill] sm:$0xff] %v9533_v14 }
 0x5e0   :  { %4531 = vrot.lane.b32.xlu0 %v9423_v56, %s5791_s11 }
 0x5e1   :  { %4533 = vrot.lane.b32.xlu1 %v9407_v36, %s5791_s11 }
 0x5e2   :  { %v4372_v13 = vpop.permute.xlu0 %4371  ;;  %v9539_v15 = vpop.permute.xlu2 %4450 }
 0x5e3   :  { %v9543_v33 = vsel %vm4389_vm1, %v4364_v63, %v4372_v13 }
 0x5e4   :  { %10687 = vst [vmem:[#allocation8_spill] sm:$0xff] %v9543_v33 }
 0x5ea   :  { %v4447_v59 = vpop.permute.xlu0 %4446  ;;  %v9545_v22 = vpop.permute.xlu2 %4487 }
 0x5eb   :  { %10688 = vst [vmem:[#allocation9_spill] sm:$0xff] %v9545_v22  ;;  %v9549_v61 = vsel %vm4462_vm2, %v4439_v31, %v4447_v59  ;;  %v4374_v14 = vpop.permute.xlu1 %4373  ;;  %v4408_v31 = vsel %vm4389_vm1, %v9350_v10, %v9335_v58 }
 0x5ec   :  { %10689 = vst [vmem:[#allocation5_spill] sm:$0xff] %v9549_v61  ;;  %v9553_v56 = vsel %vm4389_vm1, %v4366_v45, %v4374_v14  ;;  %v4572_v10 = vmax.f32 %v9199_v41, %v4408_v31 }
 0x5ed   :  { %10690 = vst [vmem:[#allocation64_spill] sm:$0xff] %v9553_v56 }
 0x5f2   :  { %v9555_v36 = vpop.permute.xlu2 %4493 }
 0x5f3   :  { %v9557_v7 = vpop.permute.xlu1 %4448 }
 0x5f4   :  { %10691 = vst [vmem:[#allocation68_spill] sm:$0xff] %v9557_v7  ;;  %v9562_v63 = vsel %vm4462_vm2, %v4441_v21, %v9557_v7  ;;  %v4481_v21 = vsel %vm4462_vm2, %v9421_v48, %v9398_v53 }
 0x5f5   :  { %10692 = vst [vmem:[#allocation35_spill] sm:$0xff] %v9562_v63 }
 0x5fa   :  { %v9569_v61 = vpop.permute.xlu0 %4377  ;;  %v9571_v45 = vpop.permute.xlu2 %4499 }
 0x5fb   :  { %10693 = vst [vmem:[#allocation28_spill] sm:$0xff] %v9569_v61  ;;  %v9576_v56 = vsel %vm4389_vm1, %v4370_v55, %v9569_v61  ;;  %v9578_v33 = vpop.permute.xlu1 %4491 }
 0x5fc   :  { %10694 = vst [vmem:[#allocation63_spill] sm:$0xff] %v9576_v56  ;;  %v4554_v58 = vsel %vm4535_vm14, %v9578_v33, %v9571_v45 }
 0x5fd   :  { %10695 = vst [vmem:[#allocation27_spill] sm:$0xff] %v9578_v33  ;;  %v4596_v63 = vmax.f32 %v4481_v21, %v4554_v58 }
 0x5ff   :  { %v4620_v7 = vmax.f32 %v4572_v10, %v4596_v63 }
 0x601   :  { %4644 = vst [vmem:[%s9900_s5 + $0x60] sm:$0xff] %v4620_v7 }
 0x602   :  { %v9592_v55 = vpop.permute.xlu0 %4452  ;;  %v4382_v61 = vpop.permute.xlu2 %4381 }
 0x603   :  { %10696 = vst [vmem:[#allocation31_spill] sm:$0xff] %v9592_v55  ;;  %v9597_v53 = vsel %vm4462_vm2, %v4445_v27, %v9592_v55  ;;  %v9601_v48 = vsel %vm4389_vm1, %v4374_v14, %v4382_v61  ;;  %v9603_v33 = vpop.permute.xlu1 %4379  ;;  %v4406_v14 = vsel %vm4389_vm1, %v9317_v60, %v9377_v9 }
 0x604   :  { %10697 = vst [vmem:[#allocation32_spill] sm:$0xff] %v9597_v53  ;;  %v9608_v41 = vsel %vm4389_vm1, %v4372_v13, %v9603_v33  ;;  %v4407_v13 = vsel %vm4389_vm1, %v9358_v42, %v9367_v3  ;;  %v4560_v58 = vmax.f32 %v9166_v26, %v4406_v14  ;;  %v4480_v3 = vsel %vm4462_vm2, %v9415_v38, %v9437_v47 }
 0x605   :  { %10698 = vst [vmem:[#allocation59_spill] sm:$0xff] %v9608_v41  ;;  %v4567_v41 = vmax.f32 %v9230_v29, %v9375_v0  ;;  %v4409_v47 = vsel %vm4389_vm1, %v9326_v49, %v9389_v54 }
 0x60a   :  { %v4490_v7 = vpop.permute.xlu0 %4489  ;;  %v9610_v10 = vpop.permute.xlu2 %4456 }
 0x60b   :  { %v9612_v63 = vpop.permute.xlu1 %4454 }
 0x60c   :  { %10699 = vst [vmem:[#allocation55_spill] sm:$0xff] %v9612_v63  ;;  %v9617_v27 = vsel %vm4462_vm2, %v4447_v59, %v9612_v63  ;;  %v4479_v59 = vsel %vm4462_vm2, %v9352_v19, %v9450_v17  ;;  %v4566_v17 = vmax.f32 %v9186_v5, %v4407_v13 }
 0x60d   :  { %10700 = vst [vmem:[#allocation44_spill] sm:$0xff] %v9617_v27 }
 0x612   :  { %v4496_v31 = vpop.permute.xlu0 %4495  ;;  %v9627_v21 = vpop.permute.xlu2 %4505 }
 0x613   :  { %v4552_v55 = vsel %vm4535_vm14, %v9545_v22, %v4496_v31  ;;  %v4498_v9 = vpop.permute.xlu1 %4497 }
 0x614   :  { %v4584_v27 = vmax.f32 %v4479_v59, %v4552_v55  ;;  %v4549_v26 = vsel %vm4535_vm14, %v4498_v9, %v9627_v21  ;;  %v4553_v14 = vsel %vm4535_vm14, %v4490_v7, %v4498_v9  ;;  %v4562_v59 = vmax.f32 %v9247_v46, %v9419_v23 }
 0x615   :  { %v4590_v22 = vmax.f32 %v4480_v3, %v4553_v14  ;;  %v4591_v53 = vmax.f32 %v9442_v16, %v4549_v26 }
 0x616   :  { %v4608_v63 = vmax.f32 %v4560_v58, %v4584_v27  ;;  %v4561_v58 = vmax.f32 %v9218_v39, %v9403_v44  ;;  %v4573_v39 = vmax.f32 %v9235_v2, %v9435_v35 }
 0x617   :  { %v4614_v19 = vmax.f32 %v4566_v17, %v4590_v22  ;;  %v4615_v56 = vmax.f32 %v4567_v41, %v4591_v53  ;;  %v4482_v22 = vsel %vm4462_vm2, %v9386_v20, %v9463_v57  ;;  %v4411_v17 = vsel %vm4389_vm1, %v4382_v61, %v9358_v42 }
 0x618   :  { %4632 = vst [vmem:[%s9900_s5] sm:$0xff] %v4608_v63  ;;  %v4571_v23 = vmax.f32 %v9405_v18, %v4411_v17  ;;  %v4484_v42 = vsel %vm4462_vm2, %v9610_v10, %v9415_v38  ;;  %v4579_v38 = vmax.f32 %v9240_v25, %v9455_v1  ;;  %v4396_v25 = vsel %vm4389_vm1, %v9509_v40, %v9522_v8  ;;  %v10706_v17 = vld [vmem:[#allocation5_spill] sm:$0xff] }
 0x619   :  { %4638 = vst [vmem:[%s9900_s5 + $0x30] sm:$0xff] %v4614_v19  ;;  %v4578_v19 = vmax.f32 %v9210_v32, %v4409_v47  ;;  %v4568_v1 = vmax.f32 %v9254_v28, %v9487_v50 }
 0x61a   :  { %4639 = vst [vmem:[%s9900_s5 + $0x38] sm:$0xff] %v4615_v56  ;;  %v4502_v5 = vpop.permute.xlu0 %4501  ;;  %v9663_v29 = vpop.permute.xlu2 %4511 }
 0x61b   :  { %v4555_v0 = vsel %vm4535_vm14, %v9555_v36, %v4502_v5  ;;  %v9672_v54 = vpop.permute.xlu1 %4385 }
 0x61c   :  { %v4602_v16 = vmax.f32 %v4482_v22, %v4555_v0 }
 0x61e   :  { %v4626_v55 = vmax.f32 %v4578_v19, %v4602_v16  ;;  %v10701_v16 = vld [vmem:[#allocation6_spill] sm:$0xff] }
 0x620   :  { %4650 = vst [vmem:[%s9900_s5 + $0x90] sm:$0xff] %v4626_v55  ;;  %v10702_v55 = vld [vmem:[#allocation41_spill] sm:$0xff] }
 0x622   :  { %v9678_v56 = vpop.permute.xlu0 %4383  ;;  %v9680_v53 = vpop.permute.xlu2 %4517 }
 0x623   :  { %v9682_v41 = vpop.permute.xlu1 %4460 }
 0x62a   :  { %v9684_v57 = vpop.permute.xlu0 %4458  ;;  %v9686_v63 = vpop.permute.xlu2 %4523 }
 0x62b   :  { %v4504_v27 = vpop.permute.xlu1 %4503 }
 0x62c   :  { %v4544_v32 = vsel %vm4535_vm14, %v4504_v27, %v9663_v29  ;;  %v4548_v13 = vsel %vm4535_vm14, %v4496_v31, %v4504_v27 }
 0x62d   :  { %v4585_v9 = vmax.f32 %v9476_v11, %v4548_v13  ;;  %v4586_v3 = vmax.f32 %v9471_v37, %v4544_v32 }
 0x62f   :  { %v4609_v26 = vmax.f32 %v4561_v58, %v4585_v9  ;;  %v4610_v14 = vmax.f32 %v4562_v59, %v4586_v3 }
 0x631   :  { %4633 = vst [vmem:[%s9900_s5 + $0x8] sm:$0xff] %v4609_v26  ;;  %v10705_v26 = vld [vmem:[#allocation68_spill] sm:$0xff] }
 0x632   :  { %4634 = vst [vmem:[%s9900_s5 + $0x10] sm:$0xff] %v4610_v14  ;;  %v4508_v46 = vpop.permute.xlu0 %4507  ;;  %v4530_v44 = vpop.permute.xlu2 %4529  ;;  %v4464_v14 = vsel %vm4462_vm2, %v10705_v26, %v9610_v10  ;;  %v4486_v26 = vsel %vm4462_vm2, %v9682_v41, %v9386_v20  ;;  %v10727_v20 = vld [vmem:[#allocation27_spill] sm:$0xff] }
 0x633   :  { %v4550_v37 = vsel %vm4535_vm14, %v9571_v45, %v4508_v46  ;;  %v4557_v2 = vsel %vm4535_vm14, %v4530_v44, %v4490_v7  ;;  %v4510_v35 = vpop.permute.xlu1 %4509  ;;  %v4580_v45 = vmax.f32 %v9270_v62, %v9467_v6 }
 0x634   :  { %v4597_v11 = vmax.f32 %v9507_v52, %v4550_v37  ;;  %v4595_v61 = vmax.f32 %v4484_v42, %v4557_v2  ;;  %v4547_v18 = vsel %vm4535_vm14, %v4510_v35, %v9680_v53  ;;  %v4551_v31 = vsel %vm4535_vm14, %v4502_v5, %v4510_v35  ;;  %v10707_v42 = vld [vmem:[#allocation64_spill] sm:$0xff]  ;;  %v10708_v37 = vld [vmem:[#allocation22_spill] sm:$0xff]  ;;  %v10709_v35 = vld [vmem:[#allocation33_spill] sm:$0xff] }
 0x635   :  { %v4603_v47 = vmax.f32 %v9496_v12, %v4551_v31  ;;  %v4604_v7 = vmax.f32 %v9491_v4, %v4547_v18  ;;  %v4469_v12 = vsel %vm4462_vm2, %v9528_v43, %v9539_v15  ;;  %v4574_v5 = vmax.f32 %v9261_v30, %v9514_v24  ;;  %v10704_v24 = vld [vmem:[#allocation26_spill] sm:$0xff] }
 0x636   :  { %v4621_v22 = vmax.f32 %v4573_v39, %v4597_v11  ;;  %v4619_v52 = vmax.f32 %v4571_v23, %v4595_v61  ;;  %v4569_v2 = vmax.f32 %v10708_v37, %v10707_v42  ;;  %v10710_v11 = vld [vmem:[#allocation35_spill] sm:$0xff] }
 0x637   :  { %v4627_v0 = vmax.f32 %v4579_v38, %v4603_v47  ;;  %v4628_v19 = vmax.f32 %v4580_v45, %v4604_v7  ;;  %v10711_v45 = vld [vmem:[#allocation63_spill] sm:$0xff]  ;;  %v10712_v47 = vld [vmem:[#allocation18_spill] sm:$0xff] }
 0x638   :  { %4645 = vst [vmem:[%s9900_s5 + $0x68] sm:$0xff] %v4621_v22  ;;  %v4581_v7 = vmax.f32 %v10712_v47, %v10711_v45 }
 0x639   :  { %4643 = vst [vmem:[%s9900_s5 + $0x58] sm:$0xff] %v4619_v52 }
 0x63a   :  { %4651 = vst [vmem:[%s9900_s5 + $0x98] sm:$0xff] %v4627_v0  ;;  %v4514_v62 = vpop.permute.xlu0 %4513  ;;  %v10713_v0 = vld [vmem:[#allocation20_spill] sm:$0xff] }
 0x63b   :  { %4652 = vst [vmem:[%s9900_s5 + $0xa0] sm:$0xff] %v4628_v19  ;;  %v4545_v6 = vsel %vm4535_vm14, %v9627_v21, %v4514_v62  ;;  %v4516_v4 = vpop.permute.xlu1 %4515  ;;  %v4575_v21 = vmax.f32 %v10701_v16, %v4396_v25  ;;  %v10714_v19 = vld [vmem:[#allocation55_spill] sm:$0xff] }
 0x63c   :  { %v4592_v40 = vmax.f32 %v9526_v34, %v4545_v6  ;;  %v4542_v28 = vsel %vm4535_vm14, %v4516_v4, %v9686_v63  ;;  %v4546_v50 = vsel %vm4535_vm14, %v4508_v46, %v4516_v4  ;;  %v10703_v34 = vld [vmem:[#allocation8_spill] sm:$0xff]  ;;  %v4483_v25 = vsel %vm4462_vm2, %v10714_v19, %v10713_v0  ;;  %v10717_v4 = vld [vmem:[#allocation59_spill] sm:$0xff] }
 0x63d   :  { %v4598_v27 = vmax.f32 %v10702_v55, %v4546_v50  ;;  %v4599_v32 = vmax.f32 %v4469_v12, %v4542_v28  ;;  %v4563_v59 = vmax.f32 %v10704_v24, %v10703_v34  ;;  %v10718_v12 = vld [vmem:[#allocation38_spill] sm:$0xff]  ;;  %v10720_v50 = vld [vmem:[#allocation44_spill] sm:$0xff]  ;;  %v4392_v55 = vsel %vm4389_vm1, %v9522_v8, %v9678_v56  ;;  %v10724_v24 = vld [vmem:[#allocation13_spill] sm:$0xff] }
 0x63e   :  { %v4616_v13 = vmax.f32 %v4568_v1, %v4592_v40  ;;  %v10716_v1 = vld [vmem:[#allocation9_spill] sm:$0xff]  ;;  %v4564_v40 = vmax.f32 %v10718_v12, %v10717_v4  ;;  %v10719_v28 = vld [vmem:[#allocation46_spill] sm:$0xff]  ;;  %v4413_v8 = vsel %vm4389_vm1, %v9672_v54, %v9326_v49 }
 0x63f   :  { %v4622_v58 = vmax.f32 %v4574_v5, %v4598_v27  ;;  %v4623_v43 = vmax.f32 %v4575_v21, %v4599_v32  ;;  %v10721_v27 = vld [vmem:[#allocation36_spill] sm:$0xff] }
 0x640   :  { %4640 = vst [vmem:[%s9900_s5 + $0x40] sm:$0xff] %v4616_v13  ;;  %v4412_v32 = vsel %vm4389_vm1, %v9678_v56, %v10721_v27  ;;  %v10723_v56 = vld [vmem:[#allocation34_spill] sm:$0xff] }
 0x641   :  { %4646 = vst [vmem:[%s9900_s5 + $0x70] sm:$0xff] %v4622_v58  ;;  %v4576_v34 = vmax.f32 %v10723_v56, %v4392_v55 }
 0x642   :  { %4647 = vst [vmem:[%s9900_s5 + $0x78] sm:$0xff] %v4623_v43  ;;  %v4520_v30 = vpop.permute.xlu0 %4519  ;;  %v10722_v43 = vld [vmem:[#allocation28_spill] sm:$0xff] }
 0x643   :  { %v4540_v9 = vsel %vm4535_vm14, %v9663_v29, %v4520_v30  ;;  %v4522_v3 = vpop.permute.xlu1 %4521  ;;  %v4570_v29 = vmax.f32 %v10709_v35, %v9601_v48  ;;  %v10729_v35 = vld [vmem:[#allocation12_spill] sm:$0xff] }
 0x644   :  { %v4587_v39 = vmax.f32 %v10706_v17, %v4540_v9  ;;  %v4537_v46 = vsel %vm4535_vm14, %v4522_v3, %v4530_v44  ;;  %v4541_v23 = vsel %vm4535_vm14, %v4514_v62, %v4522_v3  ;;  %v4410_v44 = vsel %vm4389_vm1, %v9603_v33, %v9317_v60  ;;  %v10715_v62 = vld [vmem:[#allocation32_spill] sm:$0xff]  ;;  %v10725_v9 = vld [vmem:[#allocation31_spill] sm:$0xff] }
 0x645   :  { %v4593_v61 = vmax.f32 %v10710_v11, %v4541_v23  ;;  %v4594_v18 = vmax.f32 %v4464_v14, %v4537_v46  ;;  %v4466_v3 = vsel %vm4462_vm2, %v10725_v9, %v9682_v41  ;;  %v10726_v14 = vld [vmem:[#allocation67_spill] sm:$0xff] }
 0x646   :  { %v4611_v31 = vmax.f32 %v4563_v59, %v4587_v39  ;;  %v4577_v59 = vmax.f32 %v10724_v24, %v4412_v32  ;;  %v4485_v17 = vsel %vm4462_vm2, %v9684_v57, %v10726_v14 }
 0x647   :  { %v4617_v38 = vmax.f32 %v4569_v2, %v4593_v61  ;;  %v4618_v10 = vmax.f32 %v4570_v29, %v4594_v18  ;;  %v10728_v2 = vld [vmem:[#allocation23_spill] sm:$0xff]  ;;  %v4583_v29 = vmax.f32 %v10729_v35, %v4413_v8 }
 0x648   :  { %4635 = vst [vmem:[%s9900_s5 + $0x18] sm:$0xff] %v4611_v31 }
 0x649   :  { %4641 = vst [vmem:[%s9900_s5 + $0x48] sm:$0xff] %v4617_v38 }
 0x64a   :  { %4642 = vst [vmem:[%s9900_s5 + $0x50] sm:$0xff] %v4618_v10  ;;  %v4526_v48 = vpop.permute.xlu0 %4525 }
 0x64b   :  { %v4543_v22 = vsel %vm4535_vm14, %v9680_v53, %v4526_v48  ;;  %v4528_v52 = vpop.permute.xlu1 %4527  ;;  %v4565_v53 = vmax.f32 %v10719_v28, %v4410_v44 }
 0x64c   :  { %v4605_v60 = vmax.f32 %v10715_v62, %v4543_v22  ;;  %v4536_v33 = vsel %vm4535_vm14, %v4520_v30, %v4528_v52  ;;  %v4556_v6 = vsel %vm4535_vm14, %v4528_v52, %v10716_v1  ;;  %v4393_v30 = vsel %vm4389_vm1, %v10722_v43, %v9672_v54 }
 0x64d   :  { %v4588_v5 = vmax.f32 %v10720_v50, %v4536_v33  ;;  %v4589_v16 = vmax.f32 %v4483_v25, %v4556_v6  ;;  %v4465_v54 = vsel %vm4462_vm2, %v9539_v15, %v9684_v57  ;;  %v4582_v57 = vmax.f32 %v10728_v2, %v4393_v30 }
 0x64e   :  { %v4629_v21 = vmax.f32 %v4581_v7, %v4605_v60 }
 0x64f   :  { %v4612_v13 = vmax.f32 %v4564_v40, %v4588_v5  ;;  %v4613_v58 = vmax.f32 %v4565_v53, %v4589_v16 }
 0x650   :  { %4653 = vst [vmem:[%s9900_s5 + $0xa8] sm:$0xff] %v4629_v21 }
 0x651   :  { %4636 = vst [vmem:[%s9900_s5 + $0x20] sm:$0xff] %v4612_v13 }
 0x652   :  { %4637 = vst [vmem:[%s9900_s5 + $0x28] sm:$0xff] %v4613_v58  ;;  %v4532_v49 = vpop.permute.xlu0 %4531 }
 0x653   :  { %v4538_v39 = vsel %vm4535_vm14, %v9686_v63, %v4532_v49  ;;  %v4558_v41 = vsel %vm4535_vm14, %v4532_v49, %v10727_v20  ;;  %v4534_v46 = vpop.permute.xlu1 %4533 }
 0x654   :  { %v4600_v23 = vmax.f32 %v4465_v54, %v4538_v39  ;;  %v4601_v42 = vmax.f32 %v4485_v17, %v4558_v41  ;;  %v4539_v37 = vsel %vm4535_vm14, %v4526_v48, %v4534_v46  ;;  %v4559_v15 = vsel %vm4535_vm14, %v4534_v46, %v9555_v36 }
 0x655   :  { %v4606_v11 = vmax.f32 %v4466_v3, %v4539_v37  ;;  %v4607_v63 = vmax.f32 %v4486_v26, %v4559_v15 }
 0x656   :  { %v4624_v61 = vmax.f32 %v4576_v34, %v4600_v23  ;;  %v4625_v18 = vmax.f32 %v4577_v59, %v4601_v42 }
 0x657   :  { %v4630_v31 = vmax.f32 %v4582_v57, %v4606_v11  ;;  %v4631_v38 = vmax.f32 %v4583_v29, %v4607_v63 }
 0x658   :  { %4648 = vst [vmem:[%s9900_s5 + $0x80] sm:$0xff] %v4624_v61 }
 0x659   :  { %4649 = vst [vmem:[%s9900_s5 + $0x88] sm:$0xff] %v4625_v18 }
 0x65a   :  { %4654 = vst [vmem:[%s9900_s5 + $0xb0] sm:$0xff] %v4630_v31 }
 0x65b   :  { %4655 = vst [vmem:[%s9900_s5 + $0xb8] sm:$0xff] %v4631_v38 }

</bundles_post_ra>
